<compile_context>
chip_gen: v6e
topology: v6e:2x2x1
jax: 0.10.0
libtpu: 0.0.40
codegen_flags: <defaults>
</compile_context>

<pallas_src>
import math

import jax
import jax.numpy as jnp
from jax.experimental import pallas as pl
from jax.experimental.pallas import tpu as pltpu


# -----------------------------------------------------------------------------
# Fused conv2d (stride 1, "same") + bias + BN affine + activation (+ residual).
# -----------------------------------------------------------------------------
def _make_conv_kernel(*, TH, W, Cin, Cout, KH, KW, nT, act, has_res):
    ph, pw = (KH - 1) // 2, (KW - 1) // 2
    THp = TH + 2 * ph
    pointwise = (KH == 1 and KW == 1)

    def kernel(*refs):
        refs = list(refs)
        x_ref = refs.pop(0)
        if not pointwise:
            top_ref = refs.pop(0)
            bot_ref = refs.pop(0)
        w_ref = refs.pop(0)
        scale_ref = refs.pop(0)
        shift_ref = refs.pop(0)
        alpha_ref = refs.pop(0) if act == "prelu" else None
        res_ref = refs.pop(0) if has_res else None
        o_ref = refs.pop(0)
        if not pointwise:
            xs_ref = refs.pop(0)
        acc_ref = refs.pop(0)

        if pointwise:
            # 1x1 conv (also used for the im2col'd 9x9 conv1): one deep-K MXU matmul.
            patch = x_ref[0].reshape(TH * W, Cin)
            acc_ref[...] = jnp.dot(patch, w_ref[0, 0],
                                   preferred_element_type=jnp.float32)
        else:
            t = pl.program_id(1)
            dt = x_ref.dtype

            # Assemble the KW width-shifted, zero-padded input windows in VMEM scratch.
            # xs[kw, r, c, :] == x[tile_row0 - ph + r, c + kw - pw, :]  (0 outside image)
            for kw in range(KW):
                s = kw - pw
                if s < 0:
                    dst0, src0, cw = -s, 0, W + s
                elif s > 0:
                    dst0, src0, cw = 0, s, W - s
                else:
                    dst0, src0, cw = 0, 0, W
                xs_ref[kw, ph:ph + TH, dst0:dst0 + cw, :] = \
                    x_ref[0, :, src0:src0 + cw, :]
                xs_ref[kw, 0:ph, dst0:dst0 + cw, :] = \
                    top_ref[0, :, src0:src0 + cw, :]
                xs_ref[kw, ph + TH:THp, dst0:dst0 + cw, :] = \
                    bot_ref[0, :, src0:src0 + cw, :]
                if s < 0:
                    xs_ref[kw, :, 0:dst0, :] = jnp.zeros((THp, dst0, Cin), dt)
                elif s > 0:
                    xs_ref[kw, :, W - s:W, :] = jnp.zeros((THp, s, Cin), dt)

            # In-kernel "same" padding along H: zero the halo bands at image borders.
            @pl.when(t == 0)
            def _zero_top():
                xs_ref[:, 0:ph, :, :] = jnp.zeros((KW, ph, W, Cin), dt)

            @pl.when(t == nT - 1)
            def _zero_bot():
                xs_ref[:, ph + TH:THp, :, :] = jnp.zeros((KW, ph, W, Cin), dt)

            # Tap loop: contiguous row-window loads -> bf16 MXU matmuls -> f32 scratch acc.
            first = True
            for kw in range(KW):
                for kh in range(KH):
                    patch = xs_ref[kw, kh:kh + TH, :, :].reshape(TH * W, Cin)
                    contrib = jnp.dot(patch, w_ref[kh, kw],
                                      preferred_element_type=jnp.float32)
                    if first:
                        acc_ref[...] = contrib
                        first = False
                    else:
                        acc_ref[...] += contrib

        # Bias is folded into shift: y = conv*scale + (bias*scale + shift)
        y = acc_ref[...]
        y = y * scale_ref[...] + shift_ref[...]
        if act == "prelu":
            a = alpha_ref[0]
            y = jnp.where(y >= 0, y, a * y)
        elif act == "tanh":
            y = jnp.tanh(y)
        y = y.reshape(TH, W, Cout)
        if has_res:
            y = y + res_ref[0].astype(jnp.float32)
        o_ref[0] = y.astype(o_ref.dtype)

    return kernel


def _pick_tile_h(H, W, Cin, Cout, KH, KW, itemsize, has_res, budget_bytes):
    """Largest multiple-of-8 divisor of H whose per-step VMEM footprint fits the budget."""
    ph = (KH - 1) // 2
    cands = [d for d in range(8, H + 1, 8) if H % d == 0]
    if not cands:
        return H

    def est(th):
        thp = th + 2 * ph
        n = 2 * th * W * Cin * itemsize              # main input (double-buffered)
        n += 4 * ph * W * Cin * itemsize             # halo rows (2 specs x 2 buffers)
        n += 2 * KH * KW * Cin * Cout * itemsize     # weights
        n += 2 * th * W * Cout * itemsize            # output (double-buffered)
        if has_res:
            n += 2 * th * W * Cout * itemsize        # residual input
        if KH * KW > 1:
            n += KW * thp * W * Cin * itemsize       # shifted-window scratch
        n += th * W * max(Cout, 128) * 4             # f32 accumulator (lane-padded)
        return n

    for th in sorted(cands, reverse=True):
        if est(th) <= budget_bytes:
            return th
    return cands[0]


def conv2d_bn_act(x, w, b, *, scale=None, shift=None, act="none", alpha=None,
                  residual=None, tile_h=None, vmem_budget=12 * 1024 * 1024):
    """y = act((conv(x) + b) * scale + shift) [+ residual]; NHWC, stride 1, 'same'."""
    B, H, W, Cin = x.shape
    KH, KW, wc, Cout = w.shape
    assert wc == Cin and KH % 2 == 1 and KW % 2 == 1
    ph = (KH - 1) // 2
    dtype = x.dtype
    itemsize = jnp.dtype(dtype).itemsize
    pointwise = (KH == 1 and KW == 1)
    has_res = residual is not None

    if scale is None:
        scale = jnp.ones((Cout,), jnp.float32)
    if shift is None:
        shift = jnp.zeros((Cout,), jnp.float32)
    scale_f = scale.astype(jnp.float32)
    shift_f = b.astype(jnp.float32) * scale_f + shift.astype(jnp.float32)
    scale2 = scale_f.reshape(1, Cout)
    shift2 = shift_f.reshape(1, Cout)

    TH = tile_h if tile_h is not None else _pick_tile_h(
        H, W, Cin, Cout, KH, KW, itemsize, has_res, vmem_budget)
    assert H % TH == 0, (H, TH)
    nT = H // TH
    THp = TH + 2 * ph

    w_k = w.astype(dtype)

    in_specs = [pl.BlockSpec((1, TH, W, Cin), lambda bi, ti: (bi, ti, 0, 0))]
    args = [x]
    if not pointwise:
        hb = TH // ph          # halo blocks (of ph rows) per main tile
        nhb = H // ph
        in_specs += [
            pl.BlockSpec((1, ph, W, Cin),
                         lambda bi, ti: (bi, jnp.maximum(ti * hb - 1, 0), 0, 0)),
            pl.BlockSpec((1, ph, W, Cin),
                         lambda bi, ti: (bi, jnp.minimum((ti + 1) * hb, nhb - 1), 0, 0)),
        ]
        args += [x, x]
    in_specs += [
        pl.BlockSpec((KH, KW, Cin, Cout), lambda bi, ti: (0, 0, 0, 0)),
        pl.BlockSpec((1, Cout), lambda bi, ti: (0, 0)),
        pl.BlockSpec((1, Cout), lambda bi, ti: (0, 0)),
    ]
    args += [w_k, scale2, shift2]
    if act == "prelu":
        in_specs.append(pl.BlockSpec(memory_space=pltpu.MemorySpace.SMEM))
        args.append(jnp.asarray(alpha, jnp.float32).reshape((1,)))
    if has_res:
        in_specs.append(pl.BlockSpec((1, TH, W, Cout), lambda bi, ti: (bi, ti, 0, 0)))
        args.append(residual.astype(dtype))

    scratch_shapes = []
    if not pointwise:
        scratch_shapes.append(pltpu.VMEM((KW, THp, W, Cin), dtype))
    scratch_shapes.append(pltpu.VMEM((TH * W, Cout), jnp.float32))

    kernel = _make_conv_kernel(TH=TH, W=W, Cin=Cin, Cout=Cout, KH=KH, KW=KW,
                               nT=nT, act=act, has_res=has_res)

    flops = 2 * B * H * W * KH * KW * Cin * Cout
    transcendentals = B * H * W * Cout if act == "tanh" else 0
    bytes_accessed = (x.size + w_k.size + B * H * W * Cout) * itemsize
    if has_res:
        bytes_accessed += residual.size * itemsize
    cost = pl.CostEstimate(flops=int(flops), transcendentals=int(transcendentals),
                           bytes_accessed=int(bytes_accessed))

    return pl.pallas_call(
        kernel,
        out_shape=jax.ShapeDtypeStruct((B, H, W, Cout), dtype),
        grid=(B, nT),
        in_specs=in_specs,
        out_specs=pl.BlockSpec((1, TH, W, Cout), lambda bi, ti: (bi, ti, 0, 0)),
        scratch_shapes=scratch_shapes,
        compiler_params=pltpu.CompilerParams(
            dimension_semantics=("parallel", "parallel"),
            vmem_limit_bytes=48 * 1024 * 1024),
        cost_estimate=cost,
    )(*args)


# -----------------------------------------------------------------------------
# Plain-JAX glue (data movement / init-time preprocessing).
# -----------------------------------------------------------------------------
def _im2col(x, k):
    """9x9 (or kxk) patch extraction for the tiny-Cin first conv -> deep-K matmul."""
    B, H, W, C = x.shape
    p = (k - 1) // 2
    xp = jnp.pad(x, ((0, 0), (p, p), (p, p), (0, 0)))
    cols = [xp[:, i:i + H, j:j + W, :] for i in range(k) for j in range(k)]
    return jnp.concatenate(cols, axis=-1)  # (B, H, W, k*k*C)


def pixel_shuffle_nhwc(x, r):
    # Matches torch.nn.PixelShuffle given our channel ordering.
    B, H, W, C = x.shape
    co = C // (r * r)
    x = x.reshape(B, H, W, co, r, r)
    x = jnp.transpose(x, (0, 1, 4, 2, 5, 3))  # (B, H, r, W, r, co)
    return x.reshape(B, H * r, W * r, co)


def spectral_normalize(w, key, n_iter=20):
    # PyTorch spectral_norm normalizes the weight viewed as (Cout, Cin*KH*KW).
    KH, KW, Cin, Cout = w.shape
    wm = jnp.transpose(w, (3, 2, 0, 1)).reshape(Cout, Cin * KH * KW)
    u = jax.random.normal(key, (Cout,), jnp.float32)
    u = u / (jnp.linalg.norm(u) + 1e-12)
    v = None
    for _ in range(n_iter):
        v = wm.T @ u
        v = v / (jnp.linalg.norm(v) + 1e-12)
        u = wm @ v
        u = u / (jnp.linalg.norm(u) + 1e-12)
    sigma = u @ (wm @ v)
    return w / sigma


# -----------------------------------------------------------------------------
# Parameter construction (deterministic, synthetic).
# -----------------------------------------------------------------------------
def _conv_params(key, kh, kw, cin, cout):
    k1, k2, k3 = jax.random.split(key, 3)
    fan_in = cin * kh * kw
    bound = 1.0 / math.sqrt(fan_in)
    w = jax.random.uniform(k1, (kh, kw, cin, cout), jnp.float32, -bound, bound)
    b = jax.random.uniform(k2, (cout,), jnp.float32, -bound, bound)
    w = spectral_normalize(w, k3)
    return w, b


def _bn_scale_shift(cout, eps):
    # TODO(synk): BatchNorm implemented in inference mode (running_mean=0, running_var=1,
    # gamma=1, beta=0, i.e. fresh-module eval semantics); train-mode batch statistics
    # are not computed in-kernel.
    gamma = jnp.ones((cout,), jnp.float32)
    beta = jnp.zeros((cout,), jnp.float32)
    mean = jnp.zeros((cout,), jnp.float32)
    var = jnp.ones((cout,), jnp.float32)
    scale = gamma / jnp.sqrt(var + eps)
    shift = beta - mean * scale
    return scale, shift


def init_generator_params(key, in_channels=3, out_channels=3, n_residual_blocks=16):
    def nk():
        nonlocal key
        key, sub = jax.random.split(key)
        return sub

    params = {}
    params["conv1_w"], params["conv1_b"] = _conv_params(nk(), 9, 9, in_channels, 64)
    params["conv1_alpha"] = jnp.float32(0.25)

    res = []
    for _ in range(n_residual_blocks):
        w1, b1 = _conv_params(nk(), 3, 3, 64, 64)
        w2, b2 = _conv_params(nk(), 3, 3, 64, 64)
        s1, h1 = _bn_scale_shift(64, eps=0.8)   # nn.BatchNorm2d(in_features, 0.8) -> eps=0.8
        s2, h2 = _bn_scale_shift(64, eps=0.8)
        res.append({"w1": w1, "b1": b1, "bn1_scale": s1, "bn1_shift": h1,
                    "alpha": jnp.float32(0.25),
                    "w2": w2, "b2": b2, "bn2_scale": s2, "bn2_shift": h2})
    params["res"] = res

    params["conv2_w"], params["conv2_b"] = _conv_params(nk(), 3, 3, 64, 64)
    params["bn2_scale"], params["bn2_shift"] = _bn_scale_shift(64, eps=0.8)

    ups = []
    for _ in range(2):
        w, b = _conv_params(nk(), 3, 3, 64, 256)
        s, h = _bn_scale_shift(256, eps=1e-5)
        ups.append({"w": w, "b": b, "bn_scale": s, "bn_shift": h,
                    "alpha": jnp.float32(0.25)})
    params["up"] = ups

    params["conv3_w"], params["conv3_b"] = _conv_params(nk(), 9, 9, 64, out_channels)
    return params


# -----------------------------------------------------------------------------
# Forward pass (matches GeneratorResNet.forward).
# -----------------------------------------------------------------------------
def generator_forward(params, x_nchw, *, compute_dtype=jnp.bfloat16):
    x = jnp.transpose(x_nchw, (0, 2, 3, 1)).astype(compute_dtype)
    cin = x.shape[-1]

    # conv1 (9x9, Cin=3) + PReLU: im2col to K = 81*Cin = 243, one deep-K MXU matmul.
    patches = _im2col(x, 9)
    w1 = params["conv1_w"].reshape(1, 1, 81 * cin, 64)
    out1 = conv2d_bn_act(patches, w1, params["conv1_b"],
                         act="prelu", alpha=params["conv1_alpha"])

    # residual blocks: x + BN(conv(PReLU(BN(conv(x)))))
    out = out1
    for rb in params["res"]:
        h = conv2d_bn_act(out, rb["w1"], rb["b1"],
                          scale=rb["bn1_scale"], shift=rb["bn1_shift"],
                          act="prelu", alpha=rb["alpha"])
        out = conv2d_bn_act(h, rb["w2"], rb["b2"],
                            scale=rb["bn2_scale"], shift=rb["bn2_shift"],
                            act="none", residual=out)

    # conv2 + BN, then out1 + out2 (fused as residual add in the kernel)
    out = conv2d_bn_act(out, params["conv2_w"], params["conv2_b"],
                        scale=params["bn2_scale"], shift=params["bn2_shift"],
                        act="none", residual=out1)

    # upsampling: conv -> BN -> PixelShuffle(2) -> PReLU.  PReLU's single scalar alpha
    # commutes with the (pure permutation) pixel shuffle, so it is fused into the conv.
    for up in params["up"]:
        out = conv2d_bn_act(out, up["w"], up["b"],
                            scale=up["bn_scale"], shift=up["bn_shift"],
                            act="prelu", alpha=up["alpha"])
        out = pixel_shuffle_nhwc(out, 2)

    # conv3 + tanh
    out = conv2d_bn_act(out, params["conv3_w"], params["conv3_b"], act="tanh")

    return jnp.transpose(out.astype(jnp.float32), (0, 3, 1, 2))


# -----------------------------------------------------------------------------
# Self-check of the fused conv kernel against lax.conv (exercises the halo tiling).
# -----------------------------------------------------------------------------
def _conv_reference(x, w, b, scale, shift, act, alpha, residual):
    y = jax.lax.conv_general_dilated(
        x, w, window_strides=(1, 1), padding="SAME",
        dimension_numbers=("NHWC", "HWIO", "NHWC"),
        precision=jax.lax.Precision.HIGHEST)
    Cout = w.shape[-1]
    if scale is None:
        scale = jnp.ones((Cout,), jnp.float32)
    if shift is None:
        shift = jnp.zeros((Cout,), jnp.float32)
    y = (y + b) * scale + shift
    if act == "prelu":
        y = jnp.where(y >= 0, y, alpha * y)
    elif act == "tanh":
        y = jnp.tanh(y)
    if residual is not None:
        y = y + residual
    return y


def _self_check():
    key = jax.random.PRNGKey(42)
    k = jax.random.split(key, 8)
    B, H, W = 2, 16, 16
    Cin = 64

    # (a) 3x3, Cin=Cout=64, BN + PReLU + residual (residual-block shape), tiled rows.
    Cout = 64
    x = jax.random.normal(k[0], (B, H, W, Cin), jnp.float32)
    w = jax.random.normal(k[1], (3, 3, Cin, Cout), jnp.float32) / math.sqrt(9 * Cin)
    b = 0.1 * jax.random.normal(k[2], (Cout,), jnp.float32)
    scale = jnp.linspace(0.5, 1.5, Cout).astype(jnp.float32)
    shift = jnp.linspace(-0.2, 0.2, Cout).astype(jnp.float32)
    res = jax.random.normal(k[3], (B, H, W, Cout), jnp.float32)
    want = _conv_reference(x, w, b, scale, shift, "prelu", 0.25, res)
    got = conv2d_bn_act(x.astype(jnp.bfloat16), w, b, scale=scale, shift=shift,
                        act="prelu", alpha=jnp.float32(0.25),
                        residual=res.astype(jnp.bfloat16), tile_h=8)
    assert float(jnp.max(jnp.abs(got.astype(jnp.float32) - want))) < 0.1

    # (b) 9x9, Cin=64, Cout=3, tanh (conv3 shape), tiled rows.
    w3 = jax.random.normal(k[4], (9, 9, Cin, 3), jnp.float32) / math.sqrt(81 * Cin)
    b3 = 0.1 * jax.random.normal(k[5], (3,), jnp.float32)
    want = _conv_reference(x, w3, b3, None, None, "tanh", None, None)
    got = conv2d_bn_act(x.astype(jnp.bfloat16), w3, b3, act="tanh", tile_h=8)
    assert float(jnp.max(jnp.abs(got.astype(jnp.float32) - want))) < 0.1

    # (c) conv1 path: 9x9, Cin=3 via im2col + pointwise kernel, PReLU.
    x3 = jax.random.normal(k[6], (B, H, W, 3), jnp.float32)
    w1 = jax.random.normal(k[7], (9, 9, 3, 64), jnp.float32) / math.sqrt(81 * 3)
    b1 = jnp.zeros((64,), jnp.float32)
    want = _conv_reference(x3, w1, b1, None, None, "prelu", 0.25, None)
    patches = _im2col(x3.astype(jnp.bfloat16), 9)
    got = conv2d_bn_act(patches, w1.reshape(1, 1, 81 * 3, 64), b1,
                        act="prelu", alpha=jnp.float32(0.25), tile_h=8)
    assert float(jnp.max(jnp.abs(got.astype(jnp.float32) - want))) < 0.1


if __name__ == "__main__":
    _self_check()

    key = jax.random.PRNGKey(0)
    pkey, xkey = jax.random.split(key)

    # Small shapes: batch=2, in_channels=3, 16x16 spatial, 3 residual blocks
    # (architecture default is 16; reduced for a fast synthetic test).
    in_channels, out_channels, n_res = 3, 3, 3
    params = init_generator_params(pkey, in_channels, out_channels, n_res)

    x = jax.random.normal(xkey, (2, in_channels, 16, 16), jnp.float32)

    fwd = jax.jit(generator_forward)
    y = jax.block_until_ready(fwd(params, x))

    assert y.shape == (2, out_channels, 64, 64), y.shape
    assert bool(jnp.all(jnp.isfinite(y)))
    print("KERNEL_OK")
</pallas_src>

<mosaic_0001>
module attributes {stable_mosaic.version = 11 : i64} {
  func.func @kernel(%arg0: i32, %arg1: i32, %arg2: memref<1x8x16x64xbf16, #tpu.memory_space<vmem>>, %arg3: memref<1x1x16x64xbf16, #tpu.memory_space<vmem>>, %arg4: memref<1x1x16x64xbf16, #tpu.memory_space<vmem>>, %arg5: memref<3x3x64x64xbf16, #tpu.memory_space<vmem>>, %arg6: memref<1x64xf32, #tpu.memory_space<vmem>>, %arg7: memref<1x64xf32, #tpu.memory_space<vmem>>, %arg8: memref<1xf32, #tpu.memory_space<smem>>, %arg9: memref<1x8x16x64xbf16, #tpu.memory_space<vmem>>, %arg10: memref<1x8x16x64xbf16, #tpu.memory_space<vmem>>, %arg11: memref<3x10x16x64xbf16, #tpu.memory_space<vmem>>, %arg12: memref<128x64xf32, #tpu.memory_space<vmem>>) attributes {dimension_semantics = [#tpu.dimension_semantics<parallel>, #tpu.dimension_semantics<parallel>], iteration_bounds = array<i64: 2, 2>, scalar_prefetch = 0 : i64, scratch_operands = 2 : i64, tpu.core_type = #tpu.core_type<tc>, window_params = [{transform_indices = @transform_0, window_bounds = array<i64: 1, 8, 16, 64>}, {transform_indices = @transform_1, window_bounds = array<i64: 1, 1, 16, 64>}, {transform_indices = @transform_2, window_bounds = array<i64: 1, 1, 16, 64>}, {pipeline_mode = #tpu.pipeline_mode<synchronous>, transform_indices = @transform_3, window_bounds = array<i64: 3, 3, 64, 64>}, {pipeline_mode = #tpu.pipeline_mode<synchronous>, transform_indices = @transform_4, window_bounds = array<i64: 1, 64>}, {pipeline_mode = #tpu.pipeline_mode<synchronous>, transform_indices = @transform_5, window_bounds = array<i64: 1, 64>}, {transform_indices = @transform_6, window_bounds = array<i64: 1>}, {transform_indices = @transform_7, window_bounds = array<i64: 1, 8, 16, 64>}, {transform_indices = @transform_8, window_bounds = array<i64: 1, 8, 16, 64>}]} {
    %c0 = arith.constant 0 : index
    %c0_0 = arith.constant 0 : index
    %c0_1 = arith.constant 0 : index
    %c0_2 = arith.constant 0 : index
    %0 = vector.load %arg2[%c0, %c0_0, %c0_1, %c0_2] : memref<1x8x16x64xbf16, #tpu.memory_space<vmem>>, vector<1x8x15x64xbf16>
    %1 = vector.shape_cast %0 : vector<1x8x15x64xbf16> to vector<8x15x64xbf16>
    %c0_3 = arith.constant 0 : index
    %c1 = arith.constant 1 : index
    %c1_4 = arith.constant 1 : index
    %c0_5 = arith.constant 0 : index
    %2 = vector.load %arg11[%c0_3, %c1, %c1_4, %c0_5] : memref<3x10x16x64xbf16, #tpu.memory_space<vmem>>, vector<1x8x15x64xbf16>
    %3 = vector.shape_cast %2 : vector<1x8x15x64xbf16> to vector<8x15x64xbf16>
    %4 = vector.shape_cast %1 : vector<8x15x64xbf16> to vector<1x8x15x64xbf16>
    tpu.vector_store %arg11[%c0_3, %c1, %c1_4, %c0_5], %4 {strides = array<i32>} : memref<3x10x16x64xbf16, #tpu.memory_space<vmem>>, vector<1x8x15x64xbf16>,
    %c0_6 = arith.constant 0 : index
    %c0_7 = arith.constant 0 : index
    %c0_8 = arith.constant 0 : index
    %c0_9 = arith.constant 0 : index
    %5 = vector.load %arg3[%c0_6, %c0_7, %c0_8, %c0_9] : memref<1x1x16x64xbf16, #tpu.memory_space<vmem>>, vector<1x1x15x64xbf16>
    %6 = vector.shape_cast %5 : vector<1x1x15x64xbf16> to vector<1x15x64xbf16>
    %c0_10 = arith.constant 0 : index
    %c0_11 = arith.constant 0 : index
    %c1_12 = arith.constant 1 : index
    %c0_13 = arith.constant 0 : index
    %7 = vector.load %arg11[%c0_10, %c0_11, %c1_12, %c0_13] : memref<3x10x16x64xbf16, #tpu.memory_space<vmem>>, vector<1x1x15x64xbf16>
    %8 = vector.shape_cast %7 : vector<1x1x15x64xbf16> to vector<1x15x64xbf16>
    %9 = vector.shape_cast %6 : vector<1x15x64xbf16> to vector<1x1x15x64xbf16>
    tpu.vector_store %arg11[%c0_10, %c0_11, %c1_12, %c0_13], %9 {strides = array<i32>} : memref<3x10x16x64xbf16, #tpu.memory_space<vmem>>, vector<1x1x15x64xbf16>,
    %c0_14 = arith.constant 0 : index
    %c0_15 = arith.constant 0 : index
    %c0_16 = arith.constant 0 : index
    %c0_17 = arith.constant 0 : index
    %10 = vector.load %arg4[%c0_14, %c0_15, %c0_16, %c0_17] : memref<1x1x16x64xbf16, #tpu.memory_space<vmem>>, vector<1x1x15x64xbf16>
    %11 = vector.shape_cast %10 : vector<1x1x15x64xbf16> to vector<1x15x64xbf16>
    %c0_18 = arith.constant 0 : index
    %c9 = arith.constant 9 : index
    %c1_19 = arith.constant 1 : index
    %c0_20 = arith.constant 0 : index
    %12 = vector.load %arg11[%c0_18, %c9, %c1_19, %c0_20] : memref<3x10x16x64xbf16, #tpu.memory_space<vmem>>, vector<1x1x15x64xbf16>
    %13 = vector.shape_cast %12 : vector<1x1x15x64xbf16> to vector<1x15x64xbf16>
    %14 = vector.shape_cast %11 : vector<1x15x64xbf16> to vector<1x1x15x64xbf16>
    tpu.vector_store %arg11[%c0_18, %c9, %c1_19, %c0_20], %14 {strides = array<i32>} : memref<3x10x16x64xbf16, #tpu.memory_space<vmem>>, vector<1x1x15x64xbf16>,
    %cst = arith.constant 0.000000e+00 : bf16
    %15 = vector.broadcast %cst : bf16 to vector<10x1x64xbf16>
    %c0_21 = arith.constant 0 : index
    %c0_22 = arith.constant 0 : index
    %c0_23 = arith.constant 0 : index
    %c0_24 = arith.constant 0 : index
    %16 = vector.load %arg11[%c0_21, %c0_22, %c0_23, %c0_24] : memref<3x10x16x64xbf16, #tpu.memory_space<vmem>>, vector<1x10x1x64xbf16>
    %17 = vector.shape_cast %16 : vector<1x10x1x64xbf16> to vector<10x1x64xbf16>
    %18 = vector.shape_cast %15 : vector<10x1x64xbf16> to vector<1x10x1x64xbf16>
    tpu.vector_store %arg11[%c0_21, %c0_22, %c0_23, %c0_24], %18 {strides = array<i32>} : memref<3x10x16x64xbf16, #tpu.memory_space<vmem>>, vector<1x10x1x64xbf16>,
    %c0_25 = arith.constant 0 : index
    %c0_26 = arith.constant 0 : index
    %c0_27 = arith.constant 0 : index
    %c0_28 = arith.constant 0 : index
    %19 = vector.load %arg2[%c0_25, %c0_26, %c0_27, %c0_28] : memref<1x8x16x64xbf16, #tpu.memory_space<vmem>>, vector<1x8x16x64xbf16>
    %20 = vector.shape_cast %19 : vector<1x8x16x64xbf16> to vector<8x16x64xbf16>
    %c1_29 = arith.constant 1 : index
    %c1_30 = arith.constant 1 : index
    %c0_31 = arith.constant 0 : index
    %c0_32 = arith.constant 0 : index
    %21 = vector.load %arg11[%c1_29, %c1_30, %c0_31, %c0_32] : memref<3x10x16x64xbf16, #tpu.memory_space<vmem>>, vector<1x8x16x64xbf16>
    %22 = vector.shape_cast %21 : vector<1x8x16x64xbf16> to vector<8x16x64xbf16>
    %23 = vector.shape_cast %20 : vector<8x16x64xbf16> to vector<1x8x16x64xbf16>
    tpu.vector_store %arg11[%c1_29, %c1_30, %c0_31, %c0_32], %23 {strides = array<i32>} : memref<3x10x16x64xbf16, #tpu.memory_space<vmem>>, vector<1x8x16x64xbf16>,
    %c0_33 = arith.constant 0 : index
    %c0_34 = arith.constant 0 : index
    %c0_35 = arith.constant 0 : index
    %c0_36 = arith.constant 0 : index
    %24 = vector.load %arg3[%c0_33, %c0_34, %c0_35, %c0_36] : memref<1x1x16x64xbf16, #tpu.memory_space<vmem>>, vector<1x1x16x64xbf16>
    %25 = vector.shape_cast %24 : vector<1x1x16x64xbf16> to vector<1x16x64xbf16>
    %c1_37 = arith.constant 1 : index
    %c0_38 = arith.constant 0 : index
    %c0_39 = arith.constant 0 : index
    %c0_40 = arith.constant 0 : index
    %26 = vector.load %arg11[%c1_37, %c0_38, %c0_39, %c0_40] : memref<3x10x16x64xbf16, #tpu.memory_space<vmem>>, vector<1x1x16x64xbf16>
    %27 = vector.shape_cast %26 : vector<1x1x16x64xbf16> to vector<1x16x64xbf16>
    %28 = vector.shape_cast %25 : vector<1x16x64xbf16> to vector<1x1x16x64xbf16>
    tpu.vector_store %arg11[%c1_37, %c0_38, %c0_39, %c0_40], %28 {strides = array<i32>} : memref<3x10x16x64xbf16, #tpu.memory_space<vmem>>, vector<1x1x16x64xbf16>,
    %c0_41 = arith.constant 0 : index
    %c0_42 = arith.constant 0 : index
    %c0_43 = arith.constant 0 : index
    %c0_44 = arith.constant 0 : index
    %29 = vector.load %arg4[%c0_41, %c0_42, %c0_43, %c0_44] : memref<1x1x16x64xbf16, #tpu.memory_space<vmem>>, vector<1x1x16x64xbf16>
    %30 = vector.shape_cast %29 : vector<1x1x16x64xbf16> to vector<1x16x64xbf16>
    %c1_45 = arith.constant 1 : index
    %c9_46 = arith.constant 9 : index
    %c0_47 = arith.constant 0 : index
    %c0_48 = arith.constant 0 : index
    %31 = vector.load %arg11[%c1_45, %c9_46, %c0_47, %c0_48] : memref<3x10x16x64xbf16, #tpu.memory_space<vmem>>, vector<1x1x16x64xbf16>
    %32 = vector.shape_cast %31 : vector<1x1x16x64xbf16> to vector<1x16x64xbf16>
    %33 = vector.shape_cast %30 : vector<1x16x64xbf16> to vector<1x1x16x64xbf16>
    tpu.vector_store %arg11[%c1_45, %c9_46, %c0_47, %c0_48], %33 {strides = array<i32>} : memref<3x10x16x64xbf16, #tpu.memory_space<vmem>>, vector<1x1x16x64xbf16>,
    %c0_49 = arith.constant 0 : index
    %c0_50 = arith.constant 0 : index
    %c1_51 = arith.constant 1 : index
    %c0_52 = arith.constant 0 : index
    %34 = vector.load %arg2[%c0_49, %c0_50, %c1_51, %c0_52] : memref<1x8x16x64xbf16, #tpu.memory_space<vmem>>, vector<1x8x15x64xbf16>
    %35 = vector.shape_cast %34 : vector<1x8x15x64xbf16> to vector<8x15x64xbf16>
    %c2 = arith.constant 2 : index
    %c1_53 = arith.constant 1 : index
    %c0_54 = arith.constant 0 : index
    %c0_55 = arith.constant 0 : index
    %36 = vector.load %arg11[%c2, %c1_53, %c0_54, %c0_55] : memref<3x10x16x64xbf16, #tpu.memory_space<vmem>>, vector<1x8x15x64xbf16>
    %37 = vector.shape_cast %36 : vector<1x8x15x64xbf16> to vector<8x15x64xbf16>
    %38 = vector.shape_cast %35 : vector<8x15x64xbf16> to vector<1x8x15x64xbf16>
    tpu.vector_store %arg11[%c2, %c1_53, %c0_54, %c0_55], %38 {strides = array<i32>} : memref<3x10x16x64xbf16, #tpu.memory_space<vmem>>, vector<1x8x15x64xbf16>,
    %c0_56 = arith.constant 0 : index
    %c0_57 = arith.constant 0 : index
    %c1_58 = arith.constant 1 : index
    %c0_59 = arith.constant 0 : index
    %39 = vector.load %arg3[%c0_56, %c0_57, %c1_58, %c0_59] : memref<1x1x16x64xbf16, #tpu.memory_space<vmem>>, vector<1x1x15x64xbf16>
    %40 = vector.shape_cast %39 : vector<1x1x15x64xbf16> to vector<1x15x64xbf16>
    %c2_60 = arith.constant 2 : index
    %c0_61 = arith.constant 0 : index
    %c0_62 = arith.constant 0 : index
    %c0_63 = arith.constant 0 : index
    %41 = vector.load %arg11[%c2_60, %c0_61, %c0_62, %c0_63] : memref<3x10x16x64xbf16, #tpu.memory_space<vmem>>, vector<1x1x15x64xbf16>
    %42 = vector.shape_cast %41 : vector<1x1x15x64xbf16> to vector<1x15x64xbf16>
    %43 = vector.shape_cast %40 : vector<1x15x64xbf16> to vector<1x1x15x64xbf16>
    tpu.vector_store %arg11[%c2_60, %c0_61, %c0_62, %c0_63], %43 {strides = array<i32>} : memref<3x10x16x64xbf16, #tpu.memory_space<vmem>>, vector<1x1x15x64xbf16>,
    %c0_64 = arith.constant 0 : index
    %c0_65 = arith.constant 0 : index
    %c1_66 = arith.constant 1 : index
    %c0_67 = arith.constant 0 : index
    %44 = vector.load %arg4[%c0_64, %c0_65, %c1_66, %c0_67] : memref<1x1x16x64xbf16, #tpu.memory_space<vmem>>, vector<1x1x15x64xbf16>
    %45 = vector.shape_cast %44 : vector<1x1x15x64xbf16> to vector<1x15x64xbf16>
    %c2_68 = arith.constant 2 : index
    %c9_69 = arith.constant 9 : index
    %c0_70 = arith.constant 0 : index
    %c0_71 = arith.constant 0 : index
    %46 = vector.load %arg11[%c2_68, %c9_69, %c0_70, %c0_71] : memref<3x10x16x64xbf16, #tpu.memory_space<vmem>>, vector<1x1x15x64xbf16>
    %47 = vector.shape_cast %46 : vector<1x1x15x64xbf16> to vector<1x15x64xbf16>
    %48 = vector.shape_cast %45 : vector<1x15x64xbf16> to vector<1x1x15x64xbf16>
    tpu.vector_store %arg11[%c2_68, %c9_69, %c0_70, %c0_71], %48 {strides = array<i32>} : memref<3x10x16x64xbf16, #tpu.memory_space<vmem>>, vector<1x1x15x64xbf16>,
    %cst_72 = arith.constant 0.000000e+00 : bf16
    %49 = vector.broadcast %cst_72 : bf16 to vector<10x1x64xbf16>
    %c2_73 = arith.constant 2 : index
    %c0_74 = arith.constant 0 : index
    %c15 = arith.constant 15 : index
    %c0_75 = arith.constant 0 : index
    %50 = vector.load %arg11[%c2_73, %c0_74, %c15, %c0_75] : memref<3x10x16x64xbf16, #tpu.memory_space<vmem>>, vector<1x10x1x64xbf16>
    %51 = vector.shape_cast %50 : vector<1x10x1x64xbf16> to vector<10x1x64xbf16>
    %52 = vector.shape_cast %49 : vector<10x1x64xbf16> to vector<1x10x1x64xbf16>
    tpu.vector_store %arg11[%c2_73, %c0_74, %c15, %c0_75], %52 {strides = array<i32>} : memref<3x10x16x64xbf16, #tpu.memory_space<vmem>>, vector<1x10x1x64xbf16>,
    %c0_i32 = arith.constant 0 : i32
    %53 = arith.cmpi eq, %arg1, %c0_i32 : i32
    %54 = arith.extui %53 : i1 to i32
    %c0_i32_76 = arith.constant 0 : i32
    %55 = arith.cmpi ne, %54, %c0_i32_76 : i32
    scf.if %55 {
      %cst_209 = arith.constant 0.000000e+00 : bf16
      %160 = vector.broadcast %cst_209 : bf16 to vector<3x1x16x64xbf16>
      %c0_210 = arith.constant 0 : index
      %c0_211 = arith.constant 0 : index
      %c0_212 = arith.constant 0 : index
      %c0_213 = arith.constant 0 : index
      %161 = vector.load %arg11[%c0_210, %c0_211, %c0_212, %c0_213] : memref<3x10x16x64xbf16, #tpu.memory_space<vmem>>, vector<3x1x16x64xbf16>
      tpu.vector_store %arg11[%c0_210, %c0_211, %c0_212, %c0_213], %160 {strides = array<i32>} : memref<3x10x16x64xbf16, #tpu.memory_space<vmem>>, vector<3x1x16x64xbf16>,
    } else {
    }
    %c1_i32 = arith.constant 1 : i32
    %56 = arith.cmpi eq, %arg1, %c1_i32 : i32
    %57 = arith.extui %56 : i1 to i32
    %c0_i32_77 = arith.constant 0 : i32
    %58 = arith.cmpi ne, %57, %c0_i32_77 : i32
    scf.if %58 {
      %cst_209 = arith.constant 0.000000e+00 : bf16
      %160 = vector.broadcast %cst_209 : bf16 to vector<3x1x16x64xbf16>
      %c0_210 = arith.constant 0 : index
      %c9_211 = arith.constant 9 : index
      %c0_212 = arith.constant 0 : index
      %c0_213 = arith.constant 0 : index
      %161 = vector.load %arg11[%c0_210, %c9_211, %c0_212, %c0_213] : memref<3x10x16x64xbf16, #tpu.memory_space<vmem>>, vector<3x1x16x64xbf16>
      tpu.vector_store %arg11[%c0_210, %c9_211, %c0_212, %c0_213], %160 {strides = array<i32>} : memref<3x10x16x64xbf16, #tpu.memory_space<vmem>>, vector<3x1x16x64xbf16>,
    } else {
    }
    %c0_78 = arith.constant 0 : index
    %c0_79 = arith.constant 0 : index
    %c0_80 = arith.constant 0 : index
    %c0_81 = arith.constant 0 : index
    %59 = vector.load %arg11[%c0_78, %c0_79, %c0_80, %c0_81] : memref<3x10x16x64xbf16, #tpu.memory_space<vmem>>, vector<1x8x16x64xbf16>
    %60 = vector.shape_cast %59 : vector<1x8x16x64xbf16> to vector<8x16x64xbf16>
    %61 = vector.shape_cast %60 : vector<8x16x64xbf16> to vector<128x64xbf16>
    %c0_82 = arith.constant 0 : index
    %c0_83 = arith.constant 0 : index
    %c0_84 = arith.constant 0 : index
    %c0_85 = arith.constant 0 : index
    %62 = vector.load %arg5[%c0_82, %c0_83, %c0_84, %c0_85] : memref<3x3x64x64xbf16, #tpu.memory_space<vmem>>, vector<1x1x64x64xbf16>
    %63 = vector.shape_cast %62 : vector<1x1x64x64xbf16> to vector<64x64xbf16>
    %cst_86 = arith.constant dense<0.000000e+00> : vector<128x64xf32>
    %64 = tpu.matmul %61, %63, %cst_86 {dimension_numbers = #tpu.dot_dimension_numbers<[1], [0], [0], [1], [0, 0, 1, 1], [], []>} : vector<128x64xbf16>, vector<64x64xbf16>, vector<128x64xf32> -> vector<128x64xf32>
    %c0_87 = arith.constant 0 : index
    %c0_88 = arith.constant 0 : index
    %65 = vector.load %arg12[%c0_87, %c0_88] : memref<128x64xf32, #tpu.memory_space<vmem>>, vector<128x64xf32>
    tpu.vector_store %arg12[%c0_87, %c0_88], %64 {strides = array<i32>} : memref<128x64xf32, #tpu.memory_space<vmem>>, vector<128x64xf32>,
    %c0_89 = arith.constant 0 : index
    %c1_90 = arith.constant 1 : index
    %c0_91 = arith.constant 0 : index
    %c0_92 = arith.constant 0 : index
    %66 = vector.load %arg11[%c0_89, %c1_90, %c0_91, %c0_92] : memref<3x10x16x64xbf16, #tpu.memory_space<vmem>>, vector<1x8x16x64xbf16>
    %67 = vector.shape_cast %66 : vector<1x8x16x64xbf16> to vector<8x16x64xbf16>
    %68 = vector.shape_cast %67 : vector<8x16x64xbf16> to vector<128x64xbf16>
    %c1_93 = arith.constant 1 : index
    %c0_94 = arith.constant 0 : index
    %c0_95 = arith.constant 0 : index
    %c0_96 = arith.constant 0 : index
    %69 = vector.load %arg5[%c1_93, %c0_94, %c0_95, %c0_96] : memref<3x3x64x64xbf16, #tpu.memory_space<vmem>>, vector<1x1x64x64xbf16>
    %70 = vector.shape_cast %69 : vector<1x1x64x64xbf16> to vector<64x64xbf16>
    %cst_97 = arith.constant dense<0.000000e+00> : vector<128x64xf32>
    %71 = tpu.matmul %68, %70, %cst_97 {dimension_numbers = #tpu.dot_dimension_numbers<[1], [0], [0], [1], [0, 0, 1, 1], [], []>} : vector<128x64xbf16>, vector<64x64xbf16>, vector<128x64xf32> -> vector<128x64xf32>
    %c0_98 = arith.constant 0 : index
    %c0_99 = arith.constant 0 : index
    %72 = vector.load %arg12[%c0_98, %c0_99] : memref<128x64xf32, #tpu.memory_space<vmem>>, vector<128x64xf32>
    %73 = arith.addf %72, %71 : vector<128x64xf32>
    %c0_100 = arith.constant 0 : index
    %c0_101 = arith.constant 0 : index
    %74 = vector.load %arg12[%c0_100, %c0_101] : memref<128x64xf32, #tpu.memory_space<vmem>>, vector<128x64xf32>
    tpu.vector_store %arg12[%c0_100, %c0_101], %73 {strides = array<i32>} : memref<128x64xf32, #tpu.memory_space<vmem>>, vector<128x64xf32>,
    %c0_102 = arith.constant 0 : index
    %c2_103 = arith.constant 2 : index
    %c0_104 = arith.constant 0 : index
    %c0_105 = arith.constant 0 : index
    %75 = vector.load %arg11[%c0_102, %c2_103, %c0_104, %c0_105] : memref<3x10x16x64xbf16, #tpu.memory_space<vmem>>, vector<1x8x16x64xbf16>
    %76 = vector.shape_cast %75 : vector<1x8x16x64xbf16> to vector<8x16x64xbf16>
    %77 = vector.shape_cast %76 : vector<8x16x64xbf16> to vector<128x64xbf16>
    %c2_106 = arith.constant 2 : index
    %c0_107 = arith.constant 0 : index
    %c0_108 = arith.constant 0 : index
    %c0_109 = arith.constant 0 : index
    %78 = vector.load %arg5[%c2_106, %c0_107, %c0_108, %c0_109] : memref<3x3x64x64xbf16, #tpu.memory_space<vmem>>, vector<1x1x64x64xbf16>
    %79 = vector.shape_cast %78 : vector<1x1x64x64xbf16> to vector<64x64xbf16>
    %cst_110 = arith.constant dense<0.000000e+00> : vector<128x64xf32>
    %80 = tpu.matmul %77, %79, %cst_110 {dimension_numbers = #tpu.dot_dimension_numbers<[1], [0], [0], [1], [0, 0, 1, 1], [], []>} : vector<128x64xbf16>, vector<64x64xbf16>, vector<128x64xf32> -> vector<128x64xf32>
    %c0_111 = arith.constant 0 : index
    %c0_112 = arith.constant 0 : index
    %81 = vector.load %arg12[%c0_111, %c0_112] : memref<128x64xf32, #tpu.memory_space<vmem>>, vector<128x64xf32>
    %82 = arith.addf %81, %80 : vector<128x64xf32>
    %c0_113 = arith.constant 0 : index
    %c0_114 = arith.constant 0 : index
    %83 = vector.load %arg12[%c0_113, %c0_114] : memref<128x64xf32, #tpu.memory_space<vmem>>, vector<128x64xf32>
    tpu.vector_store %arg12[%c0_113, %c0_114], %82 {strides = array<i32>} : memref<128x64xf32, #tpu.memory_space<vmem>>, vector<128x64xf32>,
    %c1_115 = arith.constant 1 : index
    %c0_116 = arith.constant 0 : index
    %c0_117 = arith.constant 0 : index
    %c0_118 = arith.constant 0 : index
    %84 = vector.load %arg11[%c1_115, %c0_116, %c0_117, %c0_118] : memref<3x10x16x64xbf16, #tpu.memory_space<vmem>>, vector<1x8x16x64xbf16>
    %85 = vector.shape_cast %84 : vector<1x8x16x64xbf16> to vector<8x16x64xbf16>
    %86 = vector.shape_cast %85 : vector<8x16x64xbf16> to vector<128x64xbf16>
    %c0_119 = arith.constant 0 : index
    %c1_120 = arith.constant 1 : index
    %c0_121 = arith.constant 0 : index
    %c0_122 = arith.constant 0 : index
    %87 = vector.load %arg5[%c0_119, %c1_120, %c0_121, %c0_122] : memref<3x3x64x64xbf16, #tpu.memory_space<vmem>>, vector<1x1x64x64xbf16>
    %88 = vector.shape_cast %87 : vector<1x1x64x64xbf16> to vector<64x64xbf16>
    %cst_123 = arith.constant dense<0.000000e+00> : vector<128x64xf32>
    %89 = tpu.matmul %86, %88, %cst_123 {dimension_numbers = #tpu.dot_dimension_numbers<[1], [0], [0], [1], [0, 0, 1, 1], [], []>} : vector<128x64xbf16>, vector<64x64xbf16>, vector<128x64xf32> -> vector<128x64xf32>
    %c0_124 = arith.constant 0 : index
    %c0_125 = arith.constant 0 : index
    %90 = vector.load %arg12[%c0_124, %c0_125] : memref<128x64xf32, #tpu.memory_space<vmem>>, vector<128x64xf32>
    %91 = arith.addf %90, %89 : vector<128x64xf32>
    %c0_126 = arith.constant 0 : index
    %c0_127 = arith.constant 0 : index
    %92 = vector.load %arg12[%c0_126, %c0_127] : memref<128x64xf32, #tpu.memory_space<vmem>>, vector<128x64xf32>
    tpu.vector_store %arg12[%c0_126, %c0_127], %91 {strides = array<i32>} : memref<128x64xf32, #tpu.memory_space<vmem>>, vector<128x64xf32>,
    %c1_128 = arith.constant 1 : index
    %c1_129 = arith.constant 1 : index
    %c0_130 = arith.constant 0 : index
    %c0_131 = arith.constant 0 : index
    %93 = vector.load %arg11[%c1_128, %c1_129, %c0_130, %c0_131] : memref<3x10x16x64xbf16, #tpu.memory_space<vmem>>, vector<1x8x16x64xbf16>
    %94 = vector.shape_cast %93 : vector<1x8x16x64xbf16> to vector<8x16x64xbf16>
    %95 = vector.shape_cast %94 : vector<8x16x64xbf16> to vector<128x64xbf16>
    %c1_132 = arith.constant 1 : index
    %c1_133 = arith.constant 1 : index
    %c0_134 = arith.constant 0 : index
    %c0_135 = arith.constant 0 : index
    %96 = vector.load %arg5[%c1_132, %c1_133, %c0_134, %c0_135] : memref<3x3x64x64xbf16, #tpu.memory_space<vmem>>, vector<1x1x64x64xbf16>
    %97 = vector.shape_cast %96 : vector<1x1x64x64xbf16> to vector<64x64xbf16>
    %cst_136 = arith.constant dense<0.000000e+00> : vector<128x64xf32>
    %98 = tpu.matmul %95, %97, %cst_136 {dimension_numbers = #tpu.dot_dimension_numbers<[1], [0], [0], [1], [0, 0, 1, 1], [], []>} : vector<128x64xbf16>, vector<64x64xbf16>, vector<128x64xf32> -> vector<128x64xf32>
    %c0_137 = arith.constant 0 : index
    %c0_138 = arith.constant 0 : index
    %99 = vector.load %arg12[%c0_137, %c0_138] : memref<128x64xf32, #tpu.memory_space<vmem>>, vector<128x64xf32>
    %100 = arith.addf %99, %98 : vector<128x64xf32>
    %c0_139 = arith.constant 0 : index
    %c0_140 = arith.constant 0 : index
    %101 = vector.load %arg12[%c0_139, %c0_140] : memref<128x64xf32, #tpu.memory_space<vmem>>, vector<128x64xf32>
    tpu.vector_store %arg12[%c0_139, %c0_140], %100 {strides = array<i32>} : memref<128x64xf32, #tpu.memory_space<vmem>>, vector<128x64xf32>,
    %c1_141 = arith.constant 1 : index
    %c2_142 = arith.constant 2 : index
    %c0_143 = arith.constant 0 : index
    %c0_144 = arith.constant 0 : index
    %102 = vector.load %arg11[%c1_141, %c2_142, %c0_143, %c0_144] : memref<3x10x16x64xbf16, #tpu.memory_space<vmem>>, vector<1x8x16x64xbf16>
    %103 = vector.shape_cast %102 : vector<1x8x16x64xbf16> to vector<8x16x64xbf16>
    %104 = vector.shape_cast %103 : vector<8x16x64xbf16> to vector<128x64xbf16>
    %c2_145 = arith.constant 2 : index
    %c1_146 = arith.constant 1 : index
    %c0_147 = arith.constant 0 : index
    %c0_148 = arith.constant 0 : index
    %105 = vector.load %arg5[%c2_145, %c1_146, %c0_147, %c0_148] : memref<3x3x64x64xbf16, #tpu.memory_space<vmem>>, vector<1x1x64x64xbf16>
    %106 = vector.shape_cast %105 : vector<1x1x64x64xbf16> to vector<64x64xbf16>
    %cst_149 = arith.constant dense<0.000000e+00> : vector<128x64xf32>
    %107 = tpu.matmul %104, %106, %cst_149 {dimension_numbers = #tpu.dot_dimension_numbers<[1], [0], [0], [1], [0, 0, 1, 1], [], []>} : vector<128x64xbf16>, vector<64x64xbf16>, vector<128x64xf32> -> vector<128x64xf32>
    %c0_150 = arith.constant 0 : index
    %c0_151 = arith.constant 0 : index
    %108 = vector.load %arg12[%c0_150, %c0_151] : memref<128x64xf32, #tpu.memory_space<vmem>>, vector<128x64xf32>
    %109 = arith.addf %108, %107 : vector<128x64xf32>
    %c0_152 = arith.constant 0 : index
    %c0_153 = arith.constant 0 : index
    %110 = vector.load %arg12[%c0_152, %c0_153] : memref<128x64xf32, #tpu.memory_space<vmem>>, vector<128x64xf32>
    tpu.vector_store %arg12[%c0_152, %c0_153], %109 {strides = array<i32>} : memref<128x64xf32, #tpu.memory_space<vmem>>, vector<128x64xf32>,
    %c2_154 = arith.constant 2 : index
    %c0_155 = arith.constant 0 : index
    %c0_156 = arith.constant 0 : index
    %c0_157 = arith.constant 0 : index
    %111 = vector.load %arg11[%c2_154, %c0_155, %c0_156, %c0_157] : memref<3x10x16x64xbf16, #tpu.memory_space<vmem>>, vector<1x8x16x64xbf16>
    %112 = vector.shape_cast %111 : vector<1x8x16x64xbf16> to vector<8x16x64xbf16>
    %113 = vector.shape_cast %112 : vector<8x16x64xbf16> to vector<128x64xbf16>
    %c0_158 = arith.constant 0 : index
    %c2_159 = arith.constant 2 : index
    %c0_160 = arith.constant 0 : index
    %c0_161 = arith.constant 0 : index
    %114 = vector.load %arg5[%c0_158, %c2_159, %c0_160, %c0_161] : memref<3x3x64x64xbf16, #tpu.memory_space<vmem>>, vector<1x1x64x64xbf16>
    %115 = vector.shape_cast %114 : vector<1x1x64x64xbf16> to vector<64x64xbf16>
    %cst_162 = arith.constant dense<0.000000e+00> : vector<128x64xf32>
    %116 = tpu.matmul %113, %115, %cst_162 {dimension_numbers = #tpu.dot_dimension_numbers<[1], [0], [0], [1], [0, 0, 1, 1], [], []>} : vector<128x64xbf16>, vector<64x64xbf16>, vector<128x64xf32> -> vector<128x64xf32>
    %c0_163 = arith.constant 0 : index
    %c0_164 = arith.constant 0 : index
    %117 = vector.load %arg12[%c0_163, %c0_164] : memref<128x64xf32, #tpu.memory_space<vmem>>, vector<128x64xf32>
    %118 = arith.addf %117, %116 : vector<128x64xf32>
    %c0_165 = arith.constant 0 : index
    %c0_166 = arith.constant 0 : index
    %119 = vector.load %arg12[%c0_165, %c0_166] : memref<128x64xf32, #tpu.memory_space<vmem>>, vector<128x64xf32>
    tpu.vector_store %arg12[%c0_165, %c0_166], %118 {strides = array<i32>} : memref<128x64xf32, #tpu.memory_space<vmem>>, vector<128x64xf32>,
    %c2_167 = arith.constant 2 : index
    %c1_168 = arith.constant 1 : index
    %c0_169 = arith.constant 0 : index
    %c0_170 = arith.constant 0 : index
    %120 = vector.load %arg11[%c2_167, %c1_168, %c0_169, %c0_170] : memref<3x10x16x64xbf16, #tpu.memory_space<vmem>>, vector<1x8x16x64xbf16>
    %121 = vector.shape_cast %120 : vector<1x8x16x64xbf16> to vector<8x16x64xbf16>
    %122 = vector.shape_cast %121 : vector<8x16x64xbf16> to vector<128x64xbf16>
    %c1_171 = arith.constant 1 : index
    %c2_172 = arith.constant 2 : index
    %c0_173 = arith.constant 0 : index
    %c0_174 = arith.constant 0 : index
    %123 = vector.load %arg5[%c1_171, %c2_172, %c0_173, %c0_174] : memref<3x3x64x64xbf16, #tpu.memory_space<vmem>>, vector<1x1x64x64xbf16>
    %124 = vector.shape_cast %123 : vector<1x1x64x64xbf16> to vector<64x64xbf16>
    %cst_175 = arith.constant dense<0.000000e+00> : vector<128x64xf32>
    %125 = tpu.matmul %122, %124, %cst_175 {dimension_numbers = #tpu.dot_dimension_numbers<[1], [0], [0], [1], [0, 0, 1, 1], [], []>} : vector<128x64xbf16>, vector<64x64xbf16>, vector<128x64xf32> -> vector<128x64xf32>
    %c0_176 = arith.constant 0 : index
    %c0_177 = arith.constant 0 : index
    %126 = vector.load %arg12[%c0_176, %c0_177] : memref<128x64xf32, #tpu.memory_space<vmem>>, vector<128x64xf32>
    %127 = arith.addf %126, %125 : vector<128x64xf32>
    %c0_178 = arith.constant 0 : index
    %c0_179 = arith.constant 0 : index
    %128 = vector.load %arg12[%c0_178, %c0_179] : memref<128x64xf32, #tpu.memory_space<vmem>>, vector<128x64xf32>
    tpu.vector_store %arg12[%c0_178, %c0_179], %127 {strides = array<i32>} : memref<128x64xf32, #tpu.memory_space<vmem>>, vector<128x64xf32>,
    %c2_180 = arith.constant 2 : index
    %c2_181 = arith.constant 2 : index
    %c0_182 = arith.constant 0 : index
    %c0_183 = arith.constant 0 : index
    %129 = vector.load %arg11[%c2_180, %c2_181, %c0_182, %c0_183] : memref<3x10x16x64xbf16, #tpu.memory_space<vmem>>, vector<1x8x16x64xbf16>
    %130 = vector.shape_cast %129 : vector<1x8x16x64xbf16> to vector<8x16x64xbf16>
    %131 = vector.shape_cast %130 : vector<8x16x64xbf16> to vector<128x64xbf16>
    %c2_184 = arith.constant 2 : index
    %c2_185 = arith.constant 2 : index
    %c0_186 = arith.constant 0 : index
    %c0_187 = arith.constant 0 : index
    %132 = vector.load %arg5[%c2_184, %c2_185, %c0_186, %c0_187] : memref<3x3x64x64xbf16, #tpu.memory_space<vmem>>, vector<1x1x64x64xbf16>
    %133 = vector.shape_cast %132 : vector<1x1x64x64xbf16> to vector<64x64xbf16>
    %cst_188 = arith.constant dense<0.000000e+00> : vector<128x64xf32>
    %134 = tpu.matmul %131, %133, %cst_188 {dimension_numbers = #tpu.dot_dimension_numbers<[1], [0], [0], [1], [0, 0, 1, 1], [], []>} : vector<128x64xbf16>, vector<64x64xbf16>, vector<128x64xf32> -> vector<128x64xf32>
    %c0_189 = arith.constant 0 : index
    %c0_190 = arith.constant 0 : index
    %135 = vector.load %arg12[%c0_189, %c0_190] : memref<128x64xf32, #tpu.memory_space<vmem>>, vector<128x64xf32>
    %136 = arith.addf %135, %134 : vector<128x64xf32>
    %c0_191 = arith.constant 0 : index
    %c0_192 = arith.constant 0 : index
    %137 = vector.load %arg12[%c0_191, %c0_192] : memref<128x64xf32, #tpu.memory_space<vmem>>, vector<128x64xf32>
    tpu.vector_store %arg12[%c0_191, %c0_192], %136 {strides = array<i32>} : memref<128x64xf32, #tpu.memory_space<vmem>>, vector<128x64xf32>,
    %c0_193 = arith.constant 0 : index
    %c0_194 = arith.constant 0 : index
    %138 = vector.load %arg12[%c0_193, %c0_194] : memref<128x64xf32, #tpu.memory_space<vmem>>, vector<128x64xf32>
    %c0_195 = arith.constant 0 : index
    %c0_196 = arith.constant 0 : index
    %139 = vector.load %arg6[%c0_195, %c0_196] : memref<1x64xf32, #tpu.memory_space<vmem>>, vector<1x64xf32>
    %140 = vector.broadcast %139 : vector<1x64xf32> to vector<128x64xf32>
    %141 = arith.mulf %138, %140 : vector<128x64xf32>
    %c0_197 = arith.constant 0 : index
    %c0_198 = arith.constant 0 : index
    %142 = vector.load %arg7[%c0_197, %c0_198] : memref<1x64xf32, #tpu.memory_space<vmem>>, vector<1x64xf32>
    %143 = vector.broadcast %142 : vector<1x64xf32> to vector<128x64xf32>
    %144 = arith.addf %141, %143 : vector<128x64xf32>
    %c0_199 = arith.constant 0 : index
    %145 = memref.load %arg8[%c0_199] : memref<1xf32, #tpu.memory_space<smem>>
    %cst_200 = arith.constant 0.000000e+00 : f32
    %146 = vector.broadcast %cst_200 : f32 to vector<128x64xf32>
    %147 = arith.cmpf oge, %144, %146 : vector<128x64xf32>
    %148 = vector.broadcast %145 : f32 to vector<128x64xf32>
    %149 = arith.mulf %148, %144 : vector<128x64xf32>
    %150 = arith.select %147, %144, %149 : vector<128x64xi1>, vector<128x64xf32>
    %151 = vector.shape_cast %150 : vector<128x64xf32> to vector<8x16x64xf32>
    %c0_201 = arith.constant 0 : index
    %c0_202 = arith.constant 0 : index
    %c0_203 = arith.constant 0 : index
    %c0_204 = arith.constant 0 : index
    %152 = vector.load %arg9[%c0_201, %c0_202, %c0_203, %c0_204] : memref<1x8x16x64xbf16, #tpu.memory_space<vmem>>, vector<1x8x16x64xbf16>
    %153 = vector.shape_cast %152 : vector<1x8x16x64xbf16> to vector<8x16x64xbf16>
    %154 = arith.extf %153 : vector<8x16x64xbf16> to vector<8x16x64xf32>
    %155 = arith.addf %151, %154 : vector<8x16x64xf32>
    %156 = arith.truncf %155 : vector<8x16x64xf32> to vector<8x16x64xbf16>
    %c0_205 = arith.constant 0 : index
    %c0_206 = arith.constant 0 : index
    %c0_207 = arith.constant 0 : index
    %c0_208 = arith.constant 0 : index
    %157 = vector.load %arg10[%c0_205, %c0_206, %c0_207, %c0_208] : memref<1x8x16x64xbf16, #tpu.memory_space<vmem>>, vector<1x8x16x64xbf16>
    %158 = vector.shape_cast %157 : vector<1x8x16x64xbf16> to vector<8x16x64xbf16>
    %159 = vector.shape_cast %156 : vector<8x16x64xbf16> to vector<1x8x16x64xbf16>
    tpu.vector_store %arg10[%c0_205, %c0_206, %c0_207, %c0_208], %159 {strides = array<i32>} : memref<1x8x16x64xbf16, #tpu.memory_space<vmem>>, vector<1x8x16x64xbf16>,
    return
  }
  func.func @transform_0(%arg0: i32, %arg1: i32) -> (i32, i32, i32, i32) {
    %c0_i32 = arith.constant 0 : i32
    %c0_i32_0 = arith.constant 0 : i32
    %c0_i32_1 = arith.constant 0 : i32
    return %arg0, %arg1, %c0_i32, %c0_i32_0 : i32, i32, i32, i32
  }
  func.func @transform_1(%arg0: i32, %arg1: i32) -> (i32, i32, i32, i32) {
    %c8_i32 = arith.constant 8 : i32
    %0 = arith.muli %arg1, %c8_i32 : i32
    %c1_i32 = arith.constant 1 : i32
    %1 = arith.subi %0, %c1_i32 : i32
    %c0_i32 = arith.constant 0 : i32
    %2 = arith.maxsi %1, %c0_i32 : i32
    %c0_i32_0 = arith.constant 0 : i32
    %c0_i32_1 = arith.constant 0 : i32
    %c0_i32_2 = arith.constant 0 : i32
    return %arg0, %2, %c0_i32_0, %c0_i32_1 : i32, i32, i32, i32
  }
  func.func @transform_2(%arg0: i32, %arg1: i32) -> (i32, i32, i32, i32) {
    %c1_i32 = arith.constant 1 : i32
    %0 = arith.addi %arg1, %c1_i32 : i32
    %c8_i32 = arith.constant 8 : i32
    %1 = arith.muli %0, %c8_i32 : i32
    %c15_i32 = arith.constant 15 : i32
    %2 = arith.minsi %1, %c15_i32 : i32
    %c0_i32 = arith.constant 0 : i32
    %c0_i32_0 = arith.constant 0 : i32
    %c0_i32_1 = arith.constant 0 : i32
    return %arg0, %2, %c0_i32, %c0_i32_0 : i32, i32, i32, i32
  }
  func.func @transform_3(%arg0: i32, %arg1: i32) -> (i32, i32, i32, i32) {
    %c0_i32 = arith.constant 0 : i32
    %c0_i32_0 = arith.constant 0 : i32
    %c0_i32_1 = arith.constant 0 : i32
    %c0_i32_2 = arith.constant 0 : i32
    %c0_i32_3 = arith.constant 0 : i32
    return %c0_i32, %c0_i32_0, %c0_i32_1, %c0_i32_2 : i32, i32, i32, i32
  }
  func.func @transform_4(%arg0: i32, %arg1: i32) -> (i32, i32) {
    %c0_i32 = arith.constant 0 : i32
    %c0_i32_0 = arith.constant 0 : i32
    %c0_i32_1 = arith.constant 0 : i32
    return %c0_i32, %c0_i32_0 : i32, i32
  }
  func.func @transform_5(%arg0: i32, %arg1: i32) -> (i32, i32) {
    %c0_i32 = arith.constant 0 : i32
    %c0_i32_0 = arith.constant 0 : i32
    %c0_i32_1 = arith.constant 0 : i32
    return %c0_i32, %c0_i32_0 : i32, i32
  }
  func.func @transform_6(%arg0: i32, %arg1: i32) -> i32 {
    %c0_i32 = arith.constant 0 : i32
    %c0_i32_0 = arith.constant 0 : i32
    return %c0_i32 : i32
  }
  func.func @transform_7(%arg0: i32, %arg1: i32) -> (i32, i32, i32, i32) {
    %c0_i32 = arith.constant 0 : i32
    %c0_i32_0 = arith.constant 0 : i32
    %c0_i32_1 = arith.constant 0 : i32
    return %arg0, %arg1, %c0_i32, %c0_i32_0 : i32, i32, i32, i32
  }
  func.func @transform_8(%arg0: i32, %arg1: i32) -> (i32, i32, i32, i32) {
    %c0_i32 = arith.constant 0 : i32
    %c0_i32_0 = arith.constant 0 : i32
    %c0_i32_1 = arith.constant 0 : i32
    return %arg0, %arg1, %c0_i32, %c0_i32_0 : i32, i32, i32, i32
  }
}

</mosaic_0001>

<bundles_post_ra>
// kernel: tpu_custom_call.1
= control target key start
LH: loop header
LB: loop body
LE: loop exit
PB: predicated region body
PF: predicated region fallthrough
CT: control target
= control target key end

     0   :  { %s6324_s0 = inlined_call_operand.hbm [shape: bf16[2,16,16,64], index: 0, kind: input, shape index: {}]   ;;  %s6325_s1 = inlined_call_operand.hbm [shape: bf16[2,16,16,64], index: 1, kind: input, shape index: {}]   ;;  %s6326_s2 = inlined_call_operand.hbm [shape: bf16[2,16,16,64], index: 2, kind: input, shape index: {}]   ;;  %s6327_s3 = inlined_call_operand.hbm [shape: bf16[3,3,64,64], index: 3, kind: input, shape index: {}]   ;;  %s6328_s4 = inlined_call_operand.vmem [shape: f32[1,64], index: 4, kind: input, shape index: {}]   ;;  %s6329_s5 = inlined_call_operand.vmem [shape: f32[1,64], index: 5, kind: input, shape index: {}]   ;;  %s6330_s6 = inlined_call_operand.<no memory space> [shape: f32[1], index: 6, kind: input, shape index: {}]   ;;  %s6331_s7 = inlined_call_operand.hbm [shape: bf16[2,16,16,64], index: 7, kind: input, shape index: {}]   ;;  %s6332_s8 = inlined_call_operand.hbm [shape: bf16[2,16,16,64], index: 8, kind: output, shape index: {}]  }
   0x1   :  { %6357 = sst [smem:[#allocation38_spill]] %s6324_s0 }
   0x2   :  { %6358 = sst [smem:[#allocation39_spill]] %s6325_s1 }
   0x3   :  { %6359 = sst [smem:[#allocation40_spill]] %s6326_s2 }
   0x4   :  { %6360 = sst [smem:[#allocation41_spill]] %s6327_s3 }
   0x5   :  { %6361 = sst [smem:[#allocation42_spill]] %s6328_s4 }
   0x6   :  { %6362 = sst [smem:[#allocation43_spill]] %s6329_s5 }
   0x7   :  { %6363 = sst [smem:[#allocation44_spill]] %s6331_s7 }
   0x8   :  { %6364 = sst [smem:[#allocation45_spill]] %s6332_s8 }
   0x9   :  { %13 = sst [smem:[#allocation4]] %s6330_s6 }
   0xa   :  { %14 = vsyncpa [#allocation6], 0 }
   0xb   :  { %16 = vsyncpa [#allocation6 + $0x1], 0 }
   0xc   :  { %17 = vsyncpa [#allocation9], 0 }
   0xd   :  { %19 = vsyncpa [#allocation9 + $0x1], 0 }
   0xe   :  { %20 = vsyncpa [#allocation12], 0 }
   0xf   :  { %21 = vsyncpa [#allocation7], 0 }
  0x10   :  { %23 = vsyncpa [#allocation7 + $0x1], 0  ;;  %s5166_s29 = smov 0   ;;  %s5168_s30 = smov 0  }
  0x11   :  { %s5170_s9 = smov 0   ;;  %s5172_s10 = smov 0  }
  0x12   :  { %s5174_s11 = smov 0   ;;  %s5176_s12 = smov 0  }
  0x13   :  { %s5178_s6 = smov 0   ;;  %s5180_s13 = smov 0  }
  0x14   :  { %s5182_s14 = smov 0   ;;  %s5184_s15 = smov 0  }
  0x15   :  { %s5186_s16 = smov 0   ;;  %s5188_s17 = smov 0  }
  0x16   :  { %s5190_s18 = smov 0   ;;  %s5192_s19 = smov 0  }
  0x17 LB: > { %6365 = sst [smem:[#allocation21_spill]] %s5052_s29  ;;  %s3899_s20 = sadd.s32 4294967294, %s5104_s19   ;;  %s5104_s19 = sphi %s5192_s19, %s29_s19   ;;  %s5100_s18 = sphi %s5190_s18, %s6451_s18   ;;  %s5096_s17 = sphi %s5188_s17, %s6450_s17   ;;  %s5092_s16 = sphi %s5186_s16, %s6459_s16   ;;  %s5088_s15 = sphi %s5184_s15, %s6448_s15   ;;  %s5084_s14 = sphi %s5182_s14, %s6458_s14   ;;  %s5080_s13 = sphi %s5180_s13, %s6457_s13   ;;  %s5076_s6 = sphi %s5178_s6, %s6456_s6   ;;  %s5072_s12 = sphi %s5176_s12, %s6445_s12   ;;  %s5068_s11 = sphi %s5174_s11, %s6455_s11   ;;  %s5064_s10 = sphi %s5172_s10, %s6454_s10   ;;  %s5060_s9 = sphi %s5170_s9, %s6453_s9   ;;  %s5056_s30 = sphi %s5168_s30, %s6452_s30   ;;  %s5052_s29 = sphi %s5166_s29, %s6443_s29  }
  0x18   : > { %6366 = sst [smem:[#allocation22_spill]] %s5056_s30  ;;  %s38_s21 = sadd.s32 1, %s5096_s17 }
  0x19   : > { %6367 = sst [smem:[#allocation23_spill]] %s5072_s12  ;;  %p39_p0 = scmp.ge.s32.totalorder %s38_s21, 2 }
  0x1a   : > { %6368 = sst [smem:[#allocation24_spill]] %s5076_s6  ;;  %s41_s22 = sadd.s32 1, %s5100_s18 }
  0x1b   : > { %6369 = sst [smem:[#allocation25_spill]] %s5084_s14  ;;  %p57_p1 = scmp.ne.s32.totalorder %s5084_s14, %s5080_s13 }
  0x1c   : > { %6370 = sst [smem:[#allocation26_spill]] %s5088_s15  ;;  %s6461_s21 = smov (%p39_p0, %s38_s21), 0 }
  0x1d   : > { %6371 = sst [smem:[#allocation27_spill]] %s5092_s16  ;;  %s6463_s22 = smov (!%p39_p0, %s41_s22), %s5100_s18 }
  0x1e   : > { %6372 = sst [smem:[#allocation28_spill]] %s5096_s17  ;;  %p6348_p2 = scmp.eq.s32.totalorder %s5104_s19, 0 }
  0x1f   : > { %6373 = sst [smem:[#allocation29_spill]] %s5100_s18  ;;  %p63_p3 = scmp.ne.s32.totalorder %s5080_s13, %s5076_s6 }
  0x20   : > { %6374 = sst [smem:[#allocation30_spill]] %s6461_s21  ;;  %p279_p4 = scmp.eq.s32.totalorder %s3899_s20, 3 }
  0x21   : > { %p5257_p5 = por %p6348_p2, %p57_p1  ;;  %p6349_p7 = scmp.lt.s32.totalorder %s5104_s19, 4 }
  0x22   : > { %p5264_p6 = por %p279_p4, %p63_p3  ;;  %s323_s28 = sand.u32 1, %s5084_s14  }
  0x23   : > { %s5271_s23 = sshll.u32 %s323_s28, 6  ;;  %s4148_s20 = sshll.u32 %s5096_s17, 4 }
  0x24   : > { %s6376_s26 = scalar_select %p5264_p6, 1, 0 }
  0x25   : > { %s5275_s24 = sshll.u32 %s5100_s18, 5  ;;  %s325_s8 = scalar_lea.vmem [#allocation5], %s5271_s23 }
  0x26   : > { %6377 = sst [smem:[#allocation31_spill]] %s6376_s26  ;;  %s335_s16 = sshll.u32 %s325_s8, 4  ;;  %s336_s16 = int_to_ptr.vmem [resolvable:$true] %s335_s16 }
  0x27   : > { %s332_s5 = sadd.s32 %s4148_s20, %s5275_s24  ;;  %p5283_p8 = pnand %p6349_p7, %p5257_p5 }
  0x28   : > { %s3913_s4 = sshll.u32 %s332_s5, 6  ;;  %s6380_s0 = sld [smem:[#allocation38_spill]] }
  0x29   : > { %s6378_s15 = scalar_select %p5283_p8, 1, 0 }
  0x2a   : > { %s6381_s7 = sld [smem:[#allocation44_spill]]  ;;  %s6383_s8 = sand.u32 1, %s5104_s19  }
  0x2b   : > { %6379 = sst [smem:[#allocation32_spill]] %s6378_s15  ;;  %s5297_s20 = scalar_lea.sflag [#allocation6], %s6383_s8 }
  0x2c   : > { %6384 = sst [smem:[#allocation34_spill]] %s5297_s20  ;;  %p6347_p9 = pneg %p5283_p8 }
  0x2d   : > { %s4819_s5 = scalar_lea.vmem %s336_s16, 1024  ;;  %s5106_s25 = smov [#allocation5]  }
  0x2e   : > { %s334_s28 = scalar_lea.hbm %s6380_s0, %s3913_s4  ;;  %p4820_p10 = scmp.ne.s32.totalorder %s336_s16, %s4819_s5 }
  0x2f   : > { %s4824_s26 = sshll.u32 %s5106_s25, 4  ;;  %s4825_s26 = int_to_ptr.vmem [resolvable:$false] %s4824_s26 }
  0x30   : > { %s5293_s30 = scalar_lea.hbm %s6381_s7, %s3913_s4  ;;  %p4822_p11 = pnand %p4820_p10, %p6347_p9 }
  0x31   : > { %6382 = sst [smem:[#allocation33_spill]] %s5293_s30  ;;  %s4826_s27 = scalar_lea.vmem %s4825_s26, 2048 }
  0x32   : > { %p4823_p12 = pneg %p4822_p11  ;;  %p4827_p13 = scmp.lt.s32.totalorder %s336_s16, %s4825_s26 }
  0x33   : > { %p4828_p0 = scmp.lt.s32.totalorder %s4826_s27, %s4819_s5 }
  0x35   : > { %p4829_p4 = por %p4828_p0, %p4827_p13 }
  0x37   : > { %p4830_p5 = pnand %p4829_p4, %p4823_p12 }
  0x39   : > { %4833 = shalt.err (!%p4830_p5)
}
  0x3a   : > { %s6336_s2 = smov 64   ;;  %s6338_s4 = smov 4  }
  0x3b   : > { %4561 = dma.hbm_to_vmem [thread:$0]  (!%p5283_p8), %s334_s28, 1024, %s336_s16, %s5297_s20, %s6336_s2, %s6336_s2, %s6338_s4  }
  0x3c   : > { %s403_s29 = scalar_lea.vmem [#allocation13], %s5271_s23  ;;  %p43_p10 = scmp.ge.s32.totalorder %s6463_s22, 2 }
  0x3d   : > { %s413_s8 = sshll.u32 %s403_s29, 4  ;;  %s3900_s5 = sshll.u32 %s5096_s17, 3  ;;  %s5311_s8 = int_to_ptr.vmem [resolvable:$true] %s413_s8 }
  0x3e   : > { %s3901_s25 = sadd.s32 4294967295, %s3900_s5  ;;  %s3902_s26 = sshll.u32 %s6461_s21, 3 }
  0x3f   : > { %s6465_s22 = smov (%p43_p10, %s6463_s22), 0  ;;  %p75_p11 = scmp.gt.s32.totalorder %s3901_s25, 0 }
  0x40   : > { %6385 = sst [smem:[#allocation35_spill]] %s6465_s22  ;;  %s3903_s16 = sadd.s32 4294967295, %s3902_s26 }
  0x41   : > { %s5321_s28 = ssub.s32 %s5100_s18, %s6465_s22  ;;  %p79_p12 = scmp.gt.s32.totalorder %s3903_s16, 0 }
  0x42   : > { %s6386_s23 = ssub.s32 %s5096_s17, %s6461_s21  ;;  %s86_s29 = sadd.s32 1, %s5072_s12 }
  0x43   : > { %s47_s27 = sor.u32 %s6386_s23, %s5321_s28  ;;  %p93_p0 = scmp.ne.s32.totalorder %s5072_s12, %s5068_s11 }
  0x44   : > { %p48_p13 = scmp.eq.s32.totalorder %s47_s27, 0  ;;  %s6467_s25 = smov (!%p75_p11, %s3901_s25), 0 }
  0x45   : > { %s6387_s2 = sadd.s32 1, %s5084_s14  ;;  %s6469_s16 = smov (!%p79_p12, %s3903_s16), 0 }
  0x46   : > { %s5333_s4 = scalar_select %p48_p13, %s5084_s14, %s6387_s2  }
  0x47   : > { %p5337_p4 = por %p93_p0, %p6348_p2  ;;  %p99_p5 = scmp.ne.s32.totalorder %s5068_s11, %s5064_s10 }
  0x48   : > { %6388 = sst [smem:[#allocation36_spill]] %s5333_s4  ;;  %s82_s7 = ssub.s32 %s6467_s25, %s6469_s16 }
  0x49   : > { %s5343_s22 = sadd.s32 8, %s3900_s5  ;;  %s83_s23 = sor.u32 %s82_s7, %s5321_s28 }
  0x4a   : > { %p84_p11 = scmp.eq.s32.totalorder %s83_s23, 0  ;;  %s5347_s27 = sadd.s32 8, %s3902_s26 }
  0x4b   : > { %s347_s21 = sand.u32 1, %s5072_s12   ;;  %s3917_s18 = sshll.u32 %s6467_s25, 1 }
  0x4c   : > { %s5351_s2 = scalar_select %p84_p11, %s5072_s12, %s86_s29  }
  0x4d   : > { %s3914_s17 = sshll.u32 %s347_s21, 3  ;;  %s359_s4 = sadd.s32 %s3917_s18, %s5275_s24 }
  0x4e   : > { %6390 = sst [smem:[#allocation37_spill]] %s5351_s2  ;;  %s3919_s16 = sshll.u32 %s359_s4, 6 }
  0x4f   : > { %s6391_s1 = sld [smem:[#allocation39_spill]]  ;;  %s349_s15 = scalar_lea.vmem [#allocation8], %s3914_s17 }
  0x50   : > { %s362_s7 = sshll.u32 %s349_s15, 4  ;;  %p5362_p13 = pnand %p6349_p7, %p5337_p4  ;;  %s363_s7 = int_to_ptr.vmem [resolvable:$true] %s362_s7 }
  0x51   : > { %s6393_s29 = sand.u32 1, %s5104_s19   ;;  %s4847_s18 = scalar_lea.vmem %s363_s7, 128 }
  0x52   : > { %s5368_s23 = scalar_lea.sflag [#allocation9], %s6393_s29  ;;  %p4836_p0 = pneg %p5362_p13 }
  0x53   : > { %p4848_p11 = scmp.ne.s32.totalorder %s363_s7, %s4847_s18  ;;  %s5109_s30 = smov [#allocation8]  }
  0x54   : > { %s4852_s17 = sshll.u32 %s5109_s30, 4  ;;  %s4853_s17 = int_to_ptr.vmem [resolvable:$false] %s4852_s17 }
  0x55   : > { %s361_s20 = scalar_lea.hbm %s6391_s1, %s3919_s16  ;;  %p4850_p9 = pnand %p4848_p11, %p4836_p0 }
  0x56   : > { %s4854_s15 = scalar_lea.vmem %s4853_s17, 256  ;;  %p4855_p12 = scmp.lt.s32.totalorder %s363_s7, %s4853_s17 }
  0x57   : > { %p4851_p2 = pneg %p4850_p9  ;;  %p4856_p10 = scmp.lt.s32.totalorder %s4854_s15, %s4847_s18 }
  0x59   : > { %p4857_p4 = por %p4856_p10, %p4855_p12 }
  0x5b   : > { %p4858_p7 = pnand %p4857_p4, %p4851_p2 }
  0x5d   : > { %4861 = shalt.err (!%p4858_p7)
}
  0x5e   : > { %s6394_s0 = smov 4   ;;  %s6395_s21 = smov 64  }
  0x5f   : > { %4564 = dma.hbm_to_vmem [thread:$0]  (!%p5362_p13), %s361_s20, 128, %s363_s7, %s5368_s23, %s6395_s21, %s6395_s21, %s6394_s0  }
  0x60   : > { %s5379_s4 = sadd.s32 4294967295, %s5104_s19   ;;  %p3906_p9 = scmp.ge.s32.totalorder %s5104_s19, 1 }
  0x61   : > { %p6356_p2 = scmp.eq.s32.totalorder %s5379_s4, 0  ;;  %p273_p7 = scmp.eq.s32.totalorder %s5379_s4, 3 }
  0x62   : > { %p286_p10 = scmp.lt.s32.totalorder %s5104_s19, 5  ;;  %s5110_s7 = smov [#allocation11]  }
  0x63   : > { %p5390_p12 = por %p6356_p2, %p63_p3  ;;  %p5399_p13 = por %p99_p5, %p6356_p2 }
  0x64   : > { %p5406_p0 = por %p273_p7, %p57_p1  ;;  %p5410_p11 = pnand %p3906_p9, %p286_p10 }
  0x65   : > { %s6396_s25 = scalar_select %p5390_p12, 1, 0 }
  0x66   : > { %s6397_s20 = scalar_select %p5399_p13, 1, 0 }
  0x67   : > { %s6398_s16 = scalar_select %p5406_p0, 1, 0 }
  0x68   : > { %p4554_p3 = pneg %p5410_p11  ;;  %s298_s26 = sshll.u32 %s5110_s7, 4  ;;  %s299_s26 = int_to_ptr.vmem [resolvable:$true] %s298_s26 }
  0x69   : > { %s4873_s10 = scalar_lea.vmem %s299_s26, 4608  ;;  %p4881_p7 = scmp.lt.s32.totalorder %s299_s26, %s299_s26 }
  0x6a   : > { %p4555_p5 = pnand %p4554_p3, %p6356_p2  ;;  %p4874_p6 = scmp.ne.s32.totalorder %s299_s26, %s4873_s10 }
  0x6b   : > { %p4882_p12 = scmp.lt.s32.totalorder %s4873_s10, %s4873_s10 }
  0x6c   : > { %p4864_p4 = pneg %p4555_p5 }
  0x6d   : > { %p4883_p0 = por %p4882_p12, %p4881_p7 }
  0x6e   : > { %p4876_p13 = pnand %p4874_p6, %p4864_p4 }
  0x70   : > { %p4877_p1 = pneg %p4876_p13 }
  0x72   : > { %p4884_p9 = pnand %p4883_p0, %p4877_p1 }
  0x74   : > { %4887 = shalt.err (!%p4884_p9)
}
  0x75   : > { %s6400_s3 = sld [smem:[#allocation41_spill]]  ;;  %s122_s15 = sadd.s32 1, %s5060_s9 }
  0x76   : > { %s6401_s30 = sld [smem:[#allocation22_spill]]  ;;  %p6403_p6 = scmp.lt.s32.totalorder %s5343_s22, 15 }
  0x77   : > { %s6402_s17 = sld [smem:[#allocation21_spill]]  ;;  %p6404_p10 = scmp.lt.s32.totalorder %s5347_s27, 15 }
  0x78   : > { %s6471_s22 = smov (!%p6403_p6, %s5343_s22), 15  ;;  %s374_s10 = sand.u32 1, %s5060_s9  }
  0x79   : > { %s6473_s27 = smov (!%p6404_p10, %s5347_s27), 15  ;;  %p6405_p0 = scmp.eq.s32.totalorder %s5104_s19, 0 }
  0x7a   : > { %s118_s7 = ssub.s32 %s6471_s22, %s6473_s27  ;;  %s3920_s1 = sshll.u32 %s374_s10, 3 }
  0x7b   : > { %4557 = dma.hbm_to_vmem [thread:$0]  (!%p4555_p5), %s6400_s3, 4608, %s299_s26, [#allocation12], %s6395_s21, %s6395_s21, %s6394_s0  }
  0x7c   : > { %p129_p12 = scmp.ne.s32.totalorder %s5060_s9, %s6401_s30  ;;  %s119_s29 = sor.u32 %s118_s7, %s5321_s28 }
  0x7d   : > { %p135_p13 = scmp.ne.s32.totalorder %s6401_s30, %s6402_s17  ;;  %p120_p4 = scmp.eq.s32.totalorder %s119_s29, 0 }
  0x7e   : > { %p131_p3 = por %p129_p12, %p6405_p0  ;;  %s3922_s3 = sshll.u32 %s6471_s22, 1 }
  0x7f   : > { %p5441_p1 = por %p135_p13, %p6356_p2  ;;  %s386_s30 = sadd.s32 %s3922_s3, %s5275_s24 }
  0x80   : > { %s5446_s14 = scalar_select %p120_p4, %s5060_s9, %s122_s15  }
  0x81   : > { %s3924_s27 = sshll.u32 %s386_s30, 6  ;;  %s376_s17 = scalar_lea.vmem [#allocation10], %s3920_s1 }
  0x82   : > { %s389_s2 = sshll.u32 %s376_s17, 4  ;;  %s6408_s7 = sld [smem:[#allocation40_spill]]  ;;  %s5454_s2 = int_to_ptr.vmem [resolvable:$true] %s389_s2 }
  0x83   : > { %p6409_p5 = scmp.lt.s32.totalorder %s5104_s19, 4  ;;  %s4901_s22 = scalar_lea.vmem %s5311_s8, 1024 }
  0x84   : > { %p4902_p9 = scmp.ne.s32.totalorder %s5311_s8, %s4901_s22  ;;  %p6411_p6 = pneg %p5283_p8 }
  0x85   : > { %p5458_p7 = pnand %p6409_p5, %p131_p3  ;;  %s5111_s1 = smov [#allocation13]  }
  0x86   : > { %p4904_p10 = pnand %p4902_p9, %p6411_p6  ;;  %s4906_s3 = sshll.u32 %s5111_s1, 4  ;;  %s4907_s3 = int_to_ptr.vmem [resolvable:$false] %s4906_s3 }
  0x87   : > { %s4908_s24 = scalar_lea.vmem %s4907_s3, 2048  ;;  %p4909_p13 = scmp.lt.s32.totalorder %s5311_s8, %s4907_s3 }
  0x88   : > { %s5452_s6 = scalar_lea.hbm %s6408_s7, %s3924_s27  ;;  %p4905_p12 = pneg %p4904_p10 }
  0x89   : > { %p4910_p0 = scmp.lt.s32.totalorder %s4908_s24, %s4901_s22 }
  0x8b   : > { %p4911_p4 = por %p4910_p0, %p4909_p13 }
  0x8d   : > { %p4912_p2 = pnand %p4911_p4, %p4905_p12 }
  0x8f   : > { %4915 = shalt.err (!%p4912_p2)
}
  0x90   : > { %s6412_s12 = sld [smem:[#allocation34_spill]]  ;;  %p4918_p3 = pneg %p5458_p7 }
  0x91   : > { %s6413_s15 = sld [smem:[#allocation33_spill]]  ;;  %s4929_s10 = scalar_lea.vmem %s5454_s2, 128 }
  0x92   : > { %p4930_p5 = scmp.ne.s32.totalorder %s5454_s2, %s4929_s10  ;;  %s5112_s30 = smov [#allocation10]  }
  0x93   : > { %s4934_s27 = sshll.u32 %s5112_s30, 4  ;;  %s4935_s27 = int_to_ptr.vmem [resolvable:$false] %s4934_s27 }
  0x94   : > { %p4932_p9 = pnand %p4930_p5, %p4918_p3  ;;  %s4936_s18 = scalar_lea.vmem %s4935_s27, 256 }
  0x95   : > { %p4937_p2 = scmp.lt.s32.totalorder %s5454_s2, %s4935_s27  ;;  %p4938_p10 = scmp.lt.s32.totalorder %s4936_s18, %s4929_s10 }
  0x96   : > { %p4933_p6 = pneg %p4932_p9 }
  0x97   : > { %4570 = dma.hbm_to_vmem [thread:$0]  (!%p5283_p8), %s6413_s15, 1024, %s5311_s8, %s6412_s12, %s6395_s21, %s6395_s21, %s6394_s0  }
  0x98   : > { %p4939_p12 = por %p4938_p10, %p4937_p2 }
  0x9a   : > { %p4940_p13 = pnand %p4939_p12, %p4933_p6 }
  0x9c   : > { %4943 = shalt.err (!%p4940_p13)
}
  0x9d   : > { %4567 = dma.hbm_to_vmem [thread:$0]  (!%p5458_p7), %s5452_s6, 128, %s5454_s2, %s5368_s23, %s6395_s21, %s6395_s21, %s6394_s0  }
  0x9e   : > { %425 = sbr.rel (%p5410_p11) target bundleno = 712 (0x2c8), region = 52  ;;  %s427_s8 = sand.u32 (!%p5410_p11), 1, %s5379_s4  }
  0x9f   : > { %s429_s17 = sand.u32 (!%p5410_p11), 1, %s5080_s13   ;;  %s428_s7 = scalar_lea.sflag (!%p5410_p11), [#allocation6], %s427_s8 }
  0xa0   : > { %s5495_s28 = sshll.u32 (!%p5410_p11), %s429_s17, 6  ;;  %p6414_p8 = scmp.ne.s32.totalorder (!%p5410_p11), %s6396_s25, 0 }
  0xa1   : > { %s5498_s29 = scalar_lea.vmem (!%p5410_p11), [#allocation5], %s5495_s28 }
  0xa3   : > { %5027 = dma.done.wait (%p6414_p8), %s428_s7, 1024  }
  0xa4   : > { %5029 = vsyncadd (%p6414_p8), %s428_s7, 4294966272  ;;  %s438_s6 = sand.u32 1, %s5068_s11   ;;  %s437_s23 = scalar_lea.sflag [#allocation9], %s427_s8 }
  0xa5   : > { %s3932_s2 = sshll.u32 %s438_s6, 3  ;;  %p6415_p11 = scmp.ne.s32.totalorder %s6397_s20, 0 }
  0xa6   : > { %s5505_s0 = scalar_lea.vmem [#allocation8], %s3932_s2 }
  0xa7   : > { %5031 = dma.done.wait (%p6415_p11), %s437_s23, 128  }
  0xa8   : > { %5033 = vsyncadd (%p6415_p11), %s437_s23, 4294967168  ;;  %s6416_s21 = sld [smem:[#allocation22_spill]] }
  0xae   : > { %s447_s5 = sand.u32 1, %s6416_s21  }
  0xaf   : > { %s3933_s22 = sshll.u32 %s447_s5, 3 }
  0xb0   : > { %s5512_s1 = scalar_lea.vmem [#allocation10], %s3933_s22 }
  0xb1   : > { %5035 = dma.done.wait (%p5441_p1), %s437_s23, 128  }
  0xb2   : > { %5037 = vsyncadd (%p5441_p1), %s437_s23, 4294967168  ;;  %p6417_p7 = scmp.eq.s32.totalorder %s5379_s4, 0 }
  0xb4   : > { %5039 = dma.done.wait (%p6417_p7), [#allocation12], 4608   ;;  %p6418_p0 = pmov %p6417_p7 }
  0xb5   : > { %s5523_s20 = scalar_lea.vmem [#allocation13], %s5495_s28 }
  0xb6   : > { %5041 = vsyncadd (%p6418_p0), [#allocation12], 4294962688 }
  0xb7   : > { %5043 = dma.done.wait (%p6414_p8), %s428_s7, 1024  }
  0xb8   : > { %5045 = vsyncadd (%p6414_p8), %s428_s7, 4294966272  ;;  %vm686_vm0 = vcmask 519168   ;;  %v522_v0 = vld [vmem:[%s5498_s29] sm:$0xf]  ;;  %vm687_vm1 = vsmask.f32 7938 }
  0xb9   : > { %v524_v1 = vld [vmem:[%s5498_s29 + $0x8] sm:$0xf]  ;;  %v542_v2 = vshrl.u32 %v522_v0, 16  ;;  %v545_v3 = vshll.u32 %v522_v0, 16  ;;  %v526_v6 = vld [vmem:[%s5498_s29 + $0x10] sm:$0xf]  ;;  %vm5538_vm2 = vmand %vm686_vm0, %vm687_vm1 }
  0xba   : > { %v558_v4 = vshrl.u32 %v524_v1, 16  ;;  %v561_v5 = vshll.u32 %v524_v1, 16  ;;  %v528_v7 = vld [vmem:[%s5498_s29 + $0x18] sm:$0xf]  ;;  %v574_v11 = vshrl.u32 %v526_v6, 16  ;;  %v577_v12 = vshll.u32 %v526_v6, 16 }
  0xbb   : > { %v5533_v8 = vrot.slane %v542_v2, 7  ;;  %v689_v9 = vld [vmem:[#allocation2 + $0x8] sm:$0xf]  ;;  %v694_v14 = vld [vmem:[#allocation2 + $0x10] sm:$0xf]  ;;  %v590_v15 = vshrl.u32 %v528_v7, 16 }
  0xbc   : > { %v5535_v10 = vrot.slane %v558_v4, 7  ;;  %v593_v16 = vshll.u32 %v528_v7, 16  ;;  %v530_v17 = vld [vmem:[%s5498_s29 + $0x20] sm:$0xf]  ;;  %v5545_v20 = vrot.slane %v574_v11, 7  ;;  %vm771_vm7 = vcmask 516096  }
  0xbd   : > { %v547_v18 = vor.u32 %v545_v3, %v5533_v8  ;;  %v698_v21 = vld [vmem:[#allocation2 + $0x18] sm:$0xf]  ;;  %v606_v22 = vshrl.u32 %v530_v17, 16  ;;  %v5548_v24 = vrot.slane %v590_v15, 7  ;;  %v609_v25 = vshll.u32 %v530_v17, 16  ;;  %s5873_s4 = scalar_lea.vmem [#allocation14], %s5495_s28 }
  0xbe   : > { %v563_v19 = vor.u32 %v561_v5, %v5535_v10  ;;  %v532_v23 = vld [vmem:[%s5498_s29 + $0x28] sm:$0xf]  ;;  %v534_v28 = vld [vmem:[%s5498_s29 + $0x30] sm:$0xf]  ;;  %v579_v31 = vor.u32 %v577_v12, %v5545_v20  ;;  %v536_v34 = vld [vmem:[%s5498_s29 + $0x38] sm:$0xf] }
  0xbf   : > { %v622_v26 = vshrl.u32 %v532_v23, 16  ;;  %v625_v27 = vshll.u32 %v532_v23, 16  ;;  %v690_v29 = vsel %vm5538_vm2, %v547_v18, %v689_v9  ;;  %v702_v32 = vld [vmem:[#allocation2 + $0x20] sm:$0xf]  ;;  %v5556_v33 = vrot.slane %v606_v22, 7  ;;  %s6431_s25 = sld [smem:[#allocation26_spill]] }
  0xc0   : > { %v695_v30 = vsel %vm5538_vm2, %v563_v19, %v694_v14  ;;  %vm862_vm3 = vsmask.f32 3328  ;;  %691 = vst [vmem:[#allocation2 + $0x8] sm:$0xf] %v690_v29  ;;  %v595_v35 = vor.u32 %v593_v16, %v5548_v24  ;;  %v706_v36 = vld [vmem:[#allocation2 + $0x28] sm:$0xf]  ;;  %v699_v40 = vsel %vm5538_vm2, %v579_v31, %v698_v21 }
  0xc1   : > { %696 = vst [vmem:[#allocation2 + $0x10] sm:$0xf] %v695_v30  ;;  %v5560_v37 = vrot.slane %v622_v26, 7  ;;  %v638_v38 = vshrl.u32 %v534_v28, 16  ;;  %v641_v39 = vshll.u32 %v534_v28, 16  ;;  %v611_v41 = vor.u32 %v609_v25, %v5556_v33  ;;  %vm5607_vm4 = vmand %vm686_vm0, %vm862_vm3 }
  0xc2   : > { %v710_v42 = vld [vmem:[#allocation2 + $0x30] sm:$0xf]  ;;  %v654_v43 = vshrl.u32 %v536_v34, 16  ;;  %v657_v44 = vshll.u32 %v536_v34, 16  ;;  %700 = vst [vmem:[#allocation2 + $0x18] sm:$0xf] %v699_v40  ;;  %v703_v46 = vsel %vm5538_vm2, %v595_v35, %v702_v32 }
  0xc3   : > { %v722_v45 = vld [vmem:[%s5505_s0] sm:$0xf]  ;;  %v627_v47 = vor.u32 %v625_v27, %v5560_v37  ;;  %v5569_v48 = vrot.slane %v638_v38, 7  ;;  %v746_v51 = vld [vmem:[%s5512_s1] sm:$0xf]  ;;  %v707_v52 = vsel %vm5538_vm2, %v611_v41, %v706_v36  ;;  %vm1123_vm11 = vcmask 519171  }
  0xc4   : > { %v714_v49 = vld [vmem:[#allocation2 + $0x38] sm:$0xf]  ;;  %v725_v50 = vshrl.u32 %v722_v45, 16  ;;  %704 = vst [vmem:[#allocation2 + $0x20] sm:$0xf] %v703_v46  ;;  %v5574_v53 = vrot.slane %v654_v43, 7 }
  0xc5   : > { %v728_v54 = vshll.u32 %v722_v45, 16  ;;  %v749_v55 = vshrl.u32 %v746_v51, 16  ;;  %v847_v56 = vld [vmem:[%s5498_s29 + $0x4] sm:$0xf]  ;;  %708 = vst [vmem:[#allocation2 + $0x28] sm:$0xf] %v707_v52  ;;  %v711_v57 = vsel %vm5538_vm2, %v627_v47, %v710_v42  ;;  %v643_v58 = vor.u32 %v641_v39, %v5569_v48 }
  0xc6   : > { %v718_v59 = vld [vmem:[#allocation2 + $0x40] sm:$0xf]  ;;  %v5580_v60 = vrot.slane %v725_v50, 7  ;;  %v752_v61 = vshll.u32 %v746_v51, 16  ;;  %v849_v62 = vld [vmem:[%s5498_s29 + $0xc] sm:$0xf]  ;;  %v659_v63 = vor.u32 %v657_v44, %v5574_v53 }
  0xc7   : > { %712 = vst [vmem:[#allocation2 + $0x30] sm:$0xf] %v711_v57  ;;  %v742_v0 = vld [vmem:[#allocation2] sm:$0xf]  ;;  %v5584_v1 = vrot.slane %v749_v55, 7  ;;  %v875_v2 = vshll.u32 %v847_v56, 16  ;;  %v715_v4 = vsel %vm5538_vm2, %v643_v58, %v714_v49 }
  0xc8   : > { %v879_v3 = vshrl.u32 %v847_v56, 16  ;;  %v730_v5 = vor.u32 %v728_v54, %v5580_v60  ;;  %v767_v6 = vld [vmem:[#allocation2 + $0x48] sm:$0xf]  ;;  %v894_v7 = vshll.u32 %v849_v62, 16  ;;  %v898_v9 = vshrl.u32 %v849_v62, 16  ;;  %p3937_p1 = scmp.ne.s32.totalorder %s6431_s25, 0 }
  0xc9   : > { %v851_v11 = vld [vmem:[%s5498_s29 + $0x14] sm:$0xf]  ;;  %716 = vst [vmem:[#allocation2 + $0x38] sm:$0xf] %v715_v4  ;;  %v719_v12 = vsel %vm5538_vm2, %v659_v63, %v718_v59  ;;  %v754_v14 = vor.u32 %v752_v61, %v5584_v1  ;;  %v5593_v15 = vrot.slane %v875_v2, 5 }
  0xca   : > { %v881_v16 = vrot.slane %v879_v3, 4  ;;  %v853_v17 = vld [vmem:[%s5498_s29 + $0x1c] sm:$0xf]  ;;  %720 = vst [vmem:[#allocation2 + $0x40] sm:$0xf] %v719_v12  ;;  %v743_v18 = vsel %vm5538_vm2, %v730_v5, %v742_v0  ;;  %v5598_v19 = vrot.slane %v894_v7, 5 }
  0xcb   : > { %v900_v21 = vrot.slane %v898_v9, 4  ;;  %v913_v22 = vshll.u32 %v851_v11, 16  ;;  %v855_v23 = vld [vmem:[%s5498_s29 + $0x24] sm:$0xf]  ;;  %744 = vst [vmem:[#allocation2] sm:$0xf] %v743_v18  ;;  %v768_v25 = vsel %vm5538_vm2, %v754_v14, %v767_v6 }
  0xcc   : > { %v882_v26 = vor.u32 %v881_v16, %v5593_v15  ;;  %v1036_v27 = vld [vmem:[#allocation2 + $0xac] sm:$0xf]  ;;  %v917_v28 = vshrl.u32 %v851_v11, 16  ;;  %v932_v29 = vshll.u32 %v853_v17, 16  ;;  %v857_v30 = vld [vmem:[%s5498_s29 + $0x2c] sm:$0xf] }
  0xcd   : > { %769 = vst [vmem:[#allocation2 + $0x48] sm:$0xf] %v768_v25  ;;  %v901_v32 = vor.u32 %v900_v21, %v5598_v19  ;;  %v1040_v34 = vld [vmem:[#allocation2 + $0xb4] sm:$0xf]  ;;  %v5612_v35 = vrot.slane %v913_v22, 5  ;;  %v936_v13 = vshrl.u32 %v853_v17, 16 }
  0xce   : > { %v951_v36 = vshll.u32 %v855_v23, 16  ;;  %v883_v38 = vrot.slane %v882_v26, 4  ;;  %v919_v39 = vrot.slane %v917_v28, 4  ;;  %v5614_v40 = vrot.slane %v932_v29, 5  ;;  %v859_v42 = vld [vmem:[%s5498_s29 + $0x34] sm:$0xf] }
  0xcf   : > { %v955_v41 = vshrl.u32 %v855_v23, 16  ;;  %v902_v43 = vrot.slane %v901_v32, 4  ;;  %v938_v44 = vrot.slane %v936_v13, 4  ;;  %v970_v46 = vshll.u32 %v857_v30, 16  ;;  %v861_v52 = vld [vmem:[%s5498_s29 + $0x3c] sm:$0xf] }
  0xd0   : > { %v5617_v45 = vrot.slane %v951_v36, 5  ;;  %v1037_v47 = vsel %vm5607_vm4, %v883_v38, %v1036_v27  ;;  %v920_v49 = vor.u32 %v919_v39, %v5612_v35  ;;  %v974_v51 = vshrl.u32 %v857_v30, 16  ;;  %v1044_v55 = vld [vmem:[#allocation2 + $0xbc] sm:$0xf]  ;;  %v1048_v57 = vld [vmem:[#allocation2 + $0xc4] sm:$0xf] }
  0xd1   : > { %v957_v50 = vrot.slane %v955_v41, 4  ;;  %1038 = vst [vmem:[#allocation2 + $0xac] sm:$0xf] %v1037_v47  ;;  %v1041_v54 = vsel %vm5607_vm4, %v902_v43, %v1040_v34  ;;  %v939_v56 = vor.u32 %v938_v44, %v5614_v40  ;;  %v5626_v58 = vrot.slane %v970_v46, 5  ;;  %v1068_v2 = vld [vmem:[%s5505_s0 + $0x4] sm:$0xf] }
  0xd2   : > { %v989_v59 = vshll.u32 %v859_v42, 16  ;;  %vm538_vm5 = vsmask.f32 256  ;;  %vm539_vm6 = vsmask.f32 4368  ;;  %v921_v61 = vrot.slane %v920_v49, 4 }
  0xd3   : > { %1042 = vst [vmem:[#allocation2 + $0xb4] sm:$0xf] %v1041_v54  ;;  %v958_v62 = vor.u32 %v957_v50, %v5617_v45  ;;  %v976_v63 = vrot.slane %v974_v51, 4  ;;  %v993_v0 = vshrl.u32 %v859_v42, 16  ;;  %v940_v3 = vrot.slane %v939_v56, 4  ;;  %vm5664_vm8 = vmor %vm538_vm5, %vm539_vm6 }
  0xd4   : > { %v1052_v4 = vld [vmem:[#allocation2 + $0xcc] sm:$0xf]  ;;  %v5630_v5 = vrot.slane %v989_v59, 5  ;;  %v1008_v6 = vshll.u32 %v861_v52, 16  ;;  %v1012_v7 = vshrl.u32 %v861_v52, 16  ;;  %v1045_v9 = vsel %vm5607_vm4, %v921_v61, %v1044_v55  ;;  %vm5707_vm9 = vmand %vm771_vm7, %vm538_vm5 }
  0xd5   : > { %v959_v11 = vrot.slane %v958_v62, 4  ;;  %v977_v12 = vor.u32 %v976_v63, %v5626_v58  ;;  %v995_v14 = vrot.slane %v993_v0, 4  ;;  %v1096_v16 = vld [vmem:[%s5512_s1 + $0x4] sm:$0xf]  ;;  %1046 = vst [vmem:[#allocation2 + $0xbc] sm:$0xf] %v1045_v9  ;;  %v1049_v17 = vsel %vm5607_vm4, %v940_v3, %v1048_v57 }
  0xd6   : > { %v1056_v18 = vld [vmem:[#allocation2 + $0xd4] sm:$0xf]  ;;  %v5638_v21 = vrot.slane %v1008_v6, 5  ;;  %v1014_v22 = vrot.slane %v1012_v7, 4  ;;  %v1079_v23 = vshll.u32 %v1068_v2, 16  ;;  %v1083_v29 = vshrl.u32 %v1068_v2, 16 }
  0xd7   : > { %1050 = vst [vmem:[#allocation2 + $0xc4] sm:$0xf] %v1049_v17  ;;  %v1053_v25 = vsel %vm5607_vm4, %v959_v11, %v1052_v4  ;;  %v978_v26 = vrot.slane %v977_v12, 4  ;;  %v996_v27 = vor.u32 %v995_v14, %v5630_v5  ;;  %v1060_v28 = vld [vmem:[#allocation2 + $0xdc] sm:$0xf]  ;;  %v1107_v36 = vshll.u32 %v1096_v16, 16 }
  0xd8   : > { %v523_v30 = vld [vmem:[%s5498_s29 + $0x4] sm:$0xf]  ;;  %1054 = vst [vmem:[#allocation2 + $0xcc] sm:$0xf] %v1053_v25  ;;  %v1015_v32 = vor.u32 %v1014_v22, %v5638_v21  ;;  %v1064_v34 = vld [vmem:[#allocation2 + $0xe4] sm:$0xf] }
  0xd9   : > { %v5645_v13 = vrot.slane %v1079_v23, 5  ;;  %v1111_v38 = vshrl.u32 %v1096_v16, 16  ;;  %v1057_v39 = vsel %vm5607_vm4, %v978_v26, %v1056_v18  ;;  %v997_v41 = vrot.slane %v996_v27, 4  ;;  %v525_v44 = vld [vmem:[%s5498_s29 + $0xc] sm:$0xf] }
  0xda   : > { %v1085_v42 = vrot.slane %v1083_v29, 4  ;;  %v548_v43 = vrot.slane %v5533_v8, 4  ;;  %1058 = vst [vmem:[#allocation2 + $0xd4] sm:$0xf] %v1057_v39  ;;  %v1016_v46 = vrot.slane %v1015_v32, 4  ;;  %v5651_v47 = vrot.slane %v1107_v36, 5 }
  0xdb   : > { %v1113_v49 = vrot.slane %v1111_v38, 4  ;;  %v550_v50 = vshrl.u32 %v523_v30, 16  ;;  %v527_v51 = vld [vmem:[%s5498_s29 + $0x14] sm:$0xf]  ;;  %v1061_v52 = vsel %vm5607_vm4, %v997_v41, %v1060_v28  ;;  %v553_v55 = vshll.u32 %v523_v30, 16 }
  0xdc   : > { %v1086_v54 = vor.u32 %v1085_v42, %v5645_v13  ;;  %v564_v56 = vrot.slane %v5535_v10, 4  ;;  %1062 = vst [vmem:[#allocation2 + $0xdc] sm:$0xf] %v1061_v52  ;;  %v1065_v8 = vsel %vm5607_vm4, %v1016_v46, %v1064_v34  ;;  %v1092_v57 = vld [vmem:[#allocation2 + $0xa4] sm:$0xf]  ;;  %v566_v62 = vshrl.u32 %v525_v44, 16 }
  0xdd   : > { %v1114_v59 = vor.u32 %v1113_v49, %v5651_v47  ;;  %v552_v61 = vrot.slane %v550_v50, 7  ;;  %v529_v63 = vld [vmem:[%s5498_s29 + $0x1c] sm:$0xf]  ;;  %1066 = vst [vmem:[#allocation2 + $0xe4] sm:$0xf] %v1065_v8  ;;  %v569_v10 = vshll.u32 %v525_v44, 16 }
  0xde   : > { %v1087_v0 = vrot.slane %v1086_v54, 4  ;;  %v1120_v2 = vld [vmem:[#allocation2 + $0xec] sm:$0xf]  ;;  %v580_v4 = vrot.slane %v5545_v20, 4  ;;  %v582_v6 = vshrl.u32 %v527_v51, 16  ;;  %v568_v11 = vrot.slane %v566_v62, 7 }
  0xdf   : > { %v1115_v7 = vrot.slane %v1114_v59, 4  ;;  %v555_v9 = vor.u32 %v553_v55, %v552_v61  ;;  %v585_v12 = vshll.u32 %v527_v51, 16  ;;  %v531_v14 = vld [vmem:[%s5498_s29 + $0x24] sm:$0xf]  ;;  %v596_v18 = vrot.slane %v5548_v24, 4 }
  0xe0   : > { %v1093_v16 = vsel %vm5607_vm4, %v1087_v0, %v1092_v57  ;;  %v584_v17 = vrot.slane %v582_v6, 7  ;;  %v598_v22 = vshrl.u32 %v529_v63, 16  ;;  %v533_v23 = vld [vmem:[%s5498_s29 + $0x2c] sm:$0xf]  ;;  %v571_v26 = vor.u32 %v569_v10, %v568_v11  ;;  %v535_v28 = vld [vmem:[%s5498_s29 + $0x34] sm:$0xf] }
  0xe1   : > { %1094 = vst [vmem:[#allocation2 + $0xa4] sm:$0xf] %v1093_v16  ;;  %v1121_v20 = vsel %vm5607_vm4, %v1115_v7, %v1120_v2  ;;  %v556_v25 = vsel %vm5664_vm8, %v548_v43, %v555_v9  ;;  %v601_v27 = vshll.u32 %v529_v63, 16  ;;  %v612_v30 = vrot.slane %v5556_v33, 4  ;;  %v537_v34 = vld [vmem:[%s5498_s29 + $0x3c] sm:$0xf] }
  0xe2   : > { %1122 = vst [vmem:[#allocation2 + $0xec] sm:$0xf] %v1121_v20  ;;  %693 = vst.msk [vmem:[#allocation2 + $0xc] sm:$0xf] %vm686_vm0, %v556_v25  ;;  %v587_v29 = vor.u32 %v585_v12, %v584_v17  ;;  %v600_v24 = vrot.slane %v598_v22, 7  ;;  %v614_v32 = vshrl.u32 %v531_v14, 16  ;;  %v572_v31 = vsel %vm5664_vm8, %v564_v56, %v571_v26 }
  0xe3   : > { %v617_v36 = vshll.u32 %v531_v14, 16  ;;  %v628_v38 = vrot.slane %v5560_v37, 4  ;;  %v630_v39 = vshrl.u32 %v533_v23, 16  ;;  %v5686_v41 = vld [vmem:[%s5505_s0 + $0x4] sm:$0xf]  ;;  %v633_v33 = vshll.u32 %v533_v23, 16 }
  0xe4   : > { %697 = vst.msk [vmem:[#allocation2 + $0x14] sm:$0xf] %vm686_vm0, %v572_v31  ;;  %v588_v42 = vsel %vm5664_vm8, %v580_v4, %v587_v29  ;;  %v603_v43 = vor.u32 %v601_v27, %v600_v24  ;;  %v616_v44 = vrot.slane %v614_v32, 7  ;;  %v5692_v46 = vld [vmem:[%s5512_s1 + $0x4] sm:$0xf]  ;;  %v644_v50 = vrot.slane %v5569_v48, 4 }
  0xe5   : > { %v803_v49 = vld [vmem:[%s5498_s29] sm:$0xf]  ;;  %701 = vst.msk [vmem:[#allocation2 + $0x1c] sm:$0xf] %vm686_vm0, %v588_v42  ;;  %v632_v37 = vrot.slane %v630_v39, 7  ;;  %v646_v51 = vshrl.u32 %v535_v28, 16 }
  0xe6   : > { %v649_v52 = vshll.u32 %v535_v28, 16  ;;  %v773_v54 = vld [vmem:[#allocation2] sm:$0x1]  ;;  %820 = vst.msk [vmem:[#allocation2 + $0x58] sm:$0xf] %vm686_vm0, %v803_v49  ;;  %v604_v56 = vsel %vm5664_vm8, %v596_v18, %v603_v43  ;;  %v619_v8 = vor.u32 %v617_v36, %v616_v44  ;;  %v660_v57 = vrot.slane %v5574_v53, 4 }
  0xe7   : > { %v804_v55 = vld [vmem:[%s5498_s29 + $0x4] sm:$0xf]  ;;  %v662_v59 = vshrl.u32 %v537_v34, 16  ;;  %v776_v61 = vld [vmem:[#allocation2 + $0x8] sm:$0x1]  ;;  %v635_v2 = vor.u32 %v633_v33, %v632_v37  ;;  %v648_v10 = vrot.slane %v646_v51, 7 }
  0xe8   : > { %v779_v62 = vld [vmem:[#allocation2 + $0x10] sm:$0x1]  ;;  %821 = vst.msk [vmem:[#allocation2 + $0x5c] sm:$0xf] %vm686_vm0, %v804_v55  ;;  %v805_v63 = vld [vmem:[%s5498_s29 + $0x8] sm:$0xf]  ;;  %v620_v11 = vsel %vm5664_vm8, %v612_v30, %v619_v8 }
  0xe9   : > { %v806_v48 = vld [vmem:[%s5498_s29 + $0xc] sm:$0xf]  ;;  %705 = vst.msk [vmem:[#allocation2 + $0x24] sm:$0xf] %vm686_vm0, %v604_v56  ;;  %v665_v53 = vshll.u32 %v537_v34, 16  ;;  %v731_v4 = vrot.slane %v5580_v60, 4  ;;  %v636_v23 = vsel %vm5664_vm8, %v628_v38, %v635_v2  ;;  %v651_v20 = vor.u32 %v649_v52, %v648_v10 }
  0xea   : > { %v782_v6 = vld [vmem:[#allocation2 + $0x18] sm:$0x1]  ;;  %v785_v7 = vld [vmem:[#allocation2 + $0x20] sm:$0x1]  ;;  %822 = vst.msk [vmem:[#allocation2 + $0x60] sm:$0xf] %vm686_vm0, %v805_v63 }
  0xeb   : > { %823 = vst.msk [vmem:[#allocation2 + $0x64] sm:$0xf] %vm686_vm0, %v806_v48  ;;  %v807_v9 = vld [vmem:[%s5498_s29 + $0x10] sm:$0xf]  ;;  %v664_v12 = vrot.slane %v662_v59, 7  ;;  %v733_v14 = vshrl.u32 %v5686_v41, 16  ;;  %v652_v36 = vsel %vm5664_vm8, %v644_v50, %v651_v20 }
  0xec   : > { %v736_v16 = vshll.u32 %v5686_v41, 16  ;;  %v788_v17 = vld [vmem:[#allocation2 + $0x28] sm:$0x1]  ;;  %v791_v18 = vld [vmem:[#allocation2 + $0x30] sm:$0x1]  ;;  %v755_v25 = vrot.slane %v5584_v1, 4 }
  0xed   : > { %v794_v60 = vld [vmem:[#allocation2 + $0x38] sm:$0x1]  ;;  %824 = vst.msk [vmem:[#allocation2 + $0x68] sm:$0xf] %vm686_vm0, %v807_v9  ;;  %v808_v22 = vld [vmem:[%s5498_s29 + $0x14] sm:$0xf]  ;;  %v667_v30 = vor.u32 %v665_v53, %v664_v12 }
  0xee   : > { %709 = vst.msk [vmem:[#allocation2 + $0x2c] sm:$0xf] %vm686_vm0, %v620_v11  ;;  %v757_v26 = vshrl.u32 %v5692_v46, 16  ;;  %v797_v27 = vld [vmem:[#allocation2 + $0x40] sm:$0x1]  ;;  %v735_v32 = vrot.slane %v733_v14, 7 }
  0xef   : > { %v800_v28 = vld [vmem:[#allocation2 + $0x48] sm:$0x1]  ;;  %825 = vst.msk [vmem:[#allocation2 + $0x6c] sm:$0xf] %vm686_vm0, %v808_v22  ;;  %v810_v24 = vld [vmem:[%s5498_s29 + $0x1c] sm:$0xf]  ;;  %v668_v43 = vsel %vm5664_vm8, %v660_v57, %v667_v30 }
  0xf0   : > { %v809_v29 = vld [vmem:[%s5498_s29 + $0x18] sm:$0xf]  ;;  %713 = vst.msk [vmem:[#allocation2 + $0x34] sm:$0xf] %vm686_vm0, %v636_v23  ;;  %v760_v34 = vshll.u32 %v5692_v46, 16  ;;  %v774_v31 = vsel %vm5707_vm9, 0, %v773_v54  ;;  %v738_v44 = vor.u32 %v736_v16, %v735_v32 }
  0xf1   : > { %826 = vst.msk [vmem:[#allocation2 + $0x70] sm:$0xf] %vm686_vm0, %v809_v29  ;;  %827 = vst.msk [vmem:[#allocation2 + $0x74] sm:$0xf] %vm686_vm0, %v810_v24  ;;  %v811_v1 = vld [vmem:[%s5498_s29 + $0x20] sm:$0xf] }
  0xf2   : > { %v759_v38 = vrot.slane %v757_v26, 7  ;;  %775 = vst [vmem:[#allocation2] sm:$0x1] %v774_v31  ;;  %v777_v39 = vsel %vm5707_vm9, 0, %v776_v61  ;;  %v780_v41 = vsel %vm5707_vm9, 0, %v779_v62  ;;  %v783_v33 = vsel %vm5707_vm9, 0, %v782_v6 }
  0xf3   : > { %828 = vst.msk [vmem:[#allocation2 + $0x78] sm:$0xf] %vm686_vm0, %v811_v1  ;;  %v812_v42 = vld [vmem:[%s5498_s29 + $0x24] sm:$0xf]  ;;  %vm863_vm10 = vsmask.f32 7440  ;;  %v739_v56 = vsel %vm5664_vm8, %v731_v4, %v738_v44 }
  0xf4   : > { %717 = vst.msk [vmem:[#allocation2 + $0x3c] sm:$0xf] %vm686_vm0, %v652_v36  ;;  %778 = vst [vmem:[#allocation2 + $0x8] sm:$0x1] %v777_v39  ;;  %v786_v46 = vsel %vm5707_vm9, 0, %v785_v7  ;;  %v762_v50 = vor.u32 %v760_v34, %v759_v38  ;;  %v789_v51 = vsel %vm5707_vm9, 0, %v788_v17 }
  0xf5   : > { %781 = vst [vmem:[#allocation2 + $0x10] sm:$0x1] %v780_v41  ;;  %829 = vst.msk [vmem:[#allocation2 + $0x7c] sm:$0xf] %vm686_vm0, %v812_v42  ;;  %v813_v49 = vld [vmem:[%s5498_s29 + $0x28] sm:$0xf] }
  0xf6   : > { %v814_v37 = vld [vmem:[%s5498_s29 + $0x2c] sm:$0xf]  ;;  %721 = vst.msk [vmem:[#allocation2 + $0x44] sm:$0xf] %vm686_vm0, %v668_v43  ;;  %784 = vst [vmem:[#allocation2 + $0x18] sm:$0x1] %v783_v33  ;;  %v763_v62 = vsel %vm5664_vm8, %v755_v25, %v762_v50 }
  0xf7   : > { %787 = vst [vmem:[#allocation2 + $0x20] sm:$0x1] %v786_v46  ;;  %v792_v52 = vsel %vm5707_vm9, 0, %v791_v18  ;;  %v795_v54 = vsel %vm5707_vm9, 0, %v794_v60  ;;  %830 = vst.msk [vmem:[#allocation2 + $0x80] sm:$0xf] %vm686_vm0, %v813_v49 }
  0xf8   : > { %831 = vst.msk [vmem:[#allocation2 + $0x84] sm:$0xf] %vm686_vm0, %v814_v37  ;;  %v815_v55 = vld [vmem:[%s5498_s29 + $0x30] sm:$0xf]  ;;  %790 = vst [vmem:[#allocation2 + $0x28] sm:$0x1] %v789_v51 }
  0xf9   : > { %793 = vst [vmem:[#allocation2 + $0x30] sm:$0x1] %v792_v52  ;;  %796 = vst [vmem:[#allocation2 + $0x38] sm:$0x1] %v795_v54  ;;  %v798_v8 = vsel %vm5707_vm9, 0, %v797_v27  ;;  %v801_v57 = vsel %vm5707_vm9, 0, %v800_v28 }
  0xfa   : > { %832 = vst.msk [vmem:[#allocation2 + $0x88] sm:$0xf] %vm686_vm0, %v815_v55  ;;  %v816_v59 = vld [vmem:[%s5498_s29 + $0x34] sm:$0xf]  ;;  %v817_v61 = vld [vmem:[%s5498_s29 + $0x38] sm:$0xf]  ;;  %vm5798_vm13 = vmor %vm862_vm3, %vm863_vm10 }
  0xfb   : > { %745 = vst.msk [vmem:[#allocation2 + $0x4] sm:$0xf] %vm686_vm0, %v739_v56  ;;  %799 = vst [vmem:[#allocation2 + $0x40] sm:$0x1] %v798_v8  ;;  %v818_v63 = vld [vmem:[%s5498_s29 + $0x3c] sm:$0xf] }
  0xfc   : > { %802 = vst [vmem:[#allocation2 + $0x48] sm:$0x1] %v801_v57  ;;  %833 = vst.msk [vmem:[#allocation2 + $0x8c] sm:$0xf] %vm686_vm0, %v816_v59  ;;  %v836_v48 = vld [vmem:[%s5505_s0] sm:$0xf] }
  0xfd   : > { %834 = vst.msk [vmem:[#allocation2 + $0x90] sm:$0xf] %vm686_vm0, %v817_v61  ;;  %v837_v0 = vld [vmem:[%s5505_s0 + $0x4] sm:$0xf]  ;;  %770 = vst.msk [vmem:[#allocation2 + $0x4c] sm:$0xf] %vm686_vm0, %v763_v62 }
  0xfe   : > { %835 = vst.msk [vmem:[#allocation2 + $0x94] sm:$0xf] %vm686_vm0, %v818_v63  ;;  %839 = vst.msk [vmem:[#allocation2 + $0x50] sm:$0xf] %vm686_vm0, %v836_v48  ;;  %v841_v3 = vld [vmem:[%s5512_s1] sm:$0xf] }
  0xff   : > { %840 = vst.msk [vmem:[#allocation2 + $0x54] sm:$0xf] %vm686_vm0, %v837_v0  ;;  %v842_v2 = vld [vmem:[%s5512_s1 + $0x4] sm:$0xf]  ;;  %v846_v10 = vld [vmem:[%s5498_s29] sm:$0xf] }
 0x100   : > { %844 = vst.msk [vmem:[#allocation2 + $0x98] sm:$0xf] %vm686_vm0, %v841_v3  ;;  %845 = vst.msk [vmem:[#allocation2 + $0x9c] sm:$0xf] %vm686_vm0, %v842_v2  ;;  %v866_v53 = vshrl.u32 %v846_v10, 16  ;;  %v869_v4 = vshll.u32 %v846_v10, 16 }
 0x101   : > { %v848_v6 = vld [vmem:[%s5498_s29 + $0x8] sm:$0xf]  ;;  %v850_v7 = vld [vmem:[%s5498_s29 + $0x10] sm:$0xf]  ;;  %v852_v16 = vld [vmem:[%s5498_s29 + $0x18] sm:$0xf] }
 0x102   : > { %v885_v9 = vshrl.u32 %v848_v6, 16  ;;  %v888_v11 = vshll.u32 %v848_v6, 16  ;;  %v904_v12 = vshrl.u32 %v850_v7, 16  ;;  %v907_v14 = vshll.u32 %v850_v7, 16  ;;  %v854_v23 = vld [vmem:[%s5498_s29 + $0x20] sm:$0xf] }
 0x103   : > { %vm1124_vm12 = vsmask.f32 7950  ;;  %v868_v17 = vrot.slane %v866_v53, 4  ;;  %v871_v18 = vrot.slane %v869_v4, 5  ;;  %v923_v60 = vshrl.u32 %v852_v16, 16 }
 0x104   : > { %v926_v22 = vshll.u32 %v852_v16, 16  ;;  %v887_v20 = vrot.slane %v885_v9, 4  ;;  %v890_v25 = vrot.slane %v888_v11, 5  ;;  %v906_v26 = vrot.slane %v904_v12, 4  ;;  %v856_v28 = vld [vmem:[%s5498_s29 + $0x28] sm:$0xf]  ;;  %vm5824_vm14 = vmand %vm1123_vm11, %vm1124_vm12 }
 0x105   : > { %v909_v27 = vrot.slane %v907_v14, 5  ;;  %v872_v29 = vor.u32 %v871_v18, %v868_v17  ;;  %v925_v24 = vrot.slane %v923_v60, 4  ;;  %v942_v32 = vshrl.u32 %v854_v23, 16  ;;  %v858_v39 = vld [vmem:[%s5498_s29 + $0x30] sm:$0xf] }
 0x106   : > { %v928_v30 = vrot.slane %v926_v22, 5  ;;  %v891_v31 = vor.u32 %v890_v25, %v887_v20  ;;  %v945_v36 = vshll.u32 %v854_v23, 16  ;;  %v961_v38 = vshrl.u32 %v856_v28, 16  ;;  %v860_v50 = vld [vmem:[%s5498_s29 + $0x38] sm:$0xf] }
 0x107   : > { %v910_v1 = vor.u32 %v909_v27, %v906_v26  ;;  %v873_v41 = vrot.slane %v872_v29, 4  ;;  %v944_v43 = vrot.slane %v942_v32, 4  ;;  %v964_v44 = vshll.u32 %v856_v28, 16  ;;  %v1067_v56 = vld [vmem:[%s5505_s0] sm:$0xf] }
 0x108   : > { %v929_v42 = vor.u32 %v928_v30, %v925_v24  ;;  %v892_v33 = vrot.slane %v891_v31, 4  ;;  %v947_v49 = vrot.slane %v945_v36, 5  ;;  %v963_v37 = vrot.slane %v961_v38, 4  ;;  %v1095_v62 = vld [vmem:[%s5512_s1] sm:$0xf] }
 0x109   : > { %v911_v46 = vrot.slane %v910_v1, 4  ;;  %v878_v51 = vsel %vm5798_vm13, %v873_v41, %v5593_v15  ;;  %v966_v54 = vrot.slane %v964_v44, 5  ;;  %v980_v55 = vshrl.u32 %v858_v39, 16  ;;  %v1126_v3 = vld [vmem:[#allocation2 + $0xa4] sm:$0x8] }
 0x10a   : > { %v930_v52 = vrot.slane %v929_v42, 4  ;;  %1034 = vst.msk [vmem:[#allocation2 + $0xa8] sm:$0xf] %vm686_vm0, %v878_v51  ;;  %v897_v8 = vsel %vm5798_vm13, %v892_v33, %v5598_v19  ;;  %v948_v59 = vor.u32 %v947_v49, %v944_v43  ;;  %v983_v61 = vshll.u32 %v858_v39, 16  ;;  %v1129_v19 = vld [vmem:[#allocation2 + $0xac] sm:$0x8] }
 0x10b   : > { %v916_v57 = vsel %vm5798_vm13, %v911_v46, %v5612_v35  ;;  %1039 = vst.msk [vmem:[#allocation2 + $0xb0] sm:$0xf] %vm686_vm0, %v897_v8  ;;  %v967_v63 = vor.u32 %v966_v54, %v963_v37  ;;  %v982_v48 = vrot.slane %v980_v55, 4  ;;  %v999_v0 = vshrl.u32 %v860_v50, 16  ;;  %v1132_v4 = vld [vmem:[#allocation2 + $0xb4] sm:$0x8] }
 0x10c   : > { %1043 = vst.msk [vmem:[#allocation2 + $0xb8] sm:$0xf] %vm686_vm0, %v916_v57  ;;  %v935_v15 = vsel %vm5798_vm13, %v930_v52, %v5614_v40  ;;  %v949_v2 = vrot.slane %v948_v59, 4  ;;  %v985_v35 = vrot.slane %v983_v61, 5  ;;  %v1002_v10 = vshll.u32 %v860_v50, 16 }
 0x10d   : > { %1047 = vst.msk [vmem:[#allocation2 + $0xc0] sm:$0xf] %vm686_vm0, %v935_v15  ;;  %v1070_v53 = vshrl.u32 %v1067_v56, 16  ;;  %v1135_v6 = vld [vmem:[#allocation2 + $0xbc] sm:$0x8]  ;;  %v968_v7 = vrot.slane %v967_v63, 4 }
 0x10e   : > { %v1001_v9 = vrot.slane %v999_v0, 4  ;;  %v1073_v11 = vshll.u32 %v1067_v56, 16  ;;  %v1098_v12 = vshrl.u32 %v1095_v62, 16  ;;  %v1138_v14 = vld [vmem:[#allocation2 + $0xc4] sm:$0x8]  ;;  %v954_v16 = vsel %vm5798_vm13, %v949_v2, %v5617_v45 }
 0x10f   : > { %v986_v17 = vor.u32 %v985_v35, %v982_v48  ;;  %v1004_v18 = vrot.slane %v1002_v10, 5  ;;  %v1072_v60 = vrot.slane %v1070_v53, 4  ;;  %v1141_v22 = vld [vmem:[#allocation2 + $0xcc] sm:$0x8]  ;;  %v1144_v23 = vld [vmem:[#allocation2 + $0xd4] sm:$0x8]  ;;  %v973_v20 = vsel %vm5798_vm13, %v968_v7, %v5626_v58 }
 0x110   : > { %1051 = vst.msk [vmem:[#allocation2 + $0xc8] sm:$0xf] %vm686_vm0, %v954_v16  ;;  %v1075_v25 = vrot.slane %v1073_v11, 5  ;;  %v1100_v26 = vrot.slane %v1098_v12, 4  ;;  %v1101_v27 = vshll.u32 %v1095_v62, 16  ;;  %v1127_v45 = vsel %vm5824_vm14, 0, %v1126_v3 }
 0x111   : > { %v1147_v28 = vld [vmem:[#allocation2 + $0xdc] sm:$0x8]  ;;  %1055 = vst.msk [vmem:[#allocation2 + $0xd0] sm:$0xf] %vm686_vm0, %v973_v20  ;;  %v987_v29 = vrot.slane %v986_v17, 4  ;;  %v1005_v24 = vor.u32 %v1004_v18, %v1001_v9  ;;  %v1130_v30 = vsel %vm5824_vm14, 0, %v1129_v19 }
 0x112   : > { %v1150_v32 = vld [vmem:[#allocation2 + $0xe4] sm:$0x8]  ;;  %v1076_v31 = vor.u32 %v1075_v25, %v1072_v60  ;;  %v1103_v1 = vrot.slane %v1101_v27, 5  ;;  %1128 = vst [vmem:[#allocation2 + $0xa4] sm:$0x8] %v1127_v45  ;;  %v1133_v58 = vsel %vm5824_vm14, 0, %v1132_v4 }
 0x113   : > { %1131 = vst [vmem:[#allocation2 + $0xac] sm:$0x8] %v1130_v30  ;;  %v1136_v36 = vsel %vm5824_vm14, 0, %v1135_v6  ;;  %v1153_v38 = vld [vmem:[#allocation2 + $0xec] sm:$0x8]  ;;  %v992_v39 = vsel %vm5798_vm13, %v987_v29, %v5630_v5  ;;  %v1006_v41 = vrot.slane %v1005_v24, 4 }
 0x114   : > { %1134 = vst [vmem:[#allocation2 + $0xb4] sm:$0x8] %v1133_v58  ;;  %1137 = vst [vmem:[#allocation2 + $0xbc] sm:$0x8] %v1136_v36  ;;  %v1139_v42 = vsel %vm5824_vm14, 0, %v1138_v14  ;;  %v1142_v43 = vsel %vm5824_vm14, 0, %v1141_v22  ;;  %v1104_v33 = vor.u32 %v1103_v1, %v1100_v26 }
 0x115   : > { %1059 = vst.msk [vmem:[#allocation2 + $0xd8] sm:$0xf] %vm686_vm0, %v992_v39  ;;  %v1077_v44 = vrot.slane %v1076_v31, 4  ;;  %1140 = vst [vmem:[#allocation2 + $0xc4] sm:$0x8] %v1139_v42  ;;  %v1145_v46 = vsel %vm5824_vm14, 0, %v1144_v23  ;;  %v1011_v49 = vsel %vm5798_vm13, %v1006_v41, %v5638_v21 }
 0x116   : > { %1143 = vst [vmem:[#allocation2 + $0xcc] sm:$0x8] %v1142_v43  ;;  %v1148_v5 = vsel %vm5824_vm14, 0, %v1147_v28  ;;  %1146 = vst [vmem:[#allocation2 + $0xd4] sm:$0x8] %v1145_v46  ;;  %v1151_v37 = vsel %vm5824_vm14, 0, %v1150_v32 }
 0x117   : > { %1149 = vst [vmem:[#allocation2 + $0xdc] sm:$0x8] %v1148_v5  ;;  %v1154_v50 = vsel %vm5824_vm14, 0, %v1153_v38  ;;  %1063 = vst.msk [vmem:[#allocation2 + $0xe0] sm:$0xf] %vm686_vm0, %v1011_v49  ;;  %v1082_v51 = vsel %vm5798_vm13, %v1077_v44, %v5645_v13  ;;  %v1105_v52 = vrot.slane %v1104_v33, 4 }
 0x118   : > { %1152 = vst [vmem:[#allocation2 + $0xe4] sm:$0x8] %v1151_v37  ;;  %1155 = vst [vmem:[#allocation2 + $0xec] sm:$0x8] %v1154_v50  ;;  %1159 = sbr.rel (%p3937_p1) target bundleno = 289 (0x121), region = 76 }
 0x119   : > { %1091 = vst.msk [vmem:[#allocation2 + $0xa0] sm:$0xf] %vm686_vm0, %v1082_v51  ;;  %v1110_v21 = vsel %vm5798_vm13, %v1105_v52, %v5651_v47 }
 0x11a   : > { %1119 = vst.msk [vmem:[#allocation2 + $0xe8] sm:$0xf] %vm686_vm0, %v1110_v21 }
 0x11d   : > { %v5113_v54 = vmov 0  }
 0x11e   : > { %1160 = vst.msk [vmem:[#allocation2] sm:$0xf] %vm686_vm0, %v5113_v54  ;;  %1161 = vst.msk [vmem:[#allocation2 + $0x4] sm:$0xf] %vm686_vm0, %v5113_v54 }
 0x11f   : > { %1162 = vst.msk [vmem:[#allocation2 + $0x50] sm:$0xf] %vm686_vm0, %v5113_v54  ;;  %1163 = vst.msk [vmem:[#allocation2 + $0x54] sm:$0xf] %vm686_vm0, %v5113_v54 }
 0x120   : > { %1164 = vst.msk [vmem:[#allocation2 + $0xa0] sm:$0xf] %vm686_vm0, %v5113_v54  ;;  %1165 = vst.msk [vmem:[#allocation2 + $0xa4] sm:$0xf] %vm686_vm0, %v5113_v54 }
 0x121 PF: > { %s6432_s26 = sld [smem:[#allocation26_spill]] }
 0x127   : > { %p3938_p4 = scmp.ne.s32.totalorder %s6432_s26, 1 }
 0x129   : > { %1169 = sbr.rel (%p3938_p4) target bundleno = 306 (0x132), region = 80 }
 0x12e   : > { %v5114_v13 = vmov 0  }
 0x12f   : > { %1170 = vst.msk [vmem:[#allocation2 + $0x48] sm:$0xf] %vm686_vm0, %v5114_v13  ;;  %1171 = vst.msk [vmem:[#allocation2 + $0x4c] sm:$0xf] %vm686_vm0, %v5114_v13 }
 0x130   : > { %1172 = vst.msk [vmem:[#allocation2 + $0x98] sm:$0xf] %vm686_vm0, %v5114_v13  ;;  %1173 = vst.msk [vmem:[#allocation2 + $0x9c] sm:$0xf] %vm686_vm0, %v5114_v13 }
 0x131   : > { %1174 = vst.msk [vmem:[#allocation2 + $0xe8] sm:$0xf] %vm686_vm0, %v5114_v13  ;;  %1175 = vst.msk [vmem:[#allocation2 + $0xec] sm:$0xf] %vm686_vm0, %v5114_v13 }
 0x132 PF: > { %v4698_v47 = vld [vmem:[#allocation11 + $0x18] sm:$0xff]   ;;  %v4699_v34 = vld [vmem:[#allocation11 + $0x10] sm:$0xff]   ;;  %v4700_v55 = vld [vmem:[#allocation11 + $0x8] sm:$0xff]   ;;  %vm1264_vm15 = vcmask 523264   ;;  %s6080_s3 = sld [smem:[#allocation4]]  ;;  %s3726_s2 = sshll.u32 %s5873_s4, 4  ;;  %s6243_s2 = int_to_ptr.vmem [resolvable:$true] %s3726_s2 }
 0x133   : > { %4532 = vmatprep.subr.bf16.mxu1 %v4698_v47  ;;  %4316 = vmatprep.subr.bf16.mxu0 %v4698_v47  ;;  %v4702_v56 = vld [vmem:[#allocation2 + $0x20] sm:$0xff]   ;;  %v4701_v57 = vld [vmem:[#allocation11] sm:$0xff]   ;;  %v4704_v59 = vld [vmem:[#allocation11 + $0x78] sm:$0xff]   ;;  %s6433_s15 = sld [smem:[#allocation42_spill]]  ;;  %s6249_s22 = scalar_lea.sflag [#allocation7], %s429_s17 }
 0x134   : > { %4536 = vmatpush3.bf16.msra.mxu1 %v4698_v47  ;;  %4317 = vmatpush3.bf16.msra.mxu0 %v4698_v47  ;;  %v4705_v8 = vld [vmem:[#allocation2] sm:$0xff]   ;;  %v4708_v61 = vld [vmem:[#allocation11 + $0xd8] sm:$0xff]   ;;  %v4709_v48 = vld [vmem:[#allocation2 + $0x30] sm:$0xff]   ;;  %s6434_s27 = sld [smem:[#allocation43_spill]]  ;;  %s4944_s1 = scalar_lea.vmem %s6243_s2, 1024 }
 0x135   : > { %4533 = vmatprep.subr.bf16.mxu1 %v4699_v34  ;;  %4318 = vmatprep.subr.bf16.mxu0 %v4699_v34  ;;  %v4703_v62 = vld [vmem:[#allocation2 + $0x28] sm:$0xff]   ;;  %v4706_v15 = vld [vmem:[#allocation11 + $0x70] sm:$0xff]   ;;  %v4713_v3 = vld [vmem:[#allocation2 + $0x10] sm:$0xff]   ;;  %s6435_s18 = sld [smem:[#allocation26_spill]]  ;;  %p4945_p3 = scmp.ne.s32.totalorder %s6243_s2, %s4944_s1 }
 0x136   : > { %4332 = vmatprep.mubr.msk.bf16.mxu1 %vm1264_vm15, %v4702_v56  ;;  %4324 = vmatprep.mubr.msk.bf16.mxu0 %vm1264_vm15, %v4705_v8  ;;  %v4707_v63 = vld [vmem:[#allocation2 + $0x8] sm:$0xff]   ;;  %v4712_v0 = vld [vmem:[#allocation11 + $0xd0] sm:$0xff]   ;;  %v4711_v19 = vld [vmem:[#allocation11 + $0x68] sm:$0xff]   ;;  %s6436_s8 = sld [smem:[#allocation27_spill]]  ;;  %p6438_p5 = scmp.ne.s32.totalorder %s6398_s16, 0 }
 0x137   : > { %v4716_v2 = vld [vmem:[#allocation11 + $0xc8] sm:$0xff]   ;;  %v4714_v10 = vld [vmem:[#allocation11 + $0x60] sm:$0xff]   ;;  %v4717_v4 = vld [vmem:[#allocation2 + $0x8] sm:$0xff]   ;;  %s6437_s21 = sld [smem:[#allocation45_spill]] }
 0x138   : > { %4537 = vmatpush3.bf16.msra.mxu1 %v4699_v34  ;;  %4319 = vmatpush3.bf16.msra.mxu0 %v4699_v34  ;;  %v4710_v35 = vld [vmem:[#allocation2 + $0x38] sm:$0xff]   ;;  %v4720_v6 = vld [vmem:[#allocation11 + $0xc0] sm:$0xff]   ;;  %v4719_v9 = vld [vmem:[#allocation11 + $0x38] sm:$0xff]   ;;  %p4946_p9 = pnand %p4945_p3, %p6438_p5 }
 0x139   : > { %4534 = vmatprep.subr.bf16.mxu1 %v4700_v55  ;;  %4320 = vmatprep.subr.bf16.mxu0 %v4700_v55  ;;  %v4715_v53 = vld [vmem:[#allocation2 + $0x18] sm:$0xff]   ;;  %v4721_v7 = vld [vmem:[#allocation2 + $0x10] sm:$0xff]   ;;  %v4726_v11 = vld [vmem:[#allocation11 + $0x98] sm:$0xff]  }
 0x13a   : > { %v4718_v12 = vld [vmem:[#allocation2 + $0x10] sm:$0xff]   ;;  %v4722_v40 = vld [vmem:[#allocation2 + $0x18] sm:$0xff]   ;;  %v4725_v16 = vld [vmem:[#allocation11 + $0x30] sm:$0xff]   ;;  %p4947_p6 = pneg %p4946_p9 }
 0x13b   : > { %v4723_v14 = vld [vmem:[#allocation2 + $0x18] sm:$0xff]   ;;  %v4727_v17 = vld [vmem:[#allocation2 + $0x20] sm:$0xff]   ;;  %v4728_v23 = vld [vmem:[#allocation2 + $0x28] sm:$0xff]   ;;  %s4168_s28 = sshll.u32 %s6435_s18, 4 }
 0x13c   : > { %4538 = vmatpush3.bf16.msra.mxu1 %v4700_v55  ;;  %4321 = vmatpush3.bf16.msra.mxu0 %v4700_v55  ;;  %v4732_v18 = vld [vmem:[#allocation11 + $0x90] sm:$0xff]   ;;  %v4731_v22 = vld [vmem:[#allocation11 + $0x28] sm:$0xff]   ;;  %v4729_v20 = vld [vmem:[#allocation2 + $0x28] sm:$0xff]   ;;  %s4140_s7 = sshll.u32 %s6436_s8, 5 }
 0x13d   : > { %4535 = vmatprep.subr.bf16.mxu1 %v4701_v57  ;;  %4322 = vmatprep.subr.bf16.mxu0 %v4701_v57  ;;  %v4724_v60 = vld [vmem:[#allocation2 + $0x20] sm:$0xff]   ;;  %v4733_v25 = vld [vmem:[#allocation2 + $0x30] sm:$0xff]   ;;  %v4738_v27 = vld [vmem:[#allocation11 + $0x88] sm:$0xff]   ;;  %s3723_s29 = sadd.s32 %s4168_s28, %s4140_s7 }
 0x13e   : > { %v4737_v26 = vld [vmem:[#allocation11 + $0x20] sm:$0xff]   ;;  %v4734_v29 = vld [vmem:[#allocation2 + $0x38] sm:$0xff]   ;;  %v4743_v45 = vld [vmem:[#allocation11 + $0xf8] sm:$0xff]   ;;  %s4141_s6 = sshll.u32 %s3723_s29, 6 }
 0x13f   : > { %v4730_v28 = vld [vmem:[#allocation2 + $0x30] sm:$0xff]   ;;  %v4735_v24 = vld [vmem:[#allocation2 + $0x38] sm:$0xff]   ;;  %v4739_v32 = vld [vmem:[#allocation2 + $0x40] sm:$0xff]   ;;  %s6241_s5 = scalar_lea.hbm %s6437_s21, %s4141_s6 }
 0x140   : > { %4539 = vmatpush3.bf16.msra.mxu1 %v4701_v57  ;;  %4323 = vmatpush3.bf16.msra.mxu0 %v4701_v57  ;;  %v4744_v30 = vld [vmem:[#allocation11 + $0x80] sm:$0xff]   ;;  %v4736_v31 = vld [vmem:[#allocation2 + $0x40] sm:$0xff]   ;;  %v4750_v1 = vld [vmem:[#allocation11 + $0x58] sm:$0xff]  }
 0x141   : > { %4340 = vmatprep.subr.bf16.mxu1 %v4704_v59  ;;  %4364 = vmatprep.subr.bf16.mxu0 %v4708_v61  ;;  %v4740_v58 = vld [vmem:[#allocation2 + $0x48] sm:$0xff]   ;;  %v4741_v36 = vld [vmem:[#allocation2 + $0x50] sm:$0xff]   ;;  %v4745_v38 = vld [vmem:[#allocation2 + $0x58] sm:$0xff]  }
 0x142   : > { %v4742_v39 = vld [vmem:[#allocation2 + $0x58] sm:$0xff]   ;;  %v4746_v41 = vld [vmem:[#allocation2 + $0x60] sm:$0xff]   ;;  %v4751_v44 = vld [vmem:[#allocation2 + $0x68] sm:$0xff]  }
 0x143   : > { %4333 = vmatmul.mubr.msk.bf16.vlgmr.msra.gmra.mxu1 %vm1264_vm15, %v4703_v62  ;;  %4325 = vmatmul.mubr.msk.bf16.vlgmr.msra.gmra.mxu0 %vm1264_vm15, %v4707_v63  ;;  %v4747_v42 = vld [vmem:[#allocation2 + $0x60] sm:$0xff]   ;;  %v4748_v46 = vld [vmem:[#allocation2 + $0x68] sm:$0xff]   ;;  %v4752_v5 = vld [vmem:[#allocation2 + $0x70] sm:$0xff]  }
 0x144   : > { %4341 = vmatpush3.bf16.msra.mxu1 %v4704_v59  ;;  %4365 = vmatpush3.bf16.msra.mxu0 %v4708_v61  ;;  %v4749_v43 = vld [vmem:[#allocation11 + $0xf0] sm:$0xff]   ;;  %v4755_v49 = vld [vmem:[#allocation11 + $0xe8] sm:$0xff]   ;;  %v4753_v50 = vld [vmem:[#allocation2 + $0x70] sm:$0xff]  }
 0x145   : > { %4342 = vmatprep.subr.bf16.mxu1 %v4706_v15  ;;  %4336 = vmatprep.mubr.msk.bf16.mxu1 %vm1264_vm15, %v4709_v48  ;;  %v4756_v33 = vld [vmem:[#allocation11 + $0x50] sm:$0xff]   ;;  %v4762_v37 = vld [vmem:[#allocation11 + $0x48] sm:$0xff]   ;;  %v4761_v52 = vld [vmem:[#allocation11 + $0xe0] sm:$0xff]  }
 0x146   : > { %4366 = vmatprep.subr.bf16.mxu0 %v4712_v0  ;;  %4328 = vmatprep.mubr.msk.bf16.mxu0 %vm1264_vm15, %v4713_v3  ;;  %v4757_v51 = vld [vmem:[#allocation2 + $0x78] sm:$0xff]   ;;  %v4768_v21 = vld [vmem:[#allocation11 + $0x40] sm:$0xff]   ;;  %v4767_v13 = vld [vmem:[#allocation11 + $0xb8] sm:$0xff]  }
 0x147   : > { %v4754_v54 = vld [vmem:[#allocation2 + $0x78] sm:$0xff]   ;;  %v4758_v47 = vld [vmem:[#allocation2 + $0x80] sm:$0xff]   ;;  %v4763_v55 = vld [vmem:[#allocation2 + $0x88] sm:$0xff]  }
 0x148   : > { %4343 = vmatpush3.bf16.msra.mxu1 %v4706_v15  ;;  %4367 = vmatpush3.bf16.msra.mxu0 %v4712_v0  ;;  %v4759_v34 = vld [vmem:[#allocation2 + $0x80] sm:$0xff]   ;;  %v4774_v56 = vld [vmem:[#allocation11 + $0x118] sm:$0xff]   ;;  %v4764_v57 = vld [vmem:[#allocation2 + $0x90] sm:$0xff]  }
 0x149   : > { %4344 = vmatprep.subr.bf16.mxu1 %v4711_v19  ;;  %4368 = vmatprep.subr.bf16.mxu0 %v4716_v2  ;;  %v4760_v8 = vld [vmem:[#allocation2 + $0x88] sm:$0xff]   ;;  %v4765_v59 = vld [vmem:[#allocation2 + $0x60] sm:$0xff]   ;;  %v4771_v63 = vld [vmem:[#allocation2 + $0x70] sm:$0xff]  }
 0x14a   : > { %v4769_v61 = vld [vmem:[#allocation2 + $0xa0] sm:$0xff]   ;;  %v4766_v62 = vld [vmem:[#allocation2 + $0x68] sm:$0xff]   ;;  %v4775_v0 = vld [vmem:[#allocation2 + $0xb0] sm:$0xff]  }
 0x14b   : > { %4337 = vmatmul.mubr.msk.bf16.gmra.mxu1 %vm1264_vm15, %v4710_v35  ;;  %4329 = vmatmul.mubr.msk.bf16.gmra.mxu0 %vm1264_vm15, %v4715_v53  ;;  %v4770_v15 = vld [vmem:[#allocation2 + $0xa8] sm:$0xff]   ;;  %v4773_v48 = vld [vmem:[#allocation11 + $0xb0] sm:$0xff]   ;;  %v4779_v35 = vld [vmem:[#allocation11 + $0xa8] sm:$0xff]  }
 0x14c   : > { %4345 = vmatpush3.bf16.msra.mxu1 %v4711_v19  ;;  %4369 = vmatpush3.bf16.msra.mxu0 %v4716_v2  ;;  %v4780_v3 = vld [vmem:[#allocation11 + $0x110] sm:$0xff]   ;;  %v4772_v19 = vld [vmem:[#allocation2 + $0x78] sm:$0xff]  }
 0x14d   : > { %4346 = vmatprep.subr.bf16.mxu1 %v4714_v10  ;;  %4348 = vmatprep.mubr.msk.bf16.mxu1 %vm1264_vm15, %v4717_v4  ;;  %v4776_v2 = vld [vmem:[#allocation2 + $0xb8] sm:$0xff]   ;;  %v4777_v53 = vld [vmem:[#allocation2 + $0x80] sm:$0xff]  }
 0x14e   : > { %4370 = vmatprep.subr.bf16.mxu0 %v4720_v6  ;;  %4372 = vmatprep.mubr.msk.bf16.mxu0 %vm1264_vm15, %v4721_v7  ;;  %v4781_v4 = vld [vmem:[#allocation2 + $0xc0] sm:$0xff]   ;;  %v4791_v7 = vld [vmem:[#allocation11 + $0x100] sm:$0xff]  }
 0x150   : > { %4347 = vmatpush3.bf16.msra.mxu1 %v4714_v10  ;;  %4371 = vmatpush3.bf16.msra.mxu0 %v4720_v6  ;;  %v4786_v10 = vld [vmem:[#allocation11 + $0x108] sm:$0xff]   ;;  %v4785_v6 = vld [vmem:[#allocation11 + $0xa0] sm:$0xff]  }
 0x151   : > { %4388 = vmatprep.subr.bf16.mxu1 %v4719_v9  ;;  %4412 = vmatprep.subr.bf16.mxu0 %v4726_v11 }
 0x153   : > { %4349 = vmatmul.mubr.msk.bf16.vlgmr.msra.gmra.mxu1 %vm1264_vm15, %v4718_v12  ;;  %4373 = vmatmul.mubr.msk.bf16.vlgmr.msra.gmra.mxu0 %vm1264_vm15, %v4722_v40  ;;  %v4783_v12 = vld [vmem:[#allocation2 + $0x90] sm:$0xff]  }
 0x154   : > { %4389 = vmatpush3.bf16.msra.mxu1 %v4719_v9  ;;  %4352 = vmatprep.mubr.msk.bf16.mxu1 %vm1264_vm15, %v4723_v14  ;;  %v4778_v9 = vld [vmem:[#allocation2 + $0x88] sm:$0xff]   ;;  %v4787_v40 = vld [vmem:[#allocation2 + $0xd0] sm:$0xff]   ;;  %v4784_v14 = vld [vmem:[#allocation2 + $0x98] sm:$0xff]  }
 0x155   : > { %4390 = vmatprep.subr.bf16.mxu1 %v4725_v16  ;;  %4413 = vmatpush3.bf16.msra.mxu0 %v4726_v11  ;;  %v4782_v11 = vld [vmem:[#allocation2 + $0xc8] sm:$0xff]  }
 0x156   : > { %4376 = vmatprep.mubr.msk.bf16.mxu0 %vm1264_vm15, %v4727_v17  ;;  %4414 = vmatprep.subr.bf16.mxu0 %v4732_v18  ;;  %v4789_v17 = vld [vmem:[#allocation2 + $0xa8] sm:$0xff]  }
 0x158   : > { %4391 = vmatpush3.bf16.msra.mxu1 %v4725_v16  ;;  %v4788_v16 = vld [vmem:[#allocation2 + $0xd8] sm:$0xff]  }
 0x159   : > { %4392 = vmatprep.subr.bf16.mxu1 %v4731_v22  ;;  %4415 = vmatpush3.bf16.msra.mxu0 %v4732_v18  ;;  %v4792_v18 = vld [vmem:[#allocation2 + $0xb0] sm:$0xff]  }
 0x15a   : > { %4416 = vmatprep.subr.bf16.mxu0 %v4738_v27 }
 0x15b   : > { %4353 = vmatmul.mubr.msk.bf16.gmra.mxu1 %vm1264_vm15, %v4724_v60  ;;  %4377 = vmatmul.mubr.msk.bf16.gmra.mxu0 %vm1264_vm15, %v4728_v23  ;;  %v4790_v60 = vld [vmem:[#allocation2 + $0xb0] sm:$0xff]   ;;  %v4794_v23 = vld [vmem:[#allocation2 + $0xb8] sm:$0xff]  }
 0x15c   : > { %4356 = vmatprep.mubr.msk.bf16.mxu1 %vm1264_vm15, %v4729_v20  ;;  %4393 = vmatpush3.bf16.msra.mxu1 %v4731_v22  ;;  %v4793_v22 = vld [vmem:[#allocation2 + $0xb8] sm:$0xff]   ;;  %v4796_v20 = vld [vmem:[#allocation2 + $0xc0] sm:$0xff]  }
 0x15d   : > { %4380 = vmatprep.mubr.msk.bf16.mxu0 %vm1264_vm15, %v4733_v25  ;;  %4394 = vmatprep.subr.bf16.mxu1 %v4737_v26  ;;  %v4795_v25 = vld [vmem:[#allocation2 + $0xc0] sm:$0xff]  }
 0x15e   : > { %4417 = vmatpush3.bf16.msra.mxu0 %v4738_v27  ;;  %v4798_v27 = vld [vmem:[#allocation2 + $0xc8] sm:$0xff]  }
 0x15f   : > { %4418 = vmatprep.subr.bf16.mxu0 %v4744_v30 }
 0x160   : > { %4395 = vmatpush3.bf16.msra.mxu1 %v4737_v26  ;;  %v4797_v26 = vld [vmem:[#allocation2 + $0xc8] sm:$0xff]  }
 0x161   : > { %4436 = vmatprep.subr.bf16.mxu1 %v4743_v45 }
 0x162   : > { %4419 = vmatpush3.bf16.msra.mxu0 %v4744_v30  ;;  %v4804_v30 = vld [vmem:[#allocation2 + $0xe0] sm:$0xff]  }
 0x163   : > { %4357 = vmatmul.mubr.msk.bf16.gmra.mxu1 %vm1264_vm15, %v4730_v28  ;;  %4381 = vmatmul.mubr.msk.bf16.gmra.mxu0 %vm1264_vm15, %v4734_v29  ;;  %v4800_v28 = vld [vmem:[#allocation2 + $0xd0] sm:$0xff]  }
 0x164   : > { %4360 = vmatprep.mubr.msk.bf16.mxu1 %vm1264_vm15, %v4735_v24  ;;  %4384 = vmatprep.mubr.msk.bf16.mxu0 %vm1264_vm15, %v4739_v32  ;;  %v4799_v29 = vld [vmem:[#allocation2 + $0xd0] sm:$0xff]   ;;  %v4801_v24 = vld [vmem:[#allocation2 + $0xd8] sm:$0xff]   ;;  %v4803_v32 = vld [vmem:[#allocation2 + $0xe0] sm:$0xff]  }
 0x165   : > { %4460 = vmatprep.subr.bf16.mxu0 %v4750_v1 }
 0x16b   : > { %4361 = vmatmul.mubr.msk.bf16.gmra.mxu1 %vm1264_vm15, %v4736_v31  ;;  %4385 = vmatmul.mubr.msk.bf16.gmra.mxu0 %vm1264_vm15, %v4740_v58  ;;  %v4805_v31 = vld [vmem:[#allocation2 + $0xe8] sm:$0xff]  }
 0x16c   : > { %4396 = vmatprep.mubr.msk.bf16.mxu1 %vm1264_vm15, %v4741_v36  ;;  %4420 = vmatprep.mubr.msk.bf16.mxu0 %vm1264_vm15, %v4745_v38 }
 0x173   : > { %4397 = vmatmul.mubr.msk.bf16.vlgmr.msra.gmra.mxu1 %vm1264_vm15, %v4742_v39  ;;  %4421 = vmatmul.mubr.msk.bf16.vlgmr.msra.gmra.mxu0 %vm1264_vm15, %v4746_v41 }
 0x174   : > { %4437 = vmatpush3.bf16.msra.mxu1 %v4743_v45  ;;  %4400 = vmatprep.mubr.msk.bf16.mxu1 %vm1264_vm15, %v4747_v42  ;;  %v4802_v45 = vld [vmem:[#allocation2 + $0xd8] sm:$0xff]  }
 0x175   : > { %4438 = vmatprep.subr.bf16.mxu1 %v4749_v43  ;;  %4461 = vmatpush3.bf16.msra.mxu0 %v4750_v1 }
 0x176   : > { %4424 = vmatprep.mubr.msk.bf16.mxu0 %vm1264_vm15, %v4751_v44  ;;  %4462 = vmatprep.subr.bf16.mxu0 %v4756_v33 }
 0x178   : > { %4439 = vmatpush3.bf16.msra.mxu1 %v4749_v43 }
 0x179   : > { %4440 = vmatprep.subr.bf16.mxu1 %v4755_v49  ;;  %4463 = vmatpush3.bf16.msra.mxu0 %v4756_v33 }
 0x17a   : > { %4464 = vmatprep.subr.bf16.mxu0 %v4762_v37 }
 0x17b   : > { %4401 = vmatmul.mubr.msk.bf16.gmra.mxu1 %vm1264_vm15, %v4748_v46  ;;  %4425 = vmatmul.mubr.msk.bf16.gmra.mxu0 %vm1264_vm15, %v4752_v5 }
 0x17c   : > { %4404 = vmatprep.mubr.msk.bf16.mxu1 %vm1264_vm15, %v4753_v50  ;;  %4441 = vmatpush3.bf16.msra.mxu1 %v4755_v49 }
 0x17d   : > { %4428 = vmatprep.mubr.msk.bf16.mxu0 %vm1264_vm15, %v4757_v51  ;;  %4442 = vmatprep.subr.bf16.mxu1 %v4761_v52 }
 0x17e   : > { %4465 = vmatpush3.bf16.msra.mxu0 %v4762_v37 }
 0x17f   : > { %4466 = vmatprep.subr.bf16.mxu0 %v4768_v21 }
 0x180   : > { %4443 = vmatpush3.bf16.msra.mxu1 %v4761_v52 }
 0x181   : > { %4484 = vmatprep.subr.bf16.mxu1 %v4767_v13 }
 0x182   : > { %4467 = vmatpush3.bf16.msra.mxu0 %v4768_v21 }
 0x183   : > { %4405 = vmatmul.mubr.msk.bf16.gmra.mxu1 %vm1264_vm15, %v4754_v54  ;;  %4429 = vmatmul.mubr.msk.bf16.gmra.mxu0 %vm1264_vm15, %v4758_v47 }
 0x184   : > { %4408 = vmatprep.mubr.msk.bf16.mxu1 %vm1264_vm15, %v4759_v34  ;;  %4432 = vmatprep.mubr.msk.bf16.mxu0 %vm1264_vm15, %v4763_v55 }
 0x185   : > { %4508 = vmatprep.subr.bf16.mxu0 %v4774_v56 }
 0x18b   : > { %4409 = vmatmul.mubr.msk.bf16.gmra.mxu1 %vm1264_vm15, %v4760_v8  ;;  %4433 = vmatmul.mubr.msk.bf16.gmra.mxu0 %vm1264_vm15, %v4764_v57 }
 0x18c   : > { %4444 = vmatprep.mubr.msk.bf16.mxu1 %vm1264_vm15, %v4765_v59  ;;  %4468 = vmatprep.mubr.msk.bf16.mxu0 %vm1264_vm15, %v4769_v61 }
 0x193   : > { %4445 = vmatmul.mubr.msk.bf16.vlgmr.msra.gmra.mxu1 %vm1264_vm15, %v4766_v62  ;;  %4469 = vmatmul.mubr.msk.bf16.vlgmr.msra.gmra.mxu0 %vm1264_vm15, %v4770_v15 }
 0x194   : > { %4485 = vmatpush3.bf16.msra.mxu1 %v4767_v13  ;;  %4448 = vmatprep.mubr.msk.bf16.mxu1 %vm1264_vm15, %v4771_v63 }
 0x195   : > { %4486 = vmatprep.subr.bf16.mxu1 %v4773_v48  ;;  %4509 = vmatpush3.bf16.msra.mxu0 %v4774_v56 }
 0x196   : > { %4472 = vmatprep.mubr.msk.bf16.mxu0 %vm1264_vm15, %v4775_v0  ;;  %4510 = vmatprep.subr.bf16.mxu0 %v4780_v3 }
 0x198   : > { %4487 = vmatpush3.bf16.msra.mxu1 %v4773_v48 }
 0x199   : > { %4488 = vmatprep.subr.bf16.mxu1 %v4779_v35  ;;  %4511 = vmatpush3.bf16.msra.mxu0 %v4780_v3 }
 0x19a   : > { %4512 = vmatprep.subr.bf16.mxu0 %v4786_v10 }
 0x19b   : > { %4449 = vmatmul.mubr.msk.bf16.gmra.mxu1 %vm1264_vm15, %v4772_v19  ;;  %4473 = vmatmul.mubr.msk.bf16.gmra.mxu0 %vm1264_vm15, %v4776_v2 }
 0x19c   : > { %4452 = vmatprep.mubr.msk.bf16.mxu1 %vm1264_vm15, %v4777_v53  ;;  %4489 = vmatpush3.bf16.msra.mxu1 %v4779_v35 }
 0x19d   : > { %4476 = vmatprep.mubr.msk.bf16.mxu0 %vm1264_vm15, %v4781_v4  ;;  %4490 = vmatprep.subr.bf16.mxu1 %v4785_v6 }
 0x19e   : > { %4513 = vmatpush3.bf16.msra.mxu0 %v4786_v10 }
 0x19f   : > { %4514 = vmatprep.subr.bf16.mxu0 %v4791_v7 }
 0x1a0   : > { %4491 = vmatpush3.bf16.msra.mxu1 %v4785_v6 }
 0x1a2   : > { %4515 = vmatpush3.bf16.msra.mxu0 %v4791_v7 }
 0x1a3   : > { %4453 = vmatmul.mubr.msk.bf16.gmra.mxu1 %vm1264_vm15, %v4778_v9  ;;  %4477 = vmatmul.mubr.msk.bf16.gmra.mxu0 %vm1264_vm15, %v4782_v11 }
 0x1a4   : > { %4456 = vmatprep.mubr.msk.bf16.mxu1 %vm1264_vm15, %v4783_v12  ;;  %4480 = vmatprep.mubr.msk.bf16.mxu0 %vm1264_vm15, %v4787_v40 }
 0x1ab   : > { %4457 = vmatmul.mubr.msk.bf16.gmra.mxu1 %vm1264_vm15, %v4784_v14  ;;  %4481 = vmatmul.mubr.msk.bf16.gmra.mxu0 %vm1264_vm15, %v4788_v16 }
 0x1ac   : > { %4492 = vmatprep.mubr.msk.bf16.mxu1 %vm1264_vm15, %v4789_v17  ;;  %4516 = vmatprep.mubr.msk.bf16.mxu0 %vm1264_vm15, %v4792_v18 }
 0x1b3   : > { %4493 = vmatmul.mubr.msk.bf16.vlgmr.msra.gmra.mxu1 %vm1264_vm15, %v4790_v60  ;;  %4517 = vmatmul.mubr.msk.bf16.vlgmr.msra.gmra.mxu0 %vm1264_vm15, %v4793_v22 }
 0x1b4   : > { %4496 = vmatprep.mubr.msk.bf16.mxu1 %vm1264_vm15, %v4794_v23  ;;  %4520 = vmatprep.mubr.msk.bf16.mxu0 %vm1264_vm15, %v4796_v20 }
 0x1bb   : > { %4497 = vmatmul.mubr.msk.bf16.gmra.mxu1 %vm1264_vm15, %v4795_v25  ;;  %4521 = vmatmul.mubr.msk.bf16.gmra.mxu0 %vm1264_vm15, %v4797_v26 }
 0x1bc   : > { %4500 = vmatprep.mubr.msk.bf16.mxu1 %vm1264_vm15, %v4798_v27  ;;  %4524 = vmatprep.mubr.msk.bf16.mxu0 %vm1264_vm15, %v4800_v28 }
 0x1c3   : > { %4501 = vmatmul.mubr.msk.bf16.gmra.mxu1 %vm1264_vm15, %v4799_v29  ;;  %4525 = vmatmul.mubr.msk.bf16.gmra.mxu0 %vm1264_vm15, %v4801_v24 }
 0x1c4   : > { %4504 = vmatprep.mubr.msk.bf16.mxu1 %vm1264_vm15, %v4802_v45  ;;  %4528 = vmatprep.mubr.msk.bf16.mxu0 %vm1264_vm15, %v4804_v30 }
 0x1cb   : > { %4505 = vmatmul.mubr.msk.bf16.gmra.mxu1 %vm1264_vm15, %v4803_v32  ;;  %4529 = vmatmul.mubr.msk.bf16.gmra.mxu0 %vm1264_vm15, %v4805_v31 }
 0x203   : > { %v4334_v1 = vpop.f32.mrf.mxu1  ;;  %v4326_v58 = vpop.f32.mrf.mxu0 }
 0x204   : > { %1396 = vst.msk [vmem:[#allocation3 + $0x50] sm:$0xff] %vm1264_vm15, %v4334_v1  ;;  %1388 = vst.msk [vmem:[#allocation3 + $0x10] sm:$0xff] %vm1264_vm15, %v4326_v58 }
 0x205   : > { %v1355_v36 = vpop.f32.mrf.mxu1  ;;  %v1323_v38 = vpop.f32.mrf.mxu0 }
 0x206   : > { %1394 = vst.msk [vmem:[#allocation3 + $0x40] sm:$0xff] %vm1264_vm15, %v1355_v36  ;;  %1386 = vst.msk [vmem:[#allocation3] sm:$0xff] %vm1264_vm15, %v1323_v38 }
 0x207   : > { %v4335_v39 = vpop.f32.mrf.mxu1  ;;  %v4327_v41 = vpop.f32.mrf.mxu0 }
 0x208   : > { %1397 = vst.msk [vmem:[#allocation3 + $0x58] sm:$0xff] %vm1264_vm15, %v4335_v39  ;;  %1389 = vst.msk [vmem:[#allocation3 + $0x18] sm:$0xff] %vm1264_vm15, %v4327_v41 }
 0x209   : > { %v1358_v42 = vpop.f32.mrf.mxu1  ;;  %v1326_v43 = vpop.f32.mrf.mxu0 }
 0x20a   : > { %1395 = vst.msk [vmem:[#allocation3 + $0x48] sm:$0xff] %vm1264_vm15, %v1358_v42  ;;  %1387 = vst.msk [vmem:[#allocation3 + $0x8] sm:$0xff] %vm1264_vm15, %v1326_v43 }
 0x20b   : > { %v4338_v44 = vpop.f32.mrf.mxu1  ;;  %v4330_v33 = vpop.f32.mrf.mxu0  ;;  %v1614_v51 = vld [vmem:[#allocation3 + $0x10] sm:$0xff] }
 0x20c   : > { %1400 = vst.msk [vmem:[#allocation3 + $0x70] sm:$0xff] %vm1264_vm15, %v4338_v44  ;;  %1392 = vst.msk [vmem:[#allocation3 + $0x30] sm:$0xff] %vm1264_vm15, %v4330_v33  ;;  %v1622_v27 = vld [vmem:[#allocation3 + $0x50] sm:$0xff] }
 0x20d   : > { %v1371_v46 = vpop.f32.mrf.mxu1  ;;  %v1339_v5 = vpop.f32.mrf.mxu0  ;;  %v1612_v54 = vld [vmem:[#allocation3] sm:$0xff] }
 0x20e   : > { %1398 = vst.msk [vmem:[#allocation3 + $0x60] sm:$0xff] %vm1264_vm15, %v1371_v46  ;;  %1390 = vst.msk [vmem:[#allocation3 + $0x20] sm:$0xff] %vm1264_vm15, %v1339_v5  ;;  %v1620_v32 = vld [vmem:[#allocation3 + $0x40] sm:$0xff] }
 0x20f   : > { %v4339_v49 = vpop.f32.mrf.mxu1  ;;  %v4331_v37 = vpop.f32.mrf.mxu0  ;;  %v1615_v57 = vld [vmem:[#allocation3 + $0x18] sm:$0xff] }
 0x210   : > { %1401 = vst.msk [vmem:[#allocation3 + $0x78] sm:$0xff] %vm1264_vm15, %v4339_v49  ;;  %1393 = vst.msk [vmem:[#allocation3 + $0x38] sm:$0xff] %vm1264_vm15, %v4331_v37  ;;  %v1623_v39 = vld [vmem:[#allocation3 + $0x58] sm:$0xff] }
 0x211   : > { %v1374_v50 = vpop.f32.mrf.mxu1  ;;  %v1342_v52 = vpop.f32.mrf.mxu0  ;;  %v1613_v15 = vld [vmem:[#allocation3 + $0x8] sm:$0xff] }
 0x212   : > { %1399 = vst.msk [vmem:[#allocation3 + $0x68] sm:$0xff] %vm1264_vm15, %v1374_v50  ;;  %1391 = vst.msk [vmem:[#allocation3 + $0x28] sm:$0xff] %vm1264_vm15, %v1342_v52  ;;  %v1621_v46 = vld [vmem:[#allocation3 + $0x48] sm:$0xff] }
 0x213   : > { %v4350_v21 = vpop.f32.mrf.mxu1  ;;  %v4374_v13 = vpop.f32.mrf.mxu0  ;;  %v1618_v63 = vld [vmem:[#allocation3 + $0x30] sm:$0xff] }
 0x214   : > { %v1630_v47 = vadd.f32 %v4350_v21, %v1614_v51  ;;  %v1626_v52 = vld [vmem:[#allocation3 + $0x70] sm:$0xff] }
 0x215   : > { %v1549_v34 = vpop.f32.mrf.mxu1  ;;  %v1808_v55 = vpop.f32.mrf.mxu0  ;;  %v1616_v19 = vld [vmem:[#allocation3 + $0x20] sm:$0xff] }
 0x216   : > { %1646 = vst.msk [vmem:[#allocation3 + $0x10] sm:$0xff] %vm1264_vm15, %v1630_v47  ;;  %v1628_v56 = vadd.f32 %v1612_v54, %v1549_v34 }
 0x217   : > { %v4351_v8 = vpop.f32.mrf.mxu1  ;;  %v4375_v59 = vpop.f32.mrf.mxu0  ;;  %v1619_v12 = vld [vmem:[#allocation3 + $0x38] sm:$0xff] }
 0x218   : > { %1644 = vst.msk [vmem:[#allocation3] sm:$0xff] %vm1264_vm15, %v1628_v56  ;;  %v1631_v61 = vadd.f32 %v4351_v8, %v1615_v57 }
 0x219   : > { %v1552_v62 = vpop.f32.mrf.mxu1  ;;  %v1811_v48 = vpop.f32.mrf.mxu0  ;;  %v1617_v60 = vld [vmem:[#allocation3 + $0x28] sm:$0xff] }
 0x21a   : > { %1647 = vst.msk [vmem:[#allocation3 + $0x18] sm:$0xff] %vm1264_vm15, %v1631_v61  ;;  %v1629_v0 = vadd.f32 %v1613_v15, %v1552_v62  ;;  %v1627_v62 = vld [vmem:[#allocation3 + $0x78] sm:$0xff] }
 0x21b   : > { %v4354_v3 = vpop.f32.mrf.mxu1  ;;  %v4378_v2 = vpop.f32.mrf.mxu0 }
 0x21c   : > { %1645 = vst.msk [vmem:[#allocation3 + $0x8] sm:$0xff] %vm1264_vm15, %v1629_v0  ;;  %v1634_v35 = vadd.f32 %v4354_v3, %v1618_v63 }
 0x21d   : > { %v1873_v10 = vld [vmem:[#allocation3 + $0x10] sm:$0xff]  ;;  %v1565_v53 = vpop.f32.mrf.mxu1  ;;  %v1824_v4 = vpop.f32.mrf.mxu0 }
 0x21e   : > { %v1889_v6 = vadd.f32 %v4374_v13, %v1873_v10  ;;  %1650 = vst.msk [vmem:[#allocation3 + $0x30] sm:$0xff] %vm1264_vm15, %v1634_v35  ;;  %v1632_v7 = vadd.f32 %v1616_v19, %v1565_v53  ;;  %v1625_v19 = vld [vmem:[#allocation3 + $0x68] sm:$0xff] }
 0x21f   : > { %v1871_v9 = vld [vmem:[#allocation3] sm:$0xff]  ;;  %v4355_v11 = vpop.f32.mrf.mxu1  ;;  %v4379_v40 = vpop.f32.mrf.mxu0 }
 0x220   : > { %1905 = vst.msk [vmem:[#allocation3 + $0x10] sm:$0xff] %vm1264_vm15, %v1889_v6  ;;  %v1887_v14 = vadd.f32 %v1871_v9, %v1808_v55  ;;  %1648 = vst.msk [vmem:[#allocation3 + $0x20] sm:$0xff] %vm1264_vm15, %v1632_v7  ;;  %v1635_v16 = vadd.f32 %v4355_v11, %v1619_v12  ;;  %v1624_v55 = vld [vmem:[#allocation3 + $0x60] sm:$0xff] }
 0x221   : > { %v1874_v17 = vld [vmem:[#allocation3 + $0x18] sm:$0xff]  ;;  %v1568_v18 = vpop.f32.mrf.mxu1  ;;  %v1827_v22 = vpop.f32.mrf.mxu0 }
 0x222   : > { %1903 = vst.msk [vmem:[#allocation3] sm:$0xff] %vm1264_vm15, %v1887_v14  ;;  %v1890_v23 = vadd.f32 %v4375_v59, %v1874_v17  ;;  %1651 = vst.msk [vmem:[#allocation3 + $0x38] sm:$0xff] %vm1264_vm15, %v1635_v16  ;;  %v1633_v20 = vadd.f32 %v1617_v60, %v1568_v18 }
 0x223   : > { %v1872_v25 = vld [vmem:[#allocation3 + $0x8] sm:$0xff]  ;;  %v4358_v26 = vpop.f32.mrf.mxu1  ;;  %v4382_v28 = vpop.f32.mrf.mxu0 }
 0x224   : > { %1906 = vst.msk [vmem:[#allocation3 + $0x18] sm:$0xff] %vm1264_vm15, %v1890_v23  ;;  %v1888_v29 = vadd.f32 %v1872_v25, %v1811_v48  ;;  %1649 = vst.msk [vmem:[#allocation3 + $0x28] sm:$0xff] %vm1264_vm15, %v1633_v20  ;;  %v1638_v24 = vadd.f32 %v4358_v26, %v1622_v27 }
 0x225   : > { %v1877_v45 = vld [vmem:[#allocation3 + $0x30] sm:$0xff]  ;;  %v1581_v30 = vpop.f32.mrf.mxu1  ;;  %v1840_v31 = vpop.f32.mrf.mxu0 }
 0x226   : > { %1904 = vst.msk [vmem:[#allocation3 + $0x8] sm:$0xff] %vm1264_vm15, %v1888_v29  ;;  %v1893_v1 = vadd.f32 %v4378_v2, %v1877_v45  ;;  %1654 = vst.msk [vmem:[#allocation3 + $0x50] sm:$0xff] %vm1264_vm15, %v1638_v24  ;;  %v1636_v58 = vadd.f32 %v1620_v32, %v1581_v30 }
 0x227   : > { %v1875_v36 = vld [vmem:[#allocation3 + $0x20] sm:$0xff]  ;;  %v4359_v38 = vpop.f32.mrf.mxu1  ;;  %v4383_v41 = vpop.f32.mrf.mxu0  ;;  %v2131_v6 = vld [vmem:[#allocation3 + $0x10] sm:$0xff] }
 0x228   : > { %1909 = vst.msk [vmem:[#allocation3 + $0x30] sm:$0xff] %vm1264_vm15, %v1893_v1  ;;  %v1891_v42 = vadd.f32 %v1875_v36, %v1824_v4  ;;  %1652 = vst.msk [vmem:[#allocation3 + $0x40] sm:$0xff] %vm1264_vm15, %v1636_v58  ;;  %v1639_v43 = vadd.f32 %v4359_v38, %v1623_v39 }
 0x229   : > { %v1878_v44 = vld [vmem:[#allocation3 + $0x38] sm:$0xff]  ;;  %v1584_v33 = vpop.f32.mrf.mxu1  ;;  %v1843_v5 = vpop.f32.mrf.mxu0  ;;  %v2129_v14 = vld [vmem:[#allocation3] sm:$0xff] }
 0x22a   : > { %1907 = vst.msk [vmem:[#allocation3 + $0x20] sm:$0xff] %vm1264_vm15, %v1891_v42  ;;  %v1894_v49 = vadd.f32 %v4379_v40, %v1878_v44  ;;  %1655 = vst.msk [vmem:[#allocation3 + $0x58] sm:$0xff] %vm1264_vm15, %v1639_v43  ;;  %v1637_v37 = vadd.f32 %v1621_v46, %v1584_v33 }
 0x22b   : > { %v1876_v50 = vld [vmem:[#allocation3 + $0x28] sm:$0xff]  ;;  %v4362_v51 = vpop.f32.mrf.mxu1  ;;  %v4386_v21 = vpop.f32.mrf.mxu0  ;;  %v2132_v23 = vld [vmem:[#allocation3 + $0x18] sm:$0xff] }
 0x22c   : > { %1910 = vst.msk [vmem:[#allocation3 + $0x38] sm:$0xff] %vm1264_vm15, %v1894_v49  ;;  %v1892_v54 = vadd.f32 %v1876_v50, %v1827_v22  ;;  %1653 = vst.msk [vmem:[#allocation3 + $0x48] sm:$0xff] %vm1264_vm15, %v1637_v37  ;;  %v1642_v13 = vadd.f32 %v4362_v51, %v1626_v52 }
 0x22d   : > { %v1881_v47 = vld [vmem:[#allocation3 + $0x50] sm:$0xff]  ;;  %v1597_v34 = vpop.f32.mrf.mxu1  ;;  %v1856_v56 = vpop.f32.mrf.mxu0  ;;  %v2130_v29 = vld [vmem:[#allocation3 + $0x8] sm:$0xff] }
 0x22e   : > { %1908 = vst.msk [vmem:[#allocation3 + $0x28] sm:$0xff] %vm1264_vm15, %v1892_v54  ;;  %v1897_v8 = vadd.f32 %v4382_v28, %v1881_v47  ;;  %1658 = vst.msk [vmem:[#allocation3 + $0x70] sm:$0xff] %vm1264_vm15, %v1642_v13  ;;  %v1640_v57 = vadd.f32 %v1624_v55, %v1597_v34 }
 0x22f   : > { %v1879_v59 = vld [vmem:[#allocation3 + $0x40] sm:$0xff]  ;;  %v4363_v61 = vpop.f32.mrf.mxu1  ;;  %v4387_v15 = vpop.f32.mrf.mxu0  ;;  %v2135_v1 = vld [vmem:[#allocation3 + $0x30] sm:$0xff] }
 0x230   : > { %1913 = vst.msk [vmem:[#allocation3 + $0x50] sm:$0xff] %vm1264_vm15, %v1897_v8  ;;  %v1895_v63 = vadd.f32 %v1879_v59, %v1840_v31  ;;  %1656 = vst.msk [vmem:[#allocation3 + $0x60] sm:$0xff] %vm1264_vm15, %v1640_v57  ;;  %v1643_v48 = vadd.f32 %v4363_v61, %v1627_v62 }
 0x231   : > { %v1882_v0 = vld [vmem:[#allocation3 + $0x58] sm:$0xff]  ;;  %v1600_v3 = vpop.f32.mrf.mxu1  ;;  %v1859_v2 = vpop.f32.mrf.mxu0  ;;  %v2133_v42 = vld [vmem:[#allocation3 + $0x20] sm:$0xff] }
 0x232   : > { %1911 = vst.msk [vmem:[#allocation3 + $0x40] sm:$0xff] %vm1264_vm15, %v1895_v63  ;;  %v1898_v35 = vadd.f32 %v4383_v41, %v1882_v0  ;;  %1659 = vst.msk [vmem:[#allocation3 + $0x78] sm:$0xff] %vm1264_vm15, %v1643_v48  ;;  %v1641_v10 = vadd.f32 %v1625_v19, %v1600_v3 }
 0x233   : > { %v1880_v53 = vld [vmem:[#allocation3 + $0x48] sm:$0xff]  ;;  %v4398_v4 = vpop.f32.mrf.mxu1  ;;  %v4422_v7 = vpop.f32.mrf.mxu0  ;;  %v2136_v49 = vld [vmem:[#allocation3 + $0x38] sm:$0xff] }
 0x234   : > { %1914 = vst.msk [vmem:[#allocation3 + $0x58] sm:$0xff] %vm1264_vm15, %v1898_v35  ;;  %v1896_v9 = vadd.f32 %v1880_v53, %v1843_v5  ;;  %1657 = vst.msk [vmem:[#allocation3 + $0x68] sm:$0xff] %vm1264_vm15, %v1641_v10  ;;  %v2147_v11 = vadd.f32 %v4398_v4, %v2131_v6 }
 0x235   : > { %v1885_v12 = vld [vmem:[#allocation3 + $0x70] sm:$0xff]  ;;  %v2066_v40 = vpop.f32.mrf.mxu1  ;;  %v2324_v16 = vpop.f32.mrf.mxu0  ;;  %v2134_v54 = vld [vmem:[#allocation3 + $0x28] sm:$0xff] }
 0x236   : > { %1912 = vst.msk [vmem:[#allocation3 + $0x48] sm:$0xff] %vm1264_vm15, %v1896_v9  ;;  %v1901_v17 = vadd.f32 %v4386_v21, %v1885_v12  ;;  %2163 = vst.msk [vmem:[#allocation3 + $0x10] sm:$0xff] %vm1264_vm15, %v2147_v11  ;;  %v2145_v18 = vadd.f32 %v2129_v14, %v2066_v40 }
 0x237   : > { %v1883_v60 = vld [vmem:[#allocation3 + $0x60] sm:$0xff]  ;;  %v4399_v22 = vpop.f32.mrf.mxu1  ;;  %v4423_v20 = vpop.f32.mrf.mxu0  ;;  %v2139_v8 = vld [vmem:[#allocation3 + $0x50] sm:$0xff] }
 0x238   : > { %1917 = vst.msk [vmem:[#allocation3 + $0x70] sm:$0xff] %vm1264_vm15, %v1901_v17  ;;  %v1899_v25 = vadd.f32 %v1883_v60, %v1856_v56  ;;  %2161 = vst.msk [vmem:[#allocation3] sm:$0xff] %vm1264_vm15, %v2145_v18  ;;  %v2148_v26 = vadd.f32 %v4399_v22, %v2132_v23 }
 0x239   : > { %v1886_v27 = vld [vmem:[#allocation3 + $0x78] sm:$0xff]  ;;  %v2069_v28 = vpop.f32.mrf.mxu1  ;;  %v2327_v24 = vpop.f32.mrf.mxu0  ;;  %v2137_v63 = vld [vmem:[#allocation3 + $0x40] sm:$0xff] }
 0x23a   : > { %1915 = vst.msk [vmem:[#allocation3 + $0x60] sm:$0xff] %vm1264_vm15, %v1899_v25  ;;  %v1902_v45 = vadd.f32 %v4387_v15, %v1886_v27  ;;  %2164 = vst.msk [vmem:[#allocation3 + $0x18] sm:$0xff] %vm1264_vm15, %v2148_v26  ;;  %v2146_v30 = vadd.f32 %v2130_v29, %v2069_v28 }
 0x23b   : > { %v1884_v32 = vld [vmem:[#allocation3 + $0x68] sm:$0xff]  ;;  %v4402_v31 = vpop.f32.mrf.mxu1  ;;  %v4426_v58 = vpop.f32.mrf.mxu0  ;;  %v2140_v35 = vld [vmem:[#allocation3 + $0x58] sm:$0xff] }
 0x23c   : > { %1918 = vst.msk [vmem:[#allocation3 + $0x78] sm:$0xff] %vm1264_vm15, %v1902_v45  ;;  %v1900_v36 = vadd.f32 %v1884_v32, %v1859_v2  ;;  %2162 = vst.msk [vmem:[#allocation3 + $0x8] sm:$0xff] %vm1264_vm15, %v2146_v30  ;;  %v2151_v38 = vadd.f32 %v4402_v31, %v2135_v1 }
 0x23d   : > { %v2389_v39 = vld [vmem:[#allocation3 + $0x10] sm:$0xff]  ;;  %v2082_v41 = vpop.f32.mrf.mxu1  ;;  %v2340_v43 = vpop.f32.mrf.mxu0  ;;  %v2138_v9 = vld [vmem:[#allocation3 + $0x48] sm:$0xff] }
 0x23e   : > { %1916 = vst.msk [vmem:[#allocation3 + $0x68] sm:$0xff] %vm1264_vm15, %v1900_v36  ;;  %v2405_v44 = vadd.f32 %v4422_v7, %v2389_v39  ;;  %2167 = vst.msk [vmem:[#allocation3 + $0x30] sm:$0xff] %vm1264_vm15, %v2151_v38  ;;  %v2149_v33 = vadd.f32 %v2133_v42, %v2082_v41 }
 0x23f   : > { %v2387_v46 = vld [vmem:[#allocation3] sm:$0xff]  ;;  %v4403_v5 = vpop.f32.mrf.mxu1  ;;  %v4427_v37 = vpop.f32.mrf.mxu0  ;;  %v2143_v17 = vld [vmem:[#allocation3 + $0x70] sm:$0xff] }
 0x240   : > { %2421 = vst.msk [vmem:[#allocation3 + $0x10] sm:$0xff] %vm1264_vm15, %v2405_v44  ;;  %v2403_v50 = vadd.f32 %v2387_v46, %v2324_v16  ;;  %2165 = vst.msk [vmem:[#allocation3 + $0x20] sm:$0xff] %vm1264_vm15, %v2149_v33  ;;  %v2152_v51 = vadd.f32 %v4403_v5, %v2136_v49 }
 0x241   : > { %v2390_v52 = vld [vmem:[#allocation3 + $0x18] sm:$0xff]  ;;  %v2085_v21 = vpop.f32.mrf.mxu1  ;;  %v2343_v13 = vpop.f32.mrf.mxu0  ;;  %v2141_v25 = vld [vmem:[#allocation3 + $0x60] sm:$0xff] }
 0x242   : > { %2419 = vst.msk [vmem:[#allocation3] sm:$0xff] %vm1264_vm15, %v2403_v50  ;;  %v2406_v47 = vadd.f32 %v4423_v20, %v2390_v52  ;;  %2168 = vst.msk [vmem:[#allocation3 + $0x38] sm:$0xff] %vm1264_vm15, %v2152_v51  ;;  %v2150_v34 = vadd.f32 %v2134_v54, %v2085_v21 }
 0x243   : > { %v2388_v55 = vld [vmem:[#allocation3 + $0x8] sm:$0xff]  ;;  %v4406_v56 = vpop.f32.mrf.mxu1  ;;  %v4430_v57 = vpop.f32.mrf.mxu0  ;;  %v2144_v45 = vld [vmem:[#allocation3 + $0x78] sm:$0xff] }
 0x244   : > { %2422 = vst.msk [vmem:[#allocation3 + $0x18] sm:$0xff] %vm1264_vm15, %v2406_v47  ;;  %v2404_v59 = vadd.f32 %v2388_v55, %v2327_v24  ;;  %2166 = vst.msk [vmem:[#allocation3 + $0x28] sm:$0xff] %vm1264_vm15, %v2150_v34  ;;  %v2155_v61 = vadd.f32 %v4406_v56, %v2139_v8 }
 0x245   : > { %v2393_v62 = vld [vmem:[#allocation3 + $0x30] sm:$0xff]  ;;  %v2098_v15 = vpop.f32.mrf.mxu1  ;;  %v2356_v48 = vpop.f32.mrf.mxu0  ;;  %v2142_v36 = vld [vmem:[#allocation3 + $0x68] sm:$0xff] }
 0x246   : > { %2420 = vst.msk [vmem:[#allocation3 + $0x8] sm:$0xff] %vm1264_vm15, %v2404_v59  ;;  %v2409_v0 = vadd.f32 %v4426_v58, %v2393_v62  ;;  %2171 = vst.msk [vmem:[#allocation3 + $0x50] sm:$0xff] %vm1264_vm15, %v2155_v61  ;;  %v2153_v3 = vadd.f32 %v2137_v63, %v2098_v15 }
 0x247   : > { %v2391_v19 = vld [vmem:[#allocation3 + $0x20] sm:$0xff]  ;;  %v4407_v2 = vpop.f32.mrf.mxu1  ;;  %v4431_v10 = vpop.f32.mrf.mxu0  ;;  %v2648_v44 = vld [vmem:[#allocation3 + $0x10] sm:$0xff] }
 0x248   : > { %2425 = vst.msk [vmem:[#allocation3 + $0x30] sm:$0xff] %vm1264_vm15, %v2409_v0  ;;  %v2407_v53 = vadd.f32 %v2391_v19, %v2340_v43  ;;  %2169 = vst.msk [vmem:[#allocation3 + $0x40] sm:$0xff] %vm1264_vm15, %v2153_v3  ;;  %v2156_v4 = vadd.f32 %v4407_v2, %v2140_v35 }
 0x249   : > { %v2394_v6 = vld [vmem:[#allocation3 + $0x38] sm:$0xff]  ;;  %v2101_v7 = vpop.f32.mrf.mxu1  ;;  %v2359_v11 = vpop.f32.mrf.mxu0  ;;  %v2646_v50 = vld [vmem:[#allocation3] sm:$0xff] }
 0x24a   : > { %2423 = vst.msk [vmem:[#allocation3 + $0x20] sm:$0xff] %vm1264_vm15, %v2407_v53  ;;  %v2410_v12 = vadd.f32 %v4427_v37, %v2394_v6  ;;  %2172 = vst.msk [vmem:[#allocation3 + $0x58] sm:$0xff] %vm1264_vm15, %v2156_v4  ;;  %v2154_v40 = vadd.f32 %v2138_v9, %v2101_v7 }
 0x24b   : > { %v2392_v14 = vld [vmem:[#allocation3 + $0x28] sm:$0xff]  ;;  %v4410_v16 = vpop.f32.mrf.mxu1  ;;  %v4434_v18 = vpop.f32.mrf.mxu0  ;;  %v2649_v47 = vld [vmem:[#allocation3 + $0x18] sm:$0xff] }
 0x24c   : > { %2426 = vst.msk [vmem:[#allocation3 + $0x38] sm:$0xff] %vm1264_vm15, %v2410_v12  ;;  %v2408_v60 = vadd.f32 %v2392_v14, %v2343_v13  ;;  %2170 = vst.msk [vmem:[#allocation3 + $0x48] sm:$0xff] %vm1264_vm15, %v2154_v40  ;;  %v2159_v22 = vadd.f32 %v4410_v16, %v2143_v17 }
 0x24d   : > { %v2397_v23 = vld [vmem:[#allocation3 + $0x50] sm:$0xff]  ;;  %v2114_v20 = vpop.f32.mrf.mxu1  ;;  %v2372_v26 = vpop.f32.mrf.mxu0  ;;  %v2647_v59 = vld [vmem:[#allocation3 + $0x8] sm:$0xff] }
 0x24e   : > { %2424 = vst.msk [vmem:[#allocation3 + $0x28] sm:$0xff] %vm1264_vm15, %v2408_v60  ;;  %v2413_v27 = vadd.f32 %v4430_v57, %v2397_v23  ;;  %2175 = vst.msk [vmem:[#allocation3 + $0x70] sm:$0xff] %vm1264_vm15, %v2159_v22  ;;  %v2157_v28 = vadd.f32 %v2141_v25, %v2114_v20 }
 0x24f   : > { %v2395_v29 = vld [vmem:[#allocation3 + $0x40] sm:$0xff]  ;;  %v4411_v24 = vpop.f32.mrf.mxu1  ;;  %v4435_v30 = vpop.f32.mrf.mxu0  ;;  %v2652_v0 = vld [vmem:[#allocation3 + $0x30] sm:$0xff] }
 0x250   : > { %2429 = vst.msk [vmem:[#allocation3 + $0x50] sm:$0xff] %vm1264_vm15, %v2413_v27  ;;  %v2411_v32 = vadd.f32 %v2395_v29, %v2356_v48  ;;  %2173 = vst.msk [vmem:[#allocation3 + $0x60] sm:$0xff] %vm1264_vm15, %v2157_v28  ;;  %v2160_v31 = vadd.f32 %v4411_v24, %v2144_v45 }
 0x251   : > { %v2398_v1 = vld [vmem:[#allocation3 + $0x58] sm:$0xff]  ;;  %v2117_v58 = vpop.f32.mrf.mxu1  ;;  %v2375_v38 = vpop.f32.mrf.mxu0  ;;  %v2650_v53 = vld [vmem:[#allocation3 + $0x20] sm:$0xff] }
 0x252   : > { %2427 = vst.msk [vmem:[#allocation3 + $0x40] sm:$0xff] %vm1264_vm15, %v2411_v32  ;;  %v2414_v39 = vadd.f32 %v4431_v10, %v2398_v1  ;;  %2176 = vst.msk [vmem:[#allocation3 + $0x78] sm:$0xff] %vm1264_vm15, %v2160_v31  ;;  %v2158_v41 = vadd.f32 %v2142_v36, %v2117_v58 }
 0x253   : > { %v2396_v42 = vld [vmem:[#allocation3 + $0x48] sm:$0xff]  ;;  %v4446_v43 = vpop.f32.mrf.mxu1  ;;  %v4470_v33 = vpop.f32.mrf.mxu0  ;;  %v2653_v12 = vld [vmem:[#allocation3 + $0x38] sm:$0xff] }
 0x254   : > { %2430 = vst.msk [vmem:[#allocation3 + $0x58] sm:$0xff] %vm1264_vm15, %v2414_v39  ;;  %v2412_v46 = vadd.f32 %v2396_v42, %v2359_v11  ;;  %2174 = vst.msk [vmem:[#allocation3 + $0x68] sm:$0xff] %vm1264_vm15, %v2158_v41  ;;  %v2664_v5 = vadd.f32 %v4446_v43, %v2648_v44 }
 0x255   : > { %v2401_v49 = vld [vmem:[#allocation3 + $0x70] sm:$0xff]  ;;  %v2583_v37 = vpop.f32.mrf.mxu1  ;;  %v2841_v51 = vpop.f32.mrf.mxu0  ;;  %v2651_v60 = vld [vmem:[#allocation3 + $0x28] sm:$0xff] }
 0x256   : > { %2428 = vst.msk [vmem:[#allocation3 + $0x48] sm:$0xff] %vm1264_vm15, %v2412_v46  ;;  %v2417_v52 = vadd.f32 %v4434_v18, %v2401_v49  ;;  %2680 = vst.msk [vmem:[#allocation3 + $0x10] sm:$0xff] %vm1264_vm15, %v2664_v5  ;;  %v2662_v21 = vadd.f32 %v2646_v50, %v2583_v37 }
 0x257   : > { %v2399_v54 = vld [vmem:[#allocation3 + $0x60] sm:$0xff]  ;;  %v4447_v13 = vpop.f32.mrf.mxu1  ;;  %v4471_v34 = vpop.f32.mrf.mxu0  ;;  %v2656_v27 = vld [vmem:[#allocation3 + $0x50] sm:$0xff] }
 0x258   : > { %2433 = vst.msk [vmem:[#allocation3 + $0x70] sm:$0xff] %vm1264_vm15, %v2417_v52  ;;  %v2415_v55 = vadd.f32 %v2399_v54, %v2372_v26  ;;  %2678 = vst.msk [vmem:[#allocation3] sm:$0xff] %vm1264_vm15, %v2662_v21  ;;  %v2665_v56 = vadd.f32 %v4447_v13, %v2649_v47 }
 0x259   : > { %v2402_v8 = vld [vmem:[#allocation3 + $0x78] sm:$0xff]  ;;  %v2586_v57 = vpop.f32.mrf.mxu1  ;;  %v2844_v61 = vpop.f32.mrf.mxu0  ;;  %v2654_v32 = vld [vmem:[#allocation3 + $0x40] sm:$0xff] }
 0x25a   : > { %2431 = vst.msk [vmem:[#allocation3 + $0x60] sm:$0xff] %vm1264_vm15, %v2415_v55  ;;  %v2418_v62 = vadd.f32 %v4435_v30, %v2402_v8  ;;  %2681 = vst.msk [vmem:[#allocation3 + $0x18] sm:$0xff] %vm1264_vm15, %v2665_v56  ;;  %v2663_v15 = vadd.f32 %v2647_v59, %v2586_v57 }
 0x25b   : > { %v2400_v63 = vld [vmem:[#allocation3 + $0x68] sm:$0xff]  ;;  %v4450_v48 = vpop.f32.mrf.mxu1  ;;  %v4474_v3 = vpop.f32.mrf.mxu0  ;;  %v2657_v39 = vld [vmem:[#allocation3 + $0x58] sm:$0xff] }
 0x25c   : > { %2434 = vst.msk [vmem:[#allocation3 + $0x78] sm:$0xff] %vm1264_vm15, %v2418_v62  ;;  %v2416_v19 = vadd.f32 %v2400_v63, %v2375_v38  ;;  %2679 = vst.msk [vmem:[#allocation3 + $0x8] sm:$0xff] %vm1264_vm15, %v2663_v15  ;;  %v2668_v2 = vadd.f32 %v4450_v48, %v2652_v0 }
 0x25d   : > { %v2906_v35 = vld [vmem:[#allocation3 + $0x10] sm:$0xff]  ;;  %v2599_v10 = vpop.f32.mrf.mxu1  ;;  %v2857_v4 = vpop.f32.mrf.mxu0  ;;  %v2655_v46 = vld [vmem:[#allocation3 + $0x48] sm:$0xff] }
 0x25e   : > { %2432 = vst.msk [vmem:[#allocation3 + $0x68] sm:$0xff] %vm1264_vm15, %v2416_v19  ;;  %v2922_v6 = vadd.f32 %v4470_v33, %v2906_v35  ;;  %2684 = vst.msk [vmem:[#allocation3 + $0x30] sm:$0xff] %vm1264_vm15, %v2668_v2  ;;  %v2666_v7 = vadd.f32 %v2650_v53, %v2599_v10 }
 0x25f   : > { %v2904_v9 = vld [vmem:[#allocation3] sm:$0xff]  ;;  %v4451_v11 = vpop.f32.mrf.mxu1  ;;  %v4475_v40 = vpop.f32.mrf.mxu0  ;;  %v2660_v52 = vld [vmem:[#allocation3 + $0x70] sm:$0xff] }
 0x260   : > { %2938 = vst.msk [vmem:[#allocation3 + $0x10] sm:$0xff] %vm1264_vm15, %v2922_v6  ;;  %v2920_v14 = vadd.f32 %v2904_v9, %v2841_v51  ;;  %2682 = vst.msk [vmem:[#allocation3 + $0x20] sm:$0xff] %vm1264_vm15, %v2666_v7  ;;  %v2669_v16 = vadd.f32 %v4451_v11, %v2653_v12 }
 0x261   : > { %v2907_v17 = vld [vmem:[#allocation3 + $0x18] sm:$0xff]  ;;  %v2602_v18 = vpop.f32.mrf.mxu1  ;;  %v2860_v22 = vpop.f32.mrf.mxu0  ;;  %v2658_v55 = vld [vmem:[#allocation3 + $0x60] sm:$0xff] }
 0x262   : > { %2936 = vst.msk [vmem:[#allocation3] sm:$0xff] %vm1264_vm15, %v2920_v14  ;;  %v2923_v23 = vadd.f32 %v4471_v34, %v2907_v17  ;;  %2685 = vst.msk [vmem:[#allocation3 + $0x38] sm:$0xff] %vm1264_vm15, %v2669_v16  ;;  %v2667_v20 = vadd.f32 %v2651_v60, %v2602_v18 }
 0x263   : > { %v2905_v25 = vld [vmem:[#allocation3 + $0x8] sm:$0xff]  ;;  %v4454_v26 = vpop.f32.mrf.mxu1  ;;  %v4478_v28 = vpop.f32.mrf.mxu0  ;;  %v2661_v62 = vld [vmem:[#allocation3 + $0x78] sm:$0xff] }
 0x264   : > { %2939 = vst.msk [vmem:[#allocation3 + $0x18] sm:$0xff] %vm1264_vm15, %v2923_v23  ;;  %v2921_v29 = vadd.f32 %v2905_v25, %v2844_v61  ;;  %2683 = vst.msk [vmem:[#allocation3 + $0x28] sm:$0xff] %vm1264_vm15, %v2667_v20  ;;  %v2672_v24 = vadd.f32 %v4454_v26, %v2656_v27 }
 0x265   : > { %v2910_v45 = vld [vmem:[#allocation3 + $0x30] sm:$0xff]  ;;  %v2615_v30 = vpop.f32.mrf.mxu1  ;;  %v2873_v31 = vpop.f32.mrf.mxu0  ;;  %v2659_v19 = vld [vmem:[#allocation3 + $0x68] sm:$0xff] }
 0x266   : > { %2937 = vst.msk [vmem:[#allocation3 + $0x8] sm:$0xff] %vm1264_vm15, %v2921_v29  ;;  %v2926_v1 = vadd.f32 %v4474_v3, %v2910_v45  ;;  %2688 = vst.msk [vmem:[#allocation3 + $0x50] sm:$0xff] %vm1264_vm15, %v2672_v24  ;;  %v2670_v58 = vadd.f32 %v2654_v32, %v2615_v30 }
 0x267   : > { %v2908_v36 = vld [vmem:[#allocation3 + $0x20] sm:$0xff]  ;;  %v4455_v38 = vpop.f32.mrf.mxu1  ;;  %v4479_v41 = vpop.f32.mrf.mxu0  ;;  %v3164_v6 = vld [vmem:[#allocation3 + $0x10] sm:$0xff] }
 0x268   : > { %2942 = vst.msk [vmem:[#allocation3 + $0x30] sm:$0xff] %vm1264_vm15, %v2926_v1  ;;  %v2924_v42 = vadd.f32 %v2908_v36, %v2857_v4  ;;  %2686 = vst.msk [vmem:[#allocation3 + $0x40] sm:$0xff] %vm1264_vm15, %v2670_v58  ;;  %v2673_v43 = vadd.f32 %v4455_v38, %v2657_v39 }
 0x269   : > { %v2911_v44 = vld [vmem:[#allocation3 + $0x38] sm:$0xff]  ;;  %v2618_v33 = vpop.f32.mrf.mxu1  ;;  %v2876_v5 = vpop.f32.mrf.mxu0  ;;  %v3162_v14 = vld [vmem:[#allocation3] sm:$0xff] }
 0x26a   : > { %2940 = vst.msk [vmem:[#allocation3 + $0x20] sm:$0xff] %vm1264_vm15, %v2924_v42  ;;  %v2927_v49 = vadd.f32 %v4475_v40, %v2911_v44  ;;  %2689 = vst.msk [vmem:[#allocation3 + $0x58] sm:$0xff] %vm1264_vm15, %v2673_v43  ;;  %v2671_v37 = vadd.f32 %v2655_v46, %v2618_v33 }
 0x26b   : > { %v2909_v50 = vld [vmem:[#allocation3 + $0x28] sm:$0xff]  ;;  %v4458_v51 = vpop.f32.mrf.mxu1  ;;  %v4482_v21 = vpop.f32.mrf.mxu0  ;;  %v3165_v23 = vld [vmem:[#allocation3 + $0x18] sm:$0xff] }
 0x26c   : > { %2943 = vst.msk [vmem:[#allocation3 + $0x38] sm:$0xff] %vm1264_vm15, %v2927_v49  ;;  %v2925_v54 = vadd.f32 %v2909_v50, %v2860_v22  ;;  %2687 = vst.msk [vmem:[#allocation3 + $0x48] sm:$0xff] %vm1264_vm15, %v2671_v37  ;;  %v2676_v13 = vadd.f32 %v4458_v51, %v2660_v52 }
 0x26d   : > { %v2914_v47 = vld [vmem:[#allocation3 + $0x50] sm:$0xff]  ;;  %v2631_v34 = vpop.f32.mrf.mxu1  ;;  %v2889_v56 = vpop.f32.mrf.mxu0  ;;  %v3163_v29 = vld [vmem:[#allocation3 + $0x8] sm:$0xff] }
 0x26e   : > { %2941 = vst.msk [vmem:[#allocation3 + $0x28] sm:$0xff] %vm1264_vm15, %v2925_v54  ;;  %v2930_v8 = vadd.f32 %v4478_v28, %v2914_v47  ;;  %2692 = vst.msk [vmem:[#allocation3 + $0x70] sm:$0xff] %vm1264_vm15, %v2676_v13  ;;  %v2674_v57 = vadd.f32 %v2658_v55, %v2631_v34 }
 0x26f   : > { %v2912_v59 = vld [vmem:[#allocation3 + $0x40] sm:$0xff]  ;;  %v4459_v61 = vpop.f32.mrf.mxu1  ;;  %v4483_v15 = vpop.f32.mrf.mxu0  ;;  %v3168_v1 = vld [vmem:[#allocation3 + $0x30] sm:$0xff] }
 0x270   : > { %2946 = vst.msk [vmem:[#allocation3 + $0x50] sm:$0xff] %vm1264_vm15, %v2930_v8  ;;  %v2928_v63 = vadd.f32 %v2912_v59, %v2873_v31  ;;  %2690 = vst.msk [vmem:[#allocation3 + $0x60] sm:$0xff] %vm1264_vm15, %v2674_v57  ;;  %v2677_v48 = vadd.f32 %v4459_v61, %v2661_v62  ;;  %v6091_v61 = vld [vmem:[%s6433_s15] ss:$0 sm:$0xff] }
 0x271   : > { %v2915_v0 = vld [vmem:[#allocation3 + $0x58] sm:$0xff]  ;;  %v2634_v3 = vpop.f32.mrf.mxu1  ;;  %v2892_v2 = vpop.f32.mrf.mxu0  ;;  %v3166_v42 = vld [vmem:[#allocation3 + $0x20] sm:$0xff] }
 0x272   : > { %2944 = vst.msk [vmem:[#allocation3 + $0x40] sm:$0xff] %vm1264_vm15, %v2928_v63  ;;  %v2931_v35 = vadd.f32 %v4479_v41, %v2915_v0  ;;  %2693 = vst.msk [vmem:[#allocation3 + $0x78] sm:$0xff] %vm1264_vm15, %v2677_v48  ;;  %v2675_v10 = vadd.f32 %v2659_v19, %v2634_v3  ;;  %v6096_v0 = vld [vmem:[%s6434_s27] ss:$0 sm:$0xff] }
 0x273   : > { %v2913_v53 = vld [vmem:[#allocation3 + $0x48] sm:$0xff]  ;;  %v4494_v4 = vpop.f32.mrf.mxu1  ;;  %v4518_v7 = vpop.f32.mrf.mxu0  ;;  %v3169_v49 = vld [vmem:[#allocation3 + $0x38] sm:$0xff] }
 0x274   : > { %2947 = vst.msk [vmem:[#allocation3 + $0x58] sm:$0xff] %vm1264_vm15, %v2931_v35  ;;  %v2929_v9 = vadd.f32 %v2913_v53, %v2876_v5  ;;  %2691 = vst.msk [vmem:[#allocation3 + $0x68] sm:$0xff] %vm1264_vm15, %v2675_v10  ;;  %v3180_v11 = vadd.f32 %v4494_v4, %v3164_v6  ;;  %v6102_v6 = vld [vmem:[%s5523_s20 + $0x8] sm:$0xff]  }
 0x275   : > { %v2918_v12 = vld [vmem:[#allocation3 + $0x70] sm:$0xff]  ;;  %v3099_v40 = vpop.f32.mrf.mxu1  ;;  %v3358_v16 = vpop.f32.mrf.mxu0  ;;  %v3167_v54 = vld [vmem:[#allocation3 + $0x28] sm:$0xff] }
 0x276   : > { %2945 = vst.msk [vmem:[#allocation3 + $0x48] sm:$0xff] %vm1264_vm15, %v2929_v9  ;;  %v2934_v17 = vadd.f32 %v4482_v21, %v2918_v12  ;;  %3196 = vst.msk [vmem:[#allocation3 + $0x10] sm:$0xff] %vm1264_vm15, %v3180_v11  ;;  %v3178_v18 = vadd.f32 %v3162_v14, %v3099_v40  ;;  %v6110_v12 = vstv %s6080_s3 }
 0x277   : > { %v2916_v60 = vld [vmem:[#allocation3 + $0x60] sm:$0xff]  ;;  %v4495_v22 = vpop.f32.mrf.mxu1  ;;  %v4519_v20 = vpop.f32.mrf.mxu0  ;;  %v3172_v8 = vld [vmem:[#allocation3 + $0x50] sm:$0xff] }
 0x278   : > { %2950 = vst.msk [vmem:[#allocation3 + $0x70] sm:$0xff] %vm1264_vm15, %v2934_v17  ;;  %v2932_v25 = vadd.f32 %v2916_v60, %v2889_v56  ;;  %3194 = vst.msk [vmem:[#allocation3] sm:$0xff] %vm1264_vm15, %v3178_v18  ;;  %v3181_v26 = vadd.f32 %v4495_v22, %v3165_v23  ;;  %v6115_v23 = vld [vmem:[%s5523_s20 + $0x18] sm:$0xff]  }
 0x279   : > { %v2919_v27 = vld [vmem:[#allocation3 + $0x78] sm:$0xff]  ;;  %v3102_v28 = vpop.f32.mrf.mxu1  ;;  %v3361_v24 = vpop.f32.mrf.mxu0  ;;  %v3170_v63 = vld [vmem:[#allocation3 + $0x40] sm:$0xff] }
 0x27a   : > { %2948 = vst.msk [vmem:[#allocation3 + $0x60] sm:$0xff] %vm1264_vm15, %v2932_v25  ;;  %v2935_v45 = vadd.f32 %v4483_v15, %v2919_v27  ;;  %3197 = vst.msk [vmem:[#allocation3 + $0x18] sm:$0xff] %vm1264_vm15, %v3181_v26  ;;  %v3179_v30 = vadd.f32 %v3163_v29, %v3102_v28  ;;  %v4175_v27 = vunpack.c.l.bf16 %v6102_v6 }
 0x27b   : > { %v2917_v32 = vld [vmem:[#allocation3 + $0x68] sm:$0xff]  ;;  %v4498_v31 = vpop.f32.mrf.mxu1  ;;  %v4522_v58 = vpop.f32.mrf.mxu0  ;;  %v3173_v53 = vld [vmem:[#allocation3 + $0x58] sm:$0xff] }
 0x27c   : > { %2951 = vst.msk [vmem:[#allocation3 + $0x78] sm:$0xff] %vm1264_vm15, %v2935_v45  ;;  %v2933_v36 = vadd.f32 %v2917_v32, %v2892_v2  ;;  %3195 = vst.msk [vmem:[#allocation3 + $0x8] sm:$0xff] %vm1264_vm15, %v3179_v30  ;;  %v3184_v38 = vadd.f32 %v4498_v31, %v3168_v1 }
 0x27d   : > { %v3423_v39 = vld [vmem:[#allocation3 + $0x10] sm:$0xff]  ;;  %v3115_v41 = vpop.f32.mrf.mxu1  ;;  %v3374_v43 = vpop.f32.mrf.mxu0  ;;  %v3171_v17 = vld [vmem:[#allocation3 + $0x48] sm:$0xff] }
 0x27e   : > { %2949 = vst.msk [vmem:[#allocation3 + $0x68] sm:$0xff] %vm1264_vm15, %v2933_v36  ;;  %v3439_v44 = vadd.f32 %v4518_v7, %v3423_v39  ;;  %3200 = vst.msk [vmem:[#allocation3 + $0x30] sm:$0xff] %vm1264_vm15, %v3184_v38  ;;  %v3182_v33 = vadd.f32 %v3166_v42, %v3115_v41  ;;  %v6105_v7 = vld [vmem:[%s5523_s20] sm:$0xff]   ;;  %v4183_v39 = vunpack.c.l.bf16 %v6115_v23 }
 0x27f   : > { %v3421_v46 = vld [vmem:[#allocation3] sm:$0xff]  ;;  %v4499_v5 = vpop.f32.mrf.mxu1  ;;  %v4523_v37 = vpop.f32.mrf.mxu0  ;;  %v4171_v28 = vunpack.c.l.bf16 %v6105_v7  ;;  %v4172_v45 = vunpack.c.h.bf16 %v6105_v7  ;;  %v3176_v36 = vld [vmem:[#allocation3 + $0x70] sm:$0xff] }
 0x280   : > { %3455 = vst.msk [vmem:[#allocation3 + $0x10] sm:$0xff] %vm1264_vm15, %v3439_v44  ;;  %v3437_v50 = vadd.f32 %v3421_v46, %v3358_v16  ;;  %3198 = vst.msk [vmem:[#allocation3 + $0x20] sm:$0xff] %vm1264_vm15, %v3182_v33  ;;  %v3185_v51 = vadd.f32 %v4499_v5, %v3169_v49 }
 0x281   : > { %v3424_v52 = vld [vmem:[#allocation3 + $0x18] sm:$0xff]  ;;  %v3118_v21 = vpop.f32.mrf.mxu1  ;;  %v6082_v13 = vpop.f32.mrf.mxu0 }
 0x282   : > { %3453 = vst.msk [vmem:[#allocation3] sm:$0xff] %vm1264_vm15, %v3437_v50  ;;  %v3440_v47 = vadd.f32 %v4519_v20, %v3424_v52  ;;  %3201 = vst.msk [vmem:[#allocation3 + $0x38] sm:$0xff] %vm1264_vm15, %v3185_v51  ;;  %v3183_v34 = vadd.f32 %v3167_v54, %v3118_v21  ;;  %v6119_v20 = vld [vmem:[%s5523_s20 + $0x10] sm:$0xff]   ;;  %v3174_v50 = vld [vmem:[#allocation3 + $0x60] sm:$0xff] }
 0x283   : > { %v3422_v55 = vld [vmem:[#allocation3 + $0x8] sm:$0xff]  ;;  %v4502_v56 = vpop.f32.mrf.mxu1  ;;  %v4526_v48 = vpop.f32.mrf.mxu0  ;;  %v4179_v41 = vunpack.c.l.bf16 %v6119_v20 }
 0x284   : > { %3456 = vst.msk [vmem:[#allocation3 + $0x18] sm:$0xff] %vm1264_vm15, %v3440_v47  ;;  %v3438_v57 = vadd.f32 %v3422_v55, %v3361_v24  ;;  %3199 = vst.msk [vmem:[#allocation3 + $0x28] sm:$0xff] %vm1264_vm15, %v3183_v34  ;;  %v3188_v59 = vadd.f32 %v4502_v56, %v3172_v8  ;;  %v4176_v24 = vunpack.c.h.bf16 %v6102_v6 }
 0x285   : > { %v3427_v62 = vld [vmem:[#allocation3 + $0x30] sm:$0xff]  ;;  %v3131_v15 = vpop.f32.mrf.mxu1  ;;  %v3390_v18 = vpop.f32.mrf.mxu0 }
 0x286   : > { %3454 = vst.msk [vmem:[#allocation3 + $0x8] sm:$0xff] %vm1264_vm15, %v3438_v57  ;;  %v3443_v3 = vadd.f32 %v4522_v58, %v3427_v62  ;;  %3204 = vst.msk [vmem:[#allocation3 + $0x50] sm:$0xff] %vm1264_vm15, %v3188_v59  ;;  %v3186_v19 = vadd.f32 %v3170_v63, %v3131_v15 }
 0x287   : > { %v3471_v2 = vld [vmem:[#allocation3 + $0x10] sm:$0xff]  ;;  %v3425_v35 = vld [vmem:[#allocation3 + $0x20] sm:$0xff]  ;;  %v4503_v10 = vpop.f32.mrf.mxu1  ;;  %v4527_v33 = vpop.f32.mrf.mxu0 }
 0x288   : > { %v3494_v4 = vmul.f32 %v6091_v61, %v3471_v2  ;;  %3459 = vst.msk [vmem:[#allocation3 + $0x30] sm:$0xff] %vm1264_vm15, %v3443_v3  ;;  %v3441_v9 = vadd.f32 %v3425_v35, %v3374_v43  ;;  %3202 = vst.msk [vmem:[#allocation3 + $0x40] sm:$0xff] %vm1264_vm15, %v3186_v19  ;;  %v3189_v11 = vadd.f32 %v4503_v10, %v3173_v53 }
 0x289   : > { %v3469_v40 = vld [vmem:[#allocation3] sm:$0xff]  ;;  %v3428_v14 = vld [vmem:[#allocation3 + $0x38] sm:$0xff]  ;;  %v3134_v16 = vpop.f32.mrf.mxu1 }
 0x28a   : > { %v3517_v60 = vadd.f32 %v6096_v0, %v3494_v4  ;;  %v3492_v22 = vmul.f32 %v6091_v61, %v3469_v40  ;;  %3457 = vst.msk [vmem:[#allocation3 + $0x20] sm:$0xff] %vm1264_vm15, %v3441_v9  ;;  %v3444_v25 = vadd.f32 %v4523_v37, %v3428_v14  ;;  %3205 = vst.msk [vmem:[#allocation3 + $0x58] sm:$0xff] %vm1264_vm15, %v3189_v11 }
 0x28b   : > { %v3187_v26 = vadd.f32 %v3171_v17, %v3134_v16  ;;  %v3472_v29 = vld [vmem:[#allocation3 + $0x18] sm:$0xff]  ;;  %v3426_v30 = vld [vmem:[#allocation3 + $0x28] sm:$0xff]  ;;  %v4506_v32 = vpop.f32.mrf.mxu1 }
 0x28c   : > { %vm3534_vm1 = vcmp.ge.f32.partialorder %v3517_v60, 0.0  ;;  %v3551_v31 = vmul.f32 %v6110_v12, %v3517_v60  ;;  %v3515_v1 = vadd.f32 %v6096_v0, %v3492_v22  ;;  %v3495_v58 = vmul.f32 %v6091_v61, %v3472_v29  ;;  %3460 = vst.msk [vmem:[#allocation3 + $0x38] sm:$0xff] %vm1264_vm15, %v3444_v25  ;;  %v3177_v17 = vld [vmem:[#allocation3 + $0x78] sm:$0xff] }
 0x28d   : > { %3203 = vst.msk [vmem:[#allocation3 + $0x48] sm:$0xff] %vm1264_vm15, %v3187_v26  ;;  %v3470_v38 = vld [vmem:[#allocation3 + $0x8] sm:$0xff]  ;;  %v3442_v42 = vadd.f32 %v3426_v30, %v6082_v13  ;;  %v3431_v43 = vld [vmem:[#allocation3 + $0x50] sm:$0xff]  ;;  %v3192_v44 = vadd.f32 %v4506_v32, %v3176_v36  ;;  %v3147_v46 = vpop.f32.mrf.mxu1 }
 0x28e   : > { %v3567_v5 = vsel %vm3534_vm1, %v3517_v60, %v3551_v31  ;;  %vm3532_vm2 = vcmp.ge.f32.partialorder %v3515_v1, 0.0  ;;  %v3549_v49 = vmul.f32 %v6110_v12, %v3515_v1  ;;  %v3518_v37 = vadd.f32 %v6096_v0, %v3495_v58 }
 0x28f   : > { %v3615_v51 = vadd.f32 %v4175_v27, %v3567_v5  ;;  %v3493_v52 = vmul.f32 %v6091_v61, %v3470_v38  ;;  %v3475_v21 = vld [vmem:[#allocation3 + $0x30] sm:$0xff]  ;;  %3458 = vst.msk [vmem:[#allocation3 + $0x28] sm:$0xff] %vm1264_vm15, %v3442_v42  ;;  %v3447_v54 = vadd.f32 %v4526_v48, %v3431_v43  ;;  %v3429_v47 = vld [vmem:[#allocation3 + $0x40] sm:$0xff]  ;;  %3208 = vst.msk [vmem:[#allocation3 + $0x70] sm:$0xff] %vm1264_vm15, %v3192_v44  ;;  %v3393_v48 = vpop.f32.mrf.mxu0  ;;  %v4507_v3 = vpop.f32.mrf.mxu1  ;;  %v4184_v42 = vunpack.c.h.bf16 %v6115_v23 }
 0x290   : > { %v3190_v13 = vadd.f32 %v3174_v50, %v3147_v46  ;;  %v3565_v34 = vsel %vm3532_vm2, %v3515_v1, %v3549_v49  ;;  %vm3535_vm3 = vcmp.ge.f32.partialorder %v3518_v37, 0.0  ;;  %v3552_v55 = vmul.f32 %v6110_v12, %v3518_v37  ;;  %v4205_v50 = vld [vmem:[%s5523_s20 + $0x28] sm:$0xff]  }
 0x291   : > { %v3498_v56 = vmul.f32 %v6091_v61, %v3475_v21  ;;  %v4154_v8 = vpack.c.bf16 %v3615_v51, %v3615_v51  ;;  %v3613_v57 = vadd.f32 %v4171_v28, %v3565_v34  ;;  %v3516_v59 = vadd.f32 %v6096_v0, %v3493_v52  ;;  %v3473_v62 = vld [vmem:[#allocation3 + $0x20] sm:$0xff]  ;;  %3463 = vst.msk [vmem:[#allocation3 + $0x50] sm:$0xff] %vm1264_vm15, %v3447_v54  ;;  %v3432_v63 = vld [vmem:[#allocation3 + $0x58] sm:$0xff]  ;;  %v4530_v26 = vpop.f32.mrf.mxu0  ;;  %v3150_v27 = vpop.f32.mrf.mxu1 }
 0x292   : > { %v3445_v15 = vadd.f32 %v3429_v47, %v3390_v18  ;;  %3206 = vst.msk [vmem:[#allocation3 + $0x60] sm:$0xff] %vm1264_vm15, %v3190_v13  ;;  %v3568_v19 = vsel %vm3535_vm3, %v3518_v37, %v3552_v55  ;;  %v3496_v35 = vmul.f32 %v6091_v61, %v3473_v62  ;;  %v3448_v10 = vadd.f32 %v4527_v33, %v3432_v63  ;;  %v6178_v52 = vld [vmem:[%s5523_s20 + $0x20] sm:$0xff]  }
 0x293   : > { %v3521_v2 = vadd.f32 %v6096_v0, %v3498_v56  ;;  %3695 = vst.msk [vmem:[%s5873_s4 + $0x8] sm:$0xf] %vm686_vm0, %v4154_v8  ;;  %v4152_v53 = vpack.c.bf16 %v3613_v57, %v3613_v57  ;;  %v3616_v4 = vadd.f32 %v4176_v24, %v3568_v19  ;;  %vm3533_vm4 = vcmp.ge.f32.partialorder %v3516_v59, 0.0  ;;  %v3476_v9 = vld [vmem:[#allocation3 + $0x38] sm:$0xff]  ;;  %v3406_v49 = vpop.f32.mrf.mxu0 }
 0x294   : > { %v3550_v6 = vmul.f32 %v6110_v12, %v3516_v59  ;;  %3461 = vst.msk [vmem:[#allocation3 + $0x40] sm:$0xff] %vm1264_vm15, %v3445_v15  ;;  %v3430_v11 = vld [vmem:[#allocation3 + $0x48] sm:$0xff]  ;;  %v3519_v14 = vadd.f32 %v6096_v0, %v3496_v35  ;;  %v3499_v16 = vmul.f32 %v6091_v61, %v3476_v9  ;;  %3464 = vst.msk [vmem:[#allocation3 + $0x58] sm:$0xff] %vm1264_vm15, %v3448_v10  ;;  %v4180_v47 = vunpack.c.h.bf16 %v6119_v20 }
 0x295   : > { %vm3538_vm5 = vcmp.ge.f32.partialorder %v3521_v2, 0.0  ;;  %v3555_v40 = vmul.f32 %v6110_v12, %v3521_v2  ;;  %3693 = vst.msk [vmem:[%s5873_s4] sm:$0xf] %vm686_vm0, %v4152_v53  ;;  %v4155_v18 = vpack.c.bf16 %v3616_v4, %v3616_v4  ;;  %v3446_v22 = vadd.f32 %v3430_v11, %v3393_v48  ;;  %v4531_v19 = vpop.f32.mrf.mxu0 }
 0x296   : > { %v3566_v60 = vsel %vm3533_vm4, %v3516_v59, %v3550_v6  ;;  %v3193_v25 = vadd.f32 %v4507_v3, %v3177_v17  ;;  %vm3536_vm6 = vcmp.ge.f32.partialorder %v3519_v14, 0.0  ;;  %v3553_v24 = vmul.f32 %v6110_v12, %v3519_v14  ;;  %v3474_v30 = vld [vmem:[#allocation3 + $0x28] sm:$0xff]  ;;  %v3435_v32 = vld [vmem:[#allocation3 + $0x70] sm:$0xff] }
 0x297   : > { %v3614_v28 = vadd.f32 %v4172_v45, %v3566_v60  ;;  %v3571_v29 = vsel %vm3538_vm5, %v3521_v2, %v3555_v40  ;;  %3696 = vst.msk [vmem:[%s5873_s4 + $0xc] sm:$0xf] %vm686_vm0, %v4155_v18  ;;  %v3522_v1 = vadd.f32 %v6096_v0, %v3499_v16  ;;  %v3497_v58 = vmul.f32 %v6091_v61, %v3474_v30  ;;  %v3175_v45 = vld [vmem:[#allocation3 + $0x68] sm:$0xff] }
 0x298   : > { %v3619_v31 = vadd.f32 %v4183_v39, %v3571_v29  ;;  %3462 = vst.msk [vmem:[#allocation3 + $0x48] sm:$0xff] %vm1264_vm15, %v3446_v22  ;;  %3209 = vst.msk [vmem:[#allocation3 + $0x78] sm:$0xff] %vm1264_vm15, %v3193_v25  ;;  %v3451_v7 = vadd.f32 %v4530_v26, %v3435_v32  ;;  %v3569_v38 = vsel %vm3536_vm6, %v3519_v14, %v3553_v24  ;;  %v3479_v43 = vld [vmem:[#allocation3 + $0x50] sm:$0xff]  ;;  %v4191_v57 = vunpack.c.l.bf16 %v4205_v50  ;;  %v4207_v24 = vld [vmem:[%s5523_s20 + $0x38] sm:$0xff]  }
 0x299   : > { %v4153_v36 = vpack.c.bf16 %v3614_v28, %v3614_v28  ;;  %v3191_v44 = vadd.f32 %v3175_v45, %v3150_v27  ;;  %v3433_v39 = vld [vmem:[#allocation3 + $0x60] sm:$0xff]  ;;  %v3617_v46 = vadd.f32 %v4179_v41, %v3569_v38  ;;  %vm3539_vm7 = vcmp.ge.f32.partialorder %v3522_v1, 0.0  ;;  %v3409_v27 = vpop.f32.mrf.mxu0 }
 0x29a   : > { %v4158_v33 = vpack.c.bf16 %v3619_v31, %v3619_v31  ;;  %v3556_v5 = vmul.f32 %v6110_v12, %v3522_v1  ;;  %3467 = vst.msk [vmem:[#allocation3 + $0x70] sm:$0xff] %vm1264_vm15, %v3451_v7  ;;  %v3520_v37 = vadd.f32 %v6096_v0, %v3497_v58  ;;  %v3502_v23 = vmul.f32 %v6091_v61, %v3479_v43  ;;  %v4206_v43 = vld [vmem:[%s5523_s20 + $0x30] sm:$0xff]   ;;  %s5115_s20 = smov [#allocation14]  }
 0x29b   : > { %3694 = vst.msk [vmem:[%s5873_s4 + $0x4] sm:$0xf] %vm686_vm0, %v4153_v36  ;;  %v3477_v51 = vld [vmem:[#allocation3 + $0x40] sm:$0xff]  ;;  %v3449_v41 = vadd.f32 %v3433_v39, %v3406_v49  ;;  %v4156_v21 = vpack.c.bf16 %v3617_v46, %v3617_v46  ;;  %v3480_v34 = vld [vmem:[#allocation3 + $0x58] sm:$0xff]  ;;  %v4187_v62 = vunpack.c.l.bf16 %v6178_v52  ;;  %v4192_v6 = vunpack.c.h.bf16 %v4205_v50  ;;  %s4948_s25 = sshll.u32 %s5115_s20, 4  ;;  %s4949_s25 = int_to_ptr.vmem [resolvable:$false] %s4948_s25 }
 0x29c   : > { %3207 = vst.msk [vmem:[#allocation3 + $0x68] sm:$0xff] %vm1264_vm15, %v3191_v44  ;;  %v3572_v54 = vsel %vm3539_vm7, %v3522_v1, %v3556_v5  ;;  %v3500_v13 = vmul.f32 %v6091_v61, %v3477_v51  ;;  %vm3537_vm8 = vcmp.ge.f32.partialorder %v3520_v37, 0.0  ;;  %v3554_v56 = vmul.f32 %v6110_v12, %v3520_v37  ;;  %s4950_s26 = scalar_lea.vmem %s4949_s25, 2048  ;;  %p4951_p2 = scmp.lt.s32.totalorder %s6243_s2, %s4949_s25 }
 0x29d   : > { %3699 = vst.msk [vmem:[%s5873_s4 + $0x18] sm:$0xf] %vm686_vm0, %v4158_v33  ;;  %v3620_v55 = vadd.f32 %v4184_v42, %v3572_v54  ;;  %v3525_v8 = vadd.f32 %v6096_v0, %v3502_v23  ;;  %3697 = vst.msk [vmem:[%s5873_s4 + $0x10] sm:$0xf] %vm686_vm0, %v4156_v21  ;;  %v3503_v20 = vmul.f32 %v6091_v61, %v3480_v34  ;;  %v4188_v29 = vunpack.c.h.bf16 %v6178_v52  ;;  %p4952_p10 = scmp.lt.s32.totalorder %s4950_s26, %s4944_s1 }
 0x29e   : > { %3465 = vst.msk [vmem:[#allocation3 + $0x60] sm:$0xff] %vm1264_vm15, %v3449_v41  ;;  %v3523_v59 = vadd.f32 %v6096_v0, %v3500_v13  ;;  %v3570_v63 = vsel %vm3537_vm8, %v3520_v37, %v3554_v56  ;;  %v4199_v42 = vunpack.c.l.bf16 %v4207_v24  ;;  %v4195_v37 = vunpack.c.l.bf16 %v4206_v43 }
 0x29f   : > { %v4159_v15 = vpack.c.bf16 %v3620_v55, %v3620_v55  ;;  %vm3542_vm9 = vcmp.ge.f32.partialorder %v3525_v8, 0.0  ;;  %v3559_v48 = vmul.f32 %v6110_v12, %v3525_v8  ;;  %v3478_v3 = vld [vmem:[#allocation3 + $0x48] sm:$0xff]  ;;  %v3436_v2 = vld [vmem:[#allocation3 + $0x78] sm:$0xff]  ;;  %v3618_v35 = vadd.f32 %v4180_v47, %v3570_v63  ;;  %p4953_p12 = por %p4952_p10, %p4951_p2 }
 0x2a0   : > { %vm3540_vm10 = vcmp.ge.f32.partialorder %v3523_v59, 0.0  ;;  %v3557_v10 = vmul.f32 %v6110_v12, %v3523_v59  ;;  %v3526_v53 = vadd.f32 %v6096_v0, %v3503_v20  ;;  %v3501_v9 = vmul.f32 %v6091_v61, %v3478_v3 }
 0x2a1   : > { %3700 = vst.msk [vmem:[%s5873_s4 + $0x1c] sm:$0xf] %vm686_vm0, %v4159_v15  ;;  %v3575_v4 = vsel %vm3542_vm9, %v3525_v8, %v3559_v48  ;;  %v3483_v11 = vld [vmem:[#allocation3 + $0x70] sm:$0xff]  ;;  %v3452_v40 = vadd.f32 %v4531_v19, %v3436_v2  ;;  %v4157_v14 = vpack.c.bf16 %v3618_v35, %v3618_v35  ;;  %v4200_v34 = vunpack.c.h.bf16 %v4207_v24  ;;  %p4954_p13 = pnand %p4953_p12, %p4947_p6 }
 0x2a2   : > { %v3623_v16 = vadd.f32 %v4191_v57, %v3575_v4  ;;  %v3573_v17 = vsel %vm3540_vm10, %v3523_v59, %v3557_v10  ;;  %vm3543_vm11 = vcmp.ge.f32.partialorder %v3526_v53, 0.0  ;;  %v3560_v22 = vmul.f32 %v6110_v12, %v3526_v53 }
 0x2a3   : > { %v3434_v18 = vld [vmem:[#allocation3 + $0x68] sm:$0xff]  ;;  %v3621_v60 = vadd.f32 %v4187_v62, %v3573_v17  ;;  %v3524_v25 = vadd.f32 %v6096_v0, %v3501_v9  ;;  %v3506_v26 = vmul.f32 %v6091_v61, %v3483_v11  ;;  %3468 = vst.msk [vmem:[#allocation3 + $0x78] sm:$0xff] %vm1264_vm15, %v3452_v40  ;;  %v4196_v62 = vunpack.c.h.bf16 %v4206_v43 }
 0x2a4   : > { %3698 = vst.msk [vmem:[%s5873_s4 + $0x14] sm:$0xf] %vm686_vm0, %v4157_v14  ;;  %v4162_v28 = vpack.c.bf16 %v3623_v16, %v3623_v16  ;;  %v3450_v32 = vadd.f32 %v3434_v18, %v3409_v27  ;;  %v3576_v1 = vsel %vm3543_vm11, %v3526_v53, %v3560_v22 }
 0x2a5   : > { %v3481_v30 = vld [vmem:[#allocation3 + $0x60] sm:$0xff]  ;;  %v4160_v31 = vpack.c.bf16 %v3621_v60, %v3621_v60  ;;  %vm3541_vm12 = vcmp.ge.f32.partialorder %v3524_v25, 0.0  ;;  %v3558_v58 = vmul.f32 %v6110_v12, %v3524_v25  ;;  %v3624_v7 = vadd.f32 %v4192_v6, %v3576_v1 }
 0x2a6   : > { %3703 = vst.msk [vmem:[%s5873_s4 + $0x28] sm:$0xf] %vm686_vm0, %v4162_v28  ;;  %v3529_v45 = vadd.f32 %v6096_v0, %v3506_v26  ;;  %v3504_v36 = vmul.f32 %v6091_v61, %v3481_v30 }
 0x2a7   : > { %3466 = vst.msk [vmem:[#allocation3 + $0x68] sm:$0xff] %vm1264_vm15, %v3450_v32  ;;  %v3574_v38 = vsel %vm3541_vm12, %v3524_v25, %v3558_v58  ;;  %v4163_v44 = vpack.c.bf16 %v3624_v7, %v3624_v7 }
 0x2a8   : > { %3701 = vst.msk [vmem:[%s5873_s4 + $0x20] sm:$0xf] %vm686_vm0, %v4160_v31  ;;  %v3622_v39 = vadd.f32 %v4188_v29, %v3574_v38  ;;  %vm3546_vm13 = vcmp.ge.f32.partialorder %v3529_v45, 0.0  ;;  %v3563_v33 = vmul.f32 %v6110_v12, %v3529_v45  ;;  %v3527_v46 = vadd.f32 %v6096_v0, %v3504_v36 }
 0x2a9   : > { %3704 = vst.msk [vmem:[%s5873_s4 + $0x2c] sm:$0xf] %vm686_vm0, %v4163_v44 }
 0x2aa   : > { %v4161_v5 = vpack.c.bf16 %v3622_v39, %v3622_v39  ;;  %v3579_v49 = vsel %vm3546_vm13, %v3529_v45, %v3563_v33  ;;  %v3484_v23 = vld [vmem:[#allocation3 + $0x78] sm:$0xff]  ;;  %vm3544_vm14 = vcmp.ge.f32.partialorder %v3527_v46, 0.0  ;;  %v3561_v51 = vmul.f32 %v6110_v12, %v3527_v46 }
 0x2ab   : > { %v3627_v50 = vadd.f32 %v4199_v42, %v3579_v49  ;;  %v3507_v52 = vmul.f32 %v6091_v61, %v3484_v23 }
 0x2ac   : > { %3702 = vst.msk [vmem:[%s5873_s4 + $0x24] sm:$0xf] %vm686_vm0, %v4161_v5  ;;  %v3577_v21 = vsel %vm3544_vm14, %v3527_v46, %v3561_v51 }
 0x2ad   : > { %v4166_v41 = vpack.c.bf16 %v3627_v50, %v3627_v50  ;;  %v3530_v54 = vadd.f32 %v6096_v0, %v3507_v52  ;;  %v3625_v13 = vadd.f32 %v4195_v37, %v3577_v21 }
 0x2ae   : > { %v3482_v47 = vld [vmem:[#allocation3 + $0x68] sm:$0xff] }
 0x2af   : > { %v3505_v55 = vmul.f32 %v6091_v61, %v3482_v47  ;;  %3707 = vst.msk [vmem:[%s5873_s4 + $0x38] sm:$0xf] %vm686_vm0, %v4166_v41  ;;  %vm3547_vm15 = vcmp.ge.f32.partialorder %v3530_v54, 0.0  ;;  %v3564_v56 = vmul.f32 %v6110_v12, %v3530_v54  ;;  %v4164_v8 = vpack.c.bf16 %v3625_v13, %v3625_v13 }
 0x2b1   : > { %v3528_v57 = vadd.f32 %v6096_v0, %v3505_v55  ;;  %v3580_v59 = vsel %vm3547_vm15, %v3530_v54, %v3564_v56  ;;  %3705 = vst.msk [vmem:[%s5873_s4 + $0x30] sm:$0xf] %vm686_vm0, %v4164_v8 }
 0x2b2   : > { %v3628_v20 = vadd.f32 %v4200_v34, %v3580_v59 }
 0x2b3   : > { %vm3545_vm1 = vcmp.ge.f32.partialorder %v3528_v57, 0.0  ;;  %v3562_v61 = vmul.f32 %v6110_v12, %v3528_v57 }
 0x2b4   : > { %v4167_v15 = vpack.c.bf16 %v3628_v20, %v3628_v20 }
 0x2b5   : > { %v3578_v63 = vsel %vm3545_vm1, %v3528_v57, %v3562_v61 }
 0x2b6   : > { %v3626_v48 = vadd.f32 %v4196_v62, %v3578_v63  ;;  %3708 = vst.msk [vmem:[%s5873_s4 + $0x3c] sm:$0xf] %vm686_vm0, %v4167_v15 }
 0x2b8   : > { %v4165_v0 = vpack.c.bf16 %v3626_v48, %v3626_v48 }
 0x2ba   : > { %3706 = vst.msk [vmem:[%s5873_s4 + $0x34] sm:$0xf] %vm686_vm0, %v4165_v0 }
 0x2bb   : > { %4957 = shalt.err (!%p4954_p13)
}
 0x2bc   : > { %s4958_s17 = scalar_lea.hbm %s6241_s5, 1024  ;;  %s4962_s24 = scalar_lea.hbm %s6437_s21, 4096 }
 0x2bd   : > { %p4959_p8 = scmp.ne.s32.totalorder %s6241_s5, %s4958_s17  ;;  %p4963_p0 = scmp.lt.s32.totalorder %s6241_s5, %s6437_s21 }
 0x2be   : > { %p4964_p1 = scmp.lt.s32.totalorder %s4962_s24, %s4958_s17 }
 0x2bf   : > { %p4960_p11 = pnand %p4959_p8, %p6438_p5 }
 0x2c0   : > { %p4965_p4 = por %p4964_p1, %p4963_p0 }
 0x2c1   : > { %p4961_p7 = pneg %p4960_p11 }
 0x2c3   : > { %p4966_p3 = pnand %p4965_p4, %p4961_p7 }
 0x2c5   : > { %4969 = shalt.err (!%p4966_p3)
}
 0x2c6   : > { %s5116_s10 = smov 64   ;;  %s5117_s30 = smov 4  }
 0x2c7   : > { %4552 = dma.vmem_to_hbm [thread:$0]  (%p6438_p5), %s6243_s2, 1024, %s6241_s5, %s6249_s22, %s5116_s10, %s5116_s10, %s5117_s30  }
 0x2c8 PF: > { %s6439_s27 = sld [smem:[#allocation24_spill]]  ;;  %p4578_p9 = scmp.ge.s32.totalorder %s5104_s19, 2 }
 0x2c9   : > { %s6440_s18 = sld [smem:[#allocation31_spill]] }
 0x2ce   : > { %s3741_s8 = sand.u32 1, %s6439_s27  }
 0x2cf   : > { %p6441_p6 = scmp.ne.s32.totalorder %s6440_s18, 0  ;;  %s3742_s28 = scalar_lea.sflag [#allocation7], %s3741_s8 }
 0x2d1   : > { %p4572_p2 = pnand %p4578_p9, %p6441_p6 }
 0x2d3   : > { %p4573_p10 = pneg %p4572_p2 }
 0x2d5   : > { %5047 = dma.done.wait (%p4573_p10), %s3742_s28, 1024  }
 0x2d6   : > { %5049 = vsyncadd (%p4573_p10), %s3742_s28, 4294966272  ;;  %s29_s19 = sadd.s32 1, %s5104_s19   ;;  %s6443_s29 = sld [smem:[#allocation22_spill]] }
 0x2d7   : > { %p6277_p12 = scmp.ge.s32.totalorder %s29_s19, 6   ;;  %s6444_s16 = sld [smem:[#allocation23_spill]] }
 0x2d8   : > { %s6445_s12 = sld [smem:[#allocation37_spill]]  ;;  %s6452_s30 = smov %s5060_s9 }
 0x2d9   : > { %s6446_s2 = sld [smem:[#allocation25_spill]]  ;;  %s6453_s9 = smov %s5446_s14 }
 0x2da   : > { %s6447_s23 = sld [smem:[#allocation36_spill]]  ;;  %s6454_s10 = smov %s5068_s11 }
 0x2db   : > { %s6448_s15 = sld [smem:[#allocation28_spill]]  ;;  %s6456_s6 = smov %s5080_s13 }
 0x2dc   : > { %s6449_s0 = sld [smem:[#allocation29_spill]] }
 0x2dd   : > { %s6450_s17 = sld [smem:[#allocation30_spill]]  ;;  %s6455_s11 = smov %s6444_s16 }
 0x2de   : > { %s6451_s18 = sld [smem:[#allocation35_spill]]  ;;  %28 = sbr.rel (!%p6277_p12) target bundleno = 23 (0x17), region = 163 }
 0x2df   : > { %s6457_s13 = smov %s6446_s2 }
 0x2e0   : > { %s6458_s14 = smov %s6447_s23 }
 0x2e2   : > { %s6459_s16 = smov %s6449_s0 }
 0x2e3   :  { %3747 = vsyncpa [#allocation6], 1 }
 0x2e4   :  { %3749 = vsyncpa [#allocation6 + $0x1], 1 }
 0x2e5   :  { %3750 = vsyncpa [#allocation9], 1 }
 0x2e6   :  { %3752 = vsyncpa [#allocation9 + $0x1], 1 }
 0x2e7   :  { %3753 = vsyncpa [#allocation12], 1 }
 0x2e8   :  { %3754 = vsyncpa [#allocation7], 1 }
 0x2e9   :  { %3756 = vsyncpa [#allocation7 + $0x1], 1 }

</bundles_post_ra>
